<compile_context>
chip_gen: v6e
topology: v6e:2x2x1
jax: 0.10.0
libtpu: 0.0.40
codegen_flags: <defaults>
</compile_context>

<pallas_src>
import jax
import jax.numpy as jnp
from jax.experimental import pallas as pl
from jax.experimental.pallas import tpu as pltpu

hidden_sizes = [16, 64, 64, 1024]
# Stand-ins for len(df['POS_i'].unique()) (dataset-dependent in the original).
input_sizes = [10, 12, 14, 20]

H_SUM = sum(hidden_sizes)                 # 1168
H_MAX = max(hidden_sizes)                 # 1024
LANE = 128


def _round_up(x, m):
    return (x + m - 1) // m * m


N_TOTAL = sum(input_sizes)                # 56
N_PAD = _round_up(N_TOTAL, LANE)          # 128  (fused head output width)
K_IN = _round_up(N_TOTAL, LANE)           # 128  (fused one-hot encoder input width)
TAIL = H_SUM - H_MAX                      # 144  (first decoded feature any head reads)
B_BIAS = 2 * H_MAX + N_PAD                # 2176 = 17 x 128 (packed bias operand)
_SEG_OFF = [sum(input_sizes[:i]) for i in range(4)]    # [0, 10, 22, 36] (one-hot & head cols)
_FEAT_OFF = [sum(hidden_sizes[:i]) for i in range(4)]  # [0, 16, 80, 144]


def _ae_kernel(idx_ref, wenc_ref, wd_ref, wh_ref, b_ref, o_ref):
    idx = idx_ref[...]                                     # (TB, 4) int32
    tb = idx.shape[0]
    # Build a (TB, 128) one-hot over the concatenated category space: exactly one
    # 1 per segment at column seg_off_i + idx_i  (disjoint ranges, cols 56..127 pad).
    lane = jax.lax.broadcasted_iota(jnp.int32, (tb, K_IN), 1)
    hot = ((lane == idx[:, 0:1] + _SEG_OFF[0]) |
           (lane == idx[:, 1:2] + _SEG_OFF[1]) |
           (lane == idx[:, 2:3] + _SEG_OFF[2]) |
           (lane == idx[:, 3:4] + _SEG_OFF[3]))
    onehot = jnp.where(hot, 1.0, 0.0).astype(jnp.bfloat16)  # (TB, 128)

    # packed biases (f32); every slice boundary is a multiple of 128 lanes
    be = b_ref[:, :H_MAX]                                   # (1, 1024)
    bd = b_ref[:, H_MAX:2 * H_MAX]                          # (1, 1024)
    bh = b_ref[:, 2 * H_MAX:]                               # (1, 128)

    # fused embedding-gather + Conv1d center tap, +bias, ReLU (bf16 MXU, f32 acc)
    h = jnp.maximum(
        jnp.dot(onehot, wenc_ref[...], preferred_element_type=jnp.float32) + be,
        0.0).astype(jnp.bfloat16)                           # (TB, 1024) bf16
    # ConvTranspose1d center tap restricted to the 1024 decoded features the heads use
    y = jnp.maximum(
        jnp.dot(h, wd_ref[...], preferred_element_type=jnp.float32) + bd,
        0.0).astype(jnp.bfloat16)                           # (TB, 1024) bf16
    # all four reconstruction heads fused into one lane-dense matmul
    o_ref[...] = jnp.dot(y, wh_ref[...], preferred_element_type=jnp.float32) + bh


def make_params(key):
    ks = jax.random.split(key, 16)
    p = {}
    # Embedding tables: (num_embeddings, dim)
    for i, (n, h) in enumerate(zip(input_sizes, hidden_sizes)):
        p[f'emb{i+1}'] = jax.random.normal(ks[i], (n, h), jnp.float32) * 0.1
    # Conv1d(H_SUM -> H_MAX, k=3): weight (H_MAX, H_SUM, 3); keep center tap, transpose.
    conv_w = jax.random.normal(ks[4], (H_MAX, H_SUM, 3), jnp.float32) * 0.02
    p['we'] = jnp.transpose(conv_w[:, :, 1])                 # (H_SUM, H_MAX)
    p['be'] = jax.random.normal(ks[5], (H_MAX,), jnp.float32) * 0.02
    # ConvTranspose1d(H_MAX -> H_SUM, k=3): weight (H_MAX, H_SUM, 3); center tap as-is.
    deconv_w = jax.random.normal(ks[6], (H_MAX, H_SUM, 3), jnp.float32) * 0.02
    p['wd'] = deconv_w[:, :, 1]                              # (H_MAX, H_SUM)
    p['bd'] = jax.random.normal(ks[7], (H_SUM,), jnp.float32) * 0.02
    # Reconstruction Linear layers: torch weight (out, in); store transposed (in, out).
    for i, (n, h) in enumerate(zip(input_sizes, hidden_sizes)):
        p[f'w{i+1}'] = jax.random.normal(ks[8 + 2 * i], (h, n), jnp.float32) * 0.05
        p[f'b{i+1}'] = jax.random.normal(ks[9 + 2 * i], (n,), jnp.float32) * 0.05
    return p


def pack_params(params):
    """One-time packing (hoisted out of the jitted forward, per perf review)."""
    # Fused embedding + encoder table: row (seg_off_i + j) = emb_i[j] @ we[segment i rows]
    wenc = jnp.zeros((K_IN, H_MAX), jnp.float32)
    for i, (n, h) in enumerate(zip(input_sizes, hidden_sizes)):
        seg = params['we'][_FEAT_OFF[i]:_FEAT_OFF[i] + h, :]           # (h_i, 1024)
        wenc = wenc.at[_SEG_OFF[i]:_SEG_OFF[i] + n, :].set(params[f'emb{i+1}'] @ seg)
    # Decoder restricted to decoded features [TAIL:H_SUM] (union of all head slices).
    wd = params['wd'][:, TAIL:]                                        # (1024, 1024)
    bd = params['bd'][TAIL:]                                           # (1024,)
    # Fused heads: head i reads decoded features [H_SUM - h_i:] == y cols [H_MAX - h_i:]
    # and writes output cols [seg_off_i : seg_off_i + n_i].
    wh = jnp.zeros((H_MAX, N_PAD), jnp.float32)
    bh = jnp.zeros((N_PAD,), jnp.float32)
    for i, (n, h) in enumerate(zip(input_sizes, hidden_sizes)):
        wh = wh.at[H_MAX - h:, _SEG_OFF[i]:_SEG_OFF[i] + n].set(params[f'w{i+1}'])
        bh = bh.at[_SEG_OFF[i]:_SEG_OFF[i] + n].set(params[f'b{i+1}'])
    bias = jnp.concatenate([params['be'], bd, bh]).reshape(1, B_BIAS)  # (1, 2176) f32
    return {'wenc': wenc.astype(jnp.bfloat16),
            'wd': wd.astype(jnp.bfloat16),
            'wh': wh.astype(jnp.bfloat16),
            'bias': bias}


def multimodal_autoencoder_forward(i1, i2, i3, i4, packed):
    B = i1.shape[0]
    idx = jnp.stack([i1, i2, i3, i4], axis=1).astype(jnp.int32)        # (B, 4)

    # Batch tiling: >=2 grid steps for moderate/large B so v7x megacore can shard
    # the "parallel" axis across both TensorCores; cap TB at 512 (VMEM-friendly,
    # multiple of 256 for the v6e MXU M tiling).
    if B <= 16:
        TB = _round_up(max(B, 8), 8)
    elif B <= 1024:
        TB = _round_up(pl.cdiv(B, 2), 16)
    else:
        TB = 512
    B_pad = _round_up(B, TB)
    idx_pad = jnp.zeros((B_pad, 4), jnp.int32).at[:B].set(idx)

    out = pl.pallas_call(
        _ae_kernel,
        out_shape=jax.ShapeDtypeStruct((B_pad, N_PAD), jnp.float32),
        grid=(B_pad // TB,),
        in_specs=[
            pl.BlockSpec((TB, 4), lambda i: (i, 0)),            # per-row indices (16 B/row)
            pl.BlockSpec((K_IN, H_MAX), lambda i: (0, 0)),      # fused emb+encoder W (resident)
            pl.BlockSpec((H_MAX, H_MAX), lambda i: (0, 0)),     # decoder W, tail cols (resident)
            pl.BlockSpec((H_MAX, N_PAD), lambda i: (0, 0)),     # fused heads W (resident)
            pl.BlockSpec((1, B_BIAS), lambda i: (0, 0)),        # packed biases (resident)
        ],
        out_specs=pl.BlockSpec((TB, N_PAD), lambda i: (i, 0)),
        compiler_params=pltpu.CompilerParams(
            dimension_semantics=("parallel",),          # megacore shard on v7x
            vmem_limit_bytes=40 * 1024 * 1024),         # ~13 MiB used at TB=512; <64 MiB/TC v7x
    )(idx_pad, packed['wenc'], packed['wd'], packed['wh'], packed['bias'])

    return tuple(out[:B, _SEG_OFF[i]:_SEG_OFF[i] + input_sizes[i]] for i in range(4))


def reference_forward(i1, i2, i3, i4, params):
    """Plain-JAX f32 reference mirroring the PyTorch forward exactly."""
    e1 = jnp.take(params['emb1'], i1.astype(jnp.int32), axis=0)
    e2 = jnp.take(params['emb2'], i2.astype(jnp.int32), axis=0)
    e3 = jnp.take(params['emb3'], i3.astype(jnp.int32), axis=0)
    e4 = jnp.take(params['emb4'], i4.astype(jnp.int32), axis=0)
    x = jnp.concatenate([e1, e2, e3, e4], axis=1)
    h = jnp.maximum(x @ params['we'] + params['be'], 0.0)
    y = jnp.maximum(h @ params['wd'] + params['bd'], 0.0)
    outs = []
    for i, hsz in enumerate(hidden_sizes):
        s = y[:, H_SUM - hsz:]                       # PyTorch x[:, -h_i:]
        outs.append(s @ params[f'w{i+1}'] + params[f'b{i+1}'])
    return tuple(outs)


if __name__ == "__main__":
    key = jax.random.PRNGKey(0)
    pkey, k1, k2, k3, k4 = jax.random.split(key, 5)
    params = make_params(pkey)
    packed = pack_params(params)          # one-time packing, outside the jitted forward

    fwd = jax.jit(multimodal_autoencoder_forward)

    # --- small-batch check (single tile) ---
    B = 8
    i1 = jax.random.randint(k1, (B,), 0, input_sizes[0], dtype=jnp.int32)
    i2 = jax.random.randint(k2, (B,), 0, input_sizes[1], dtype=jnp.int32)
    i3 = jax.random.randint(k3, (B,), 0, input_sizes[2], dtype=jnp.int32)
    i4 = jax.random.randint(k4, (B,), 0, input_sizes[3], dtype=jnp.int32)
    outs = jax.block_until_ready(fwd(i1, i2, i3, i4, packed))
    assert tuple(o.shape for o in outs) == tuple((B, n) for n in input_sizes)
    assert all(o.dtype == jnp.float32 for o in outs)
    refs = reference_forward(i1, i2, i3, i4, params)
    max_diff = max(float(jnp.max(jnp.abs(o - r))) for o, r in zip(outs, refs))
    assert max_diff < 2e-2, f"max abs diff {max_diff} too large (B=8)"

    # --- odd-batch check (exercises batch padding + multi-step grid) ---
    B2 = 37
    j1 = jax.random.randint(k4, (B2,), 0, input_sizes[0], dtype=jnp.int32)
    j2 = jax.random.randint(k3, (B2,), 0, input_sizes[1], dtype=jnp.int32)
    j3 = jax.random.randint(k2, (B2,), 0, input_sizes[2], dtype=jnp.int32)
    j4 = jax.random.randint(k1, (B2,), 0, input_sizes[3], dtype=jnp.int32)
    outs2 = jax.block_until_ready(fwd(j1, j2, j3, j4, packed))
    refs2 = reference_forward(j1, j2, j3, j4, params)
    max_diff2 = max(float(jnp.max(jnp.abs(o - r))) for o, r in zip(outs2, refs2))
    assert max_diff2 < 2e-2, f"max abs diff {max_diff2} too large (B=37)"

    print("KERNEL_OK")
</pallas_src>

<mosaic_0001>
module attributes {stable_mosaic.version = 11 : i64} {
  func.func @_ae_kernel(%arg0: i32, %arg1: memref<8x4xi32, #tpu.memory_space<vmem>>, %arg2: memref<128x1024xbf16, #tpu.memory_space<vmem>>, %arg3: memref<1024x1024xbf16, #tpu.memory_space<vmem>>, %arg4: memref<1024x128xbf16, #tpu.memory_space<vmem>>, %arg5: memref<1x2176xf32, #tpu.memory_space<vmem>>, %arg6: memref<8x128xf32, #tpu.memory_space<vmem>>) attributes {dimension_semantics = [#tpu.dimension_semantics<parallel>], iteration_bounds = array<i64: 1>, scalar_prefetch = 0 : i64, scratch_operands = 0 : i64, tpu.core_type = #tpu.core_type<tc>, window_params = [{transform_indices = @transform_0, window_bounds = array<i64: 8, 4>}, {pipeline_mode = #tpu.pipeline_mode<synchronous>, transform_indices = @transform_1, window_bounds = array<i64: 128, 1024>}, {pipeline_mode = #tpu.pipeline_mode<synchronous>, transform_indices = @transform_2, window_bounds = array<i64: 1024, 1024>}, {pipeline_mode = #tpu.pipeline_mode<synchronous>, transform_indices = @transform_3, window_bounds = array<i64: 1024, 128>}, {pipeline_mode = #tpu.pipeline_mode<synchronous>, transform_indices = @transform_4, window_bounds = array<i64: 1, 2176>}, {transform_indices = @transform_5, window_bounds = array<i64: 8, 128>}]} {
    %c0 = arith.constant 0 : index
    %c0_0 = arith.constant 0 : index
    %0 = vector.load %arg1[%c0, %c0_0] : memref<8x4xi32, #tpu.memory_space<vmem>>, vector<8x4xi32>
    %1 = tpu.iota {dimensions = array<i32: 1>} : vector<8x128xi32>
    %2 = vector.extract_strided_slice %0 {offsets = [0, 0], sizes = [8, 1], strides = [1, 1]} : vector<8x4xi32> to vector<8x1xi32>
    %c0_i32 = arith.constant 0 : i32
    %3 = vector.broadcast %c0_i32 : i32 to vector<8x1xi32>
    %4 = arith.addi %2, %3 : vector<8x1xi32>
    %5 = vector.broadcast %4 : vector<8x1xi32> to vector<8x128xi32>
    %6 = arith.cmpi eq, %1, %5 : vector<8x128xi32>
    %7 = vector.extract_strided_slice %0 {offsets = [0, 1], sizes = [8, 1], strides = [1, 1]} : vector<8x4xi32> to vector<8x1xi32>
    %c10_i32 = arith.constant 10 : i32
    %8 = vector.broadcast %c10_i32 : i32 to vector<8x1xi32>
    %9 = arith.addi %7, %8 : vector<8x1xi32>
    %10 = vector.broadcast %9 : vector<8x1xi32> to vector<8x128xi32>
    %11 = arith.cmpi eq, %1, %10 : vector<8x128xi32>
    %12 = arith.ori %6, %11 : vector<8x128xi1>
    %13 = vector.extract_strided_slice %0 {offsets = [0, 2], sizes = [8, 1], strides = [1, 1]} : vector<8x4xi32> to vector<8x1xi32>
    %c22_i32 = arith.constant 22 : i32
    %14 = vector.broadcast %c22_i32 : i32 to vector<8x1xi32>
    %15 = arith.addi %13, %14 : vector<8x1xi32>
    %16 = vector.broadcast %15 : vector<8x1xi32> to vector<8x128xi32>
    %17 = arith.cmpi eq, %1, %16 : vector<8x128xi32>
    %18 = arith.ori %12, %17 : vector<8x128xi1>
    %19 = vector.extract_strided_slice %0 {offsets = [0, 3], sizes = [8, 1], strides = [1, 1]} : vector<8x4xi32> to vector<8x1xi32>
    %c36_i32 = arith.constant 36 : i32
    %20 = vector.broadcast %c36_i32 : i32 to vector<8x1xi32>
    %21 = arith.addi %19, %20 : vector<8x1xi32>
    %22 = vector.broadcast %21 : vector<8x1xi32> to vector<8x128xi32>
    %23 = arith.cmpi eq, %1, %22 : vector<8x128xi32>
    %24 = arith.ori %18, %23 : vector<8x128xi1>
    %cst = arith.constant 1.000000e+00 : f32
    %cst_1 = arith.constant 0.000000e+00 : f32
    %25 = vector.broadcast %cst : f32 to vector<8x128xf32>
    %26 = vector.broadcast %cst_1 : f32 to vector<8x128xf32>
    %27 = arith.select %24, %25, %26 : vector<8x128xi1>, vector<8x128xf32>
    %28 = arith.truncf %27 : vector<8x128xf32> to vector<8x128xbf16>
    %c0_2 = arith.constant 0 : index
    %c0_3 = arith.constant 0 : index
    %29 = vector.load %arg5[%c0_2, %c0_3] : memref<1x2176xf32, #tpu.memory_space<vmem>>, vector<1x1024xf32>
    %c0_4 = arith.constant 0 : index
    %c1024 = arith.constant 1024 : index
    %30 = vector.load %arg5[%c0_4, %c1024] : memref<1x2176xf32, #tpu.memory_space<vmem>>, vector<1x1024xf32>
    %c0_5 = arith.constant 0 : index
    %c2048 = arith.constant 2048 : index
    %31 = vector.load %arg5[%c0_5, %c2048] : memref<1x2176xf32, #tpu.memory_space<vmem>>, vector<1x128xf32>
    %c0_6 = arith.constant 0 : index
    %c0_7 = arith.constant 0 : index
    %32 = vector.load %arg2[%c0_6, %c0_7] : memref<128x1024xbf16, #tpu.memory_space<vmem>>, vector<128x1024xbf16>
    %cst_8 = arith.constant dense<0.000000e+00> : vector<8x1024xf32>
    %33 = tpu.matmul %28, %32, %cst_8 {dimension_numbers = #tpu.dot_dimension_numbers<[1], [0], [0], [1], [0, 0, 1, 1], [], []>} : vector<8x128xbf16>, vector<128x1024xbf16>, vector<8x1024xf32> -> vector<8x1024xf32>
    %34 = vector.broadcast %29 : vector<1x1024xf32> to vector<8x1024xf32>
    %35 = arith.addf %33, %34 : vector<8x1024xf32>
    %cst_9 = arith.constant 0.000000e+00 : f32
    %36 = vector.broadcast %cst_9 : f32 to vector<8x1024xf32>
    %37 = arith.maximumf %35, %36 : vector<8x1024xf32>
    %38 = arith.truncf %37 : vector<8x1024xf32> to vector<8x1024xbf16>
    %c0_10 = arith.constant 0 : index
    %c0_11 = arith.constant 0 : index
    %39 = vector.load %arg3[%c0_10, %c0_11] : memref<1024x1024xbf16, #tpu.memory_space<vmem>>, vector<1024x1024xbf16>
    %cst_12 = arith.constant dense<0.000000e+00> : vector<8x1024xf32>
    %40 = tpu.matmul %38, %39, %cst_12 {dimension_numbers = #tpu.dot_dimension_numbers<[1], [0], [0], [1], [0, 0, 1, 1], [], []>} : vector<8x1024xbf16>, vector<1024x1024xbf16>, vector<8x1024xf32> -> vector<8x1024xf32>
    %41 = vector.broadcast %30 : vector<1x1024xf32> to vector<8x1024xf32>
    %42 = arith.addf %40, %41 : vector<8x1024xf32>
    %cst_13 = arith.constant 0.000000e+00 : f32
    %43 = vector.broadcast %cst_13 : f32 to vector<8x1024xf32>
    %44 = arith.maximumf %42, %43 : vector<8x1024xf32>
    %45 = arith.truncf %44 : vector<8x1024xf32> to vector<8x1024xbf16>
    %c0_14 = arith.constant 0 : index
    %c0_15 = arith.constant 0 : index
    %46 = vector.load %arg4[%c0_14, %c0_15] : memref<1024x128xbf16, #tpu.memory_space<vmem>>, vector<1024x128xbf16>
    %cst_16 = arith.constant dense<0.000000e+00> : vector<8x128xf32>
    %47 = tpu.matmul %45, %46, %cst_16 {dimension_numbers = #tpu.dot_dimension_numbers<[1], [0], [0], [1], [0, 0, 1, 1], [], []>} : vector<8x1024xbf16>, vector<1024x128xbf16>, vector<8x128xf32> -> vector<8x128xf32>
    %48 = vector.broadcast %31 : vector<1x128xf32> to vector<8x128xf32>
    %49 = arith.addf %47, %48 : vector<8x128xf32>
    %c0_17 = arith.constant 0 : index
    %c0_18 = arith.constant 0 : index
    %50 = vector.load %arg6[%c0_17, %c0_18] : memref<8x128xf32, #tpu.memory_space<vmem>>, vector<8x128xf32>
    tpu.vector_store %arg6[%c0_17, %c0_18], %49 {strides = array<i32>} : memref<8x128xf32, #tpu.memory_space<vmem>>, vector<8x128xf32>,
    return
  }
  func.func @transform_0(%arg0: i32) -> (i32, i32) {
    %c0_i32 = arith.constant 0 : i32
    %c0_i32_0 = arith.constant 0 : i32
    return %arg0, %c0_i32 : i32, i32
  }
  func.func @transform_1(%arg0: i32) -> (i32, i32) {
    %c0_i32 = arith.constant 0 : i32
    %c0_i32_0 = arith.constant 0 : i32
    %c0_i32_1 = arith.constant 0 : i32
    return %c0_i32, %c0_i32_0 : i32, i32
  }
  func.func @transform_2(%arg0: i32) -> (i32, i32) {
    %c0_i32 = arith.constant 0 : i32
    %c0_i32_0 = arith.constant 0 : i32
    %c0_i32_1 = arith.constant 0 : i32
    return %c0_i32, %c0_i32_0 : i32, i32
  }
  func.func @transform_3(%arg0: i32) -> (i32, i32) {
    %c0_i32 = arith.constant 0 : i32
    %c0_i32_0 = arith.constant 0 : i32
    %c0_i32_1 = arith.constant 0 : i32
    return %c0_i32, %c0_i32_0 : i32, i32
  }
  func.func @transform_4(%arg0: i32) -> (i32, i32) {
    %c0_i32 = arith.constant 0 : i32
    %c0_i32_0 = arith.constant 0 : i32
    %c0_i32_1 = arith.constant 0 : i32
    return %c0_i32, %c0_i32_0 : i32, i32
  }
  func.func @transform_5(%arg0: i32) -> (i32, i32) {
    %c0_i32 = arith.constant 0 : i32
    %c0_i32_0 = arith.constant 0 : i32
    return %arg0, %c0_i32 : i32, i32
  }
}

</mosaic_0001>

<bundles_post_ra>
// kernel: multimodal_autoencoder_forward.1
= control target key start
LH: loop header
LB: loop body
LE: loop exit
PB: predicated region body
PF: predicated region fallthrough
CT: control target
= control target key end

     0   :  { %10 = vsyncpa [#allocation3], 0  ;;  %s6365_s0 = inlined_call_operand.vmem [shape: s32[8,4], index: 0, kind: input, shape index: {}]   ;;  %s6366_s1 = inlined_call_operand.hbm [shape: bf16[128,1024], index: 1, kind: input, shape index: {}]   ;;  %s6367_s2 = inlined_call_operand.hbm [shape: bf16[1024,1024], index: 2, kind: input, shape index: {}]   ;;  %s6368_s3 = inlined_call_operand.hbm [shape: bf16[1024,128], index: 3, kind: input, shape index: {}]   ;;  %s6369_s4 = inlined_call_operand.hbm [shape: f32[1,2176], index: 4, kind: input, shape index: {}]   ;;  %s6370_s5 = inlined_call_operand.vmem [shape: f32[8,128], index: 5, kind: output, shape index: {}]  }
   0x1   :  { %11 = vsyncpa [#allocation5], 0 }
   0x2   :  { %12 = vsyncpa [#allocation8], 0  ;;  %s6086_s18 = smov [#allocation4]   ;;  %s6087_s20 = smov [#allocation2]  }
   0x3   :  { %s32_s19 = sshll.u32 %s6086_s18, 4  ;;  %s20_s21 = sshll.u32 %s6087_s20, 4  ;;  %s33_s19 = int_to_ptr.vmem [resolvable:$true] %s32_s19  ;;  %s21_s21 = int_to_ptr.vmem [resolvable:$true] %s20_s21 }
   0x4   :  { %s6008_s22 = scalar_lea.vmem %s33_s19, 65536  ;;  %p6013_p1 = scmp.lt.s32.totalorder %s33_s19, %s33_s19 }
   0x5   :  { %p6009_p0 = scmp.ne.s32.totalorder %s33_s19, %s6008_s22  ;;  %p6014_p2 = scmp.lt.s32.totalorder %s6008_s22, %s6008_s22 }
   0x7   :  { %p6015_p3 = por %p6014_p2, %p6013_p1 }
   0x9   :  { %p6016_p4 = pnand %p6015_p3, %p6009_p0 }
   0xb   :  { %6019 = shalt.err (!%p6016_p4)
}
   0xc   :  { %s6088_s23 = smov 512   ;;  %s6089_s24 = smov 32  }
   0xd   :  { %38 = dma.hbm_to_vmem [thread:$0]  %s6367_s2, 65536, %s33_s19, [#allocation5], %s6088_s23, %s6088_s23, %s6089_s24  }
   0xe   :  { %s6028_s27 = scalar_lea.vmem %s21_s21, 8192  ;;  %p6033_p6 = scmp.lt.s32.totalorder %s21_s21, %s21_s21 }
   0xf   :  { %p6029_p5 = scmp.ne.s32.totalorder %s21_s21, %s6028_s27  ;;  %p6034_p7 = scmp.lt.s32.totalorder %s6028_s27, %s6028_s27 }
  0x11   :  { %p6035_p8 = por %p6034_p7, %p6033_p6 }
  0x13   :  { %p6036_p9 = pnand %p6035_p8, %p6029_p5 }
  0x15   :  { %6039 = shalt.err (!%p6036_p9)
}
  0x16   :  { %26 = dma.hbm_to_vmem [thread:$0]  %s6366_s1, 8192, %s21_s21, [#allocation3], %s6088_s23, %s6088_s23, %s6089_s24  }
  0x17   :  { %s6090_s30 = smov [#allocation6]  }
  0x18   :  { %s44_s6 = sshll.u32 %s6090_s30, 4  ;;  %s45_s6 = int_to_ptr.vmem [resolvable:$true] %s44_s6 }
  0x19   :  { %s6048_s7 = scalar_lea.vmem %s45_s6, 8192  ;;  %p6053_p11 = scmp.lt.s32.totalorder %s45_s6, %s45_s6 }
  0x1a   :  { %p6049_p10 = scmp.ne.s32.totalorder %s45_s6, %s6048_s7  ;;  %p6054_p12 = scmp.lt.s32.totalorder %s6048_s7, %s6048_s7 }
  0x1c   :  { %p6055_p13 = por %p6054_p12, %p6053_p11 }
  0x1e   :  { %p6056_p0 = pnand %p6055_p13, %p6049_p10 }
  0x20   :  { %6059 = shalt.err (!%p6056_p0)
}
  0x21   :  { %s6091_s2 = smov 64   ;;  %s6092_s8 = smov 4  }
  0x22   :  { %50 = dma.hbm_to_vmem [thread:$0]  %s6368_s3, 8192, %s45_s6, [#allocation5], %s6091_s2, %s6091_s2, %s6092_s8  }
  0x23   :  { %s6093_s11 = smov [#allocation7]  }
  0x24   :  { %s57_s12 = sshll.u32 %s6093_s11, 4  ;;  %s58_s12 = int_to_ptr.vmem [resolvable:$true] %s57_s12 }
  0x25   :  { %s6068_s1 = scalar_lea.vmem %s58_s12, 272  ;;  %s6072_s13 = scalar_lea.vmem %s58_s12, 288 }
  0x26   :  { %p6069_p1 = scmp.ne.s32.totalorder %s58_s12, %s6068_s1  ;;  %p6073_p2 = scmp.lt.s32.totalorder %s58_s12, %s58_s12 }
  0x27   :  { %p6074_p3 = scmp.lt.s32.totalorder %s6072_s13, %s6068_s1 }
  0x29   :  { %p6075_p4 = por %p6074_p3, %p6073_p2 }
  0x2b   :  { %p6076_p5 = pnand %p6075_p4, %p6069_p1 }
  0x2d   :  { %6079 = shalt.err (!%p6076_p5)
}
  0x2e   :  { %60 = dma.hbm_to_vmem [thread:$0]  %s6369_s4, 272, %s58_s12, [#allocation8]  }
  0x2f   :  { %6080 = dma.done.wait [#allocation3], 8192  }
  0x30   :  { %6081 = vsyncadd [#allocation3], 4294959104 }
  0x31   :  { %6082 = dma.done.wait [#allocation5], 73728  }
  0x32   :  { %6083 = vsyncadd [#allocation5], 4294893568 }
  0x33   :  { %6084 = dma.done.wait [#allocation8], 272  }
  0x34   :  { %6085 = vsyncadd [#allocation8], 4294967024  ;;  %v6094_v0 = vmov 0   ;;  %v6095_v1 = vmov 2   ;;  %v74_v2 = vld [vmem:[%s6365_s0] sm:$0xff]  ;;  %v161_v7 = vld [vmem:[#allocation2 + $0x1c8] sm:$0xff] }
  0x35   :  { %5930 = vset.pattern.permute.xlu0 %v6094_v0  ;;  %5932 = vset.pattern.permute.xlu1 %v6095_v1  ;;  %v160_v3 = vld [vmem:[#allocation2 + $0x1c0] sm:$0xff]  ;;  %v87_v5 = vadd.s32 22, %v74_v2  ;;  %v165_v8 = vld [vmem:[#allocation2 + $0x1e8] sm:$0xff]  ;;  %v81_v10 = vadd.s32 10, %v74_v2  ;;  %v93_v22 = vadd.s32 36, %v74_v2  ;;  %v6096_v25 = vmov 1  }
  0x36   :  { %561 = vmatprep.mubr.bf16.mxu0 %v6094_v0  ;;  %602 = vmatprep.mubr.bf16.mxu1 %v6094_v0  ;;  %v164_v4 = vld [vmem:[#allocation2 + $0x1e0] sm:$0xff]  ;;  %v5239_v11 = vcombine.high %v161_v7, %v165_v8  ;;  %v5238_v13 = vcombine.low %v161_v7, %v165_v8  ;;  %v153_v15 = vld [vmem:[#allocation2 + $0x188] sm:$0xff]  ;;  %v6097_v31 = vmov 3   ;;  %v6147_v42 = vld [vmem:[#allocation2 + $0x1d0] sm:$0xff] }
  0x37   :  { %78 = vperm.xlu0 %5930, %v74_v2   ;;  %v5237_v6 = vcombine.high %v160_v3, %v164_v4  ;;  %v152_v9 = vld [vmem:[#allocation2 + $0x180] sm:$0xff]  ;;  %v5236_v12 = vcombine.low %v160_v3, %v164_v4  ;;  %v157_v16 = vld [vmem:[#allocation2 + $0x1a8] sm:$0xff]  ;;  %89 = vperm.xlu1 %5932, %v87_v5   ;;  %v6149_v43 = vld [vmem:[#allocation2 + $0x1f0] sm:$0xff] }
  0x38   :  { %v156_v14 = vld [vmem:[#allocation2 + $0x1a0] sm:$0xff]  ;;  %v5231_v18 = vcombine.high %v153_v15, %v157_v16  ;;  %v145_v21 = vld [vmem:[#allocation2 + $0x148] sm:$0xff]  ;;  %570 = vmatprep.subr.bf16.mxu1 %v5239_v11  ;;  %v5230_v26 = vcombine.low %v153_v15, %v157_v16  ;;  %v6151_v44 = vld [vmem:[#allocation2 + $0x1d8] sm:$0xff]  ;;  %v5240_v46 = vcombine.low %v6147_v42, %v6149_v43  ;;  %v5241_v15 = vcombine.high %v6147_v42, %v6149_v43 }
  0x39   :  { %529 = vmatprep.subr.bf16.mxu0 %v5237_v6  ;;  %v5229_v17 = vcombine.high %v152_v9, %v156_v14  ;;  %v144_v19 = vld [vmem:[#allocation2 + $0x140] sm:$0xff]  ;;  %v5228_v23 = vcombine.low %v152_v9, %v156_v14  ;;  %v149_v24 = vld [vmem:[#allocation2 + $0x168] sm:$0xff]  ;;  %571 = vmatpush1.bf16.msra.mxu1 %v5238_v13  ;;  %v6155_v47 = vld [vmem:[#allocation2 + $0x1f8] sm:$0xff] }
  0x3a   :  { %v148_v20 = vld [vmem:[#allocation2 + $0x160] sm:$0xff]  ;;  %530 = vmatpush1.bf16.msra.mxu0 %v5236_v12  ;;  %v5223_v28 = vcombine.high %v145_v21, %v149_v24  ;;  %572 = vmatprep.subr.bf16.mxu1 %v5231_v18  ;;  %v137_v32 = vld [vmem:[#allocation2 + $0x108] sm:$0xff]  ;;  %v5222_v35 = vcombine.low %v145_v21, %v149_v24  ;;  %v5242_v51 = vcombine.low %v6151_v44, %v6155_v47  ;;  %v155_v24 = vld [vmem:[#allocation2 + $0x198] sm:$0xff] }
  0x3b   :  { %5931 = vset.pattern.permute.xlu0 %v6096_v25  ;;  %v5221_v27 = vcombine.high %v144_v19, %v148_v20  ;;  %531 = vmatprep.subr.bf16.mxu0 %v5229_v17  ;;  %v136_v29 = vld [vmem:[#allocation2 + $0x100] sm:$0xff]  ;;  %v141_v33 = vld [vmem:[#allocation2 + $0x128] sm:$0xff]  ;;  %v5220_v34 = vcombine.low %v144_v19, %v148_v20  ;;  %v5243_v16 = vcombine.high %v6151_v44, %v6155_v47  ;;  %v75_v17 = vlaneseq  ;;  %v159_v25 = vld [vmem:[#allocation2 + $0x1b8] sm:$0xff] }
  0x3c   :  { %83 = vperm.xlu0 %5931, %v81_v10   ;;  %v140_v30 = vld [vmem:[#allocation2 + $0x120] sm:$0xff]  ;;  %5933 = vset.pattern.permute.xlu1 %v6097_v31  ;;  %v5215_v38 = vcombine.high %v137_v32, %v141_v33  ;;  %v129_v40 = vld [vmem:[#allocation2 + $0xc8] sm:$0xff]  ;;  %v5214_v48 = vcombine.low %v137_v32, %v141_v33  ;;  %v147_v32 = vld [vmem:[#allocation2 + $0x158] sm:$0xff] }
  0x3d   :  { %95 = vperm.xlu1 %5933, %v93_v22   ;;  %573 = vmatpush1.bf16.msra.mxu1 %v5230_v26  ;;  %v5213_v36 = vcombine.high %v136_v29, %v140_v30  ;;  %v128_v37 = vld [vmem:[#allocation2 + $0xc0] sm:$0xff]  ;;  %v133_v41 = vld [vmem:[#allocation2 + $0xe8] sm:$0xff]  ;;  %v5212_v45 = vcombine.low %v136_v29, %v140_v30  ;;  %v76_v19 = vand.u32 127, %v75_v17  ;;  %v154_v22 = vld [vmem:[#allocation2 + $0x190] sm:$0xff] }
  0x3e   :  { %532 = vmatpush1.bf16.msra.mxu0 %v5228_v23  ;;  %574 = vmatprep.subr.bf16.mxu1 %v5223_v28  ;;  %v132_v39 = vld [vmem:[#allocation2 + $0xe0] sm:$0xff]  ;;  %v5207_v52 = vcombine.high %v129_v40, %v133_v41  ;;  %v121_v54 = vld [vmem:[#allocation2 + $0x88] sm:$0xff]  ;;  %v5206_v59 = vcombine.low %v129_v40, %v133_v41  ;;  %v158_v23 = vld [vmem:[#allocation2 + $0x1b0] sm:$0xff]  ;;  %v5235_v28 = vcombine.high %v155_v24, %v159_v25 }
  0x3f   :  { %533 = vmatprep.subr.bf16.mxu0 %v5221_v27  ;;  %v5205_v49 = vcombine.high %v128_v37, %v132_v39  ;;  %v120_v50 = vld [vmem:[#allocation2 + $0x80] sm:$0xff]  ;;  %v125_v55 = vld [vmem:[#allocation2 + $0xa8] sm:$0xff]  ;;  %v5204_v56 = vcombine.low %v128_v37, %v132_v39  ;;  %v5233_v27 = vcombine.high %v154_v22, %v158_v23  ;;  %v146_v29 = vld [vmem:[#allocation2 + $0x150] sm:$0xff] }
  0x40   :  { %5934 = vset.pattern.permute.xlu0 %v6097_v31  ;;  %v124_v53 = vld [vmem:[#allocation2 + $0xa0] sm:$0xff]  ;;  %v113_v61 = vld [vmem:[#allocation2 + $0x48] sm:$0xff]  ;;  %v5199_v63 = vcombine.high %v121_v54, %v125_v55  ;;  %v5198_v4 = vcombine.low %v121_v54, %v125_v55  ;;  %v150_v30 = vld [vmem:[#allocation2 + $0x170] sm:$0xff] }
  0x41   :  { %575 = vmatpush1.bf16.msra.mxu1 %v5222_v35  ;;  %v112_v57 = vld [vmem:[#allocation2 + $0x40] sm:$0xff]  ;;  %v5197_v60 = vcombine.high %v120_v50, %v124_v53  ;;  %v117_v62 = vld [vmem:[#allocation2 + $0x68] sm:$0xff]  ;;  %v5196_v1 = vcombine.low %v120_v50, %v124_v53  ;;  %v151_v33 = vld [vmem:[#allocation2 + $0x178] sm:$0xff]  ;;  %v5232_v35 = vcombine.low %v154_v22, %v158_v23  ;;  %v5225_v37 = vcombine.high %v146_v29, %v150_v30 }
  0x42   :  { %534 = vmatpush1.bf16.msra.mxu0 %v5220_v34  ;;  %576 = vmatprep.subr.bf16.mxu1 %v5215_v38  ;;  %v116_v58 = vld [vmem:[#allocation2 + $0x60] sm:$0xff]  ;;  %v105_v6 = vld [vmem:[#allocation2 + $0x8] sm:$0xff]  ;;  %v5191_v8 = vcombine.high %v113_v61, %v117_v62  ;;  %v5190_v10 = vcombine.low %v113_v61, %v117_v62  ;;  %v6098_v34 = vmov 1.0|1.0   ;;  %v5227_v38 = vcombine.high %v147_v32, %v151_v33  ;;  %v138_v39 = vld [vmem:[#allocation2 + $0x110] sm:$0xff] }
  0x43   :  { %535 = vmatprep.subr.bf16.mxu0 %v5213_v36  ;;  %v104_v2 = vld [vmem:[#allocation2] sm:$0xff]  ;;  %v5189_v5 = vcombine.high %v112_v57, %v116_v58  ;;  %v109_v7 = vld [vmem:[#allocation2 + $0x28] sm:$0xff]  ;;  %v5188_v9 = vcombine.low %v112_v57, %v116_v58  ;;  %v5234_v36 = vcombine.low %v155_v24, %v159_v25  ;;  %v142_v40 = vld [vmem:[#allocation2 + $0x130] sm:$0xff]  ;;  %v5224_v42 = vcombine.low %v146_v29, %v150_v30 }
  0x44   :  { %v108_v3 = vld [vmem:[#allocation2 + $0x20] sm:$0xff]  ;;  %v5183_v12 = vcombine.high %v105_v6, %v109_v7  ;;  %v5182_v14 = vcombine.low %v105_v6, %v109_v7  ;;  %v139_v41 = vld [vmem:[#allocation2 + $0x118] sm:$0xff]  ;;  %v5226_v43 = vcombine.low %v147_v32, %v151_v33  ;;  %v5217_v44 = vcombine.high %v138_v39, %v142_v40  ;;  %v130_v47 = vld [vmem:[#allocation2 + $0xd0] sm:$0xff] }
  0x45   :  { %577 = vmatpush1.bf16.msra.mxu1 %v5214_v48  ;;  %v5181_v11 = vcombine.high %v104_v2, %v108_v3  ;;  %v5180_v13 = vcombine.low %v104_v2, %v108_v3  ;;  %v134_v48 = vld [vmem:[#allocation2 + $0xf0] sm:$0xff]  ;;  %v135_v50 = vld [vmem:[#allocation2 + $0xf8] sm:$0xff]  ;;  %v757_v24 = vld [vmem:[#allocation4 + $0x180] sm:$0xff] }
  0x46   :  { %536 = vmatpush1.bf16.msra.mxu0 %v5212_v45  ;;  %578 = vmatprep.subr.bf16.mxu1 %v5207_v52  ;;  %v143_v45 = vld [vmem:[#allocation2 + $0x138] sm:$0xff]  ;;  %v5209_v53 = vcombine.high %v130_v47, %v134_v48  ;;  %v122_v54 = vld [vmem:[#allocation2 + $0x90] sm:$0xff]  ;;  %v5208_v58 = vcombine.low %v130_v47, %v134_v48  ;;  %v761_v25 = vld [vmem:[#allocation4 + $0x1a0] sm:$0xff] }
  0x47   :  { %537 = vmatprep.subr.bf16.mxu0 %v5205_v49  ;;  %v131_v49 = vld [vmem:[#allocation2 + $0xd8] sm:$0xff]  ;;  %v5218_v52 = vcombine.low %v139_v41, %v143_v45  ;;  %v126_v55 = vld [vmem:[#allocation2 + $0xb0] sm:$0xff]  ;;  %v5301_v30 = vcombine.high %v757_v24, %v761_v25  ;;  %v749_v33 = vld [vmem:[#allocation4 + $0x140] sm:$0xff] }
  0x48   :  { %v127_v57 = vld [vmem:[#allocation2 + $0xb8] sm:$0xff]  ;;  %v114_v62 = vld [vmem:[#allocation2 + $0x50] sm:$0xff]  ;;  %v5200_v3 = vcombine.low %v122_v54, %v126_v55  ;;  %v733_v48 = vld [vmem:[#allocation4 + $0xc0] sm:$0xff] }
  0x49   :  { %579 = vmatpush1.bf16.msra.mxu1 %v5206_v59  ;;  %v5210_v59 = vcombine.low %v131_v49, %v135_v50  ;;  %v119_v2 = vld [vmem:[#allocation2 + $0x78] sm:$0xff]  ;;  %v106_v7 = vld [vmem:[#allocation2 + $0x10] sm:$0xff] }
  0x4a   :  { %538 = vmatpush1.bf16.msra.mxu0 %v5204_v56  ;;  %580 = vmatprep.subr.bf16.mxu1 %v5199_v63  ;;  %v123_v56 = vld [vmem:[#allocation2 + $0x98] sm:$0xff]  ;;  %v118_v63 = vld [vmem:[#allocation2 + $0x70] sm:$0xff] }
  0x4b   :  { %539 = vmatprep.subr.bf16.mxu0 %v5197_v60  ;;  %v5201_v60 = vcombine.high %v122_v54, %v126_v55  ;;  %v5203_v61 = vcombine.high %v123_v56, %v127_v57  ;;  %v725_v55 = vld [vmem:[#allocation4 + $0x80] sm:$0xff] }
  0x4d   :  { %581 = vmatpush1.bf16.msra.mxu1 %v5198_v4  ;;  %v5202_v4 = vcombine.low %v123_v56, %v127_v57  ;;  %v729_v56 = vld [vmem:[#allocation4 + $0xa0] sm:$0xff] }
  0x4e   :  { %540 = vmatpush1.bf16.msra.mxu0 %v5196_v1  ;;  %582 = vmatprep.subr.bf16.mxu1 %v5191_v8  ;;  %v115_v1 = vld [vmem:[#allocation2 + $0x58] sm:$0xff]  ;;  %v110_v8 = vld [vmem:[#allocation2 + $0x30] sm:$0xff]  ;;  %v853_v57 = vld [vmem:[#allocation4 + $0x480] sm:$0xff] }
  0x4f   :  { %541 = vmatprep.subr.bf16.mxu0 %v5189_v5  ;;  %v5193_v5 = vcombine.high %v114_v62, %v118_v63  ;;  %v5195_v6 = vcombine.high %v115_v1, %v119_v2 }
  0x51   :  { %583 = vmatpush1.bf16.msra.mxu1 %v5190_v10  ;;  %v111_v10 = vld [vmem:[#allocation2 + $0x38] sm:$0xff] }
  0x52   :  { %542 = vmatpush1.bf16.msra.mxu0 %v5188_v9  ;;  %584 = vmatprep.subr.bf16.mxu1 %v5183_v12  ;;  %v107_v9 = vld [vmem:[#allocation2 + $0x18] sm:$0xff]  ;;  %v5194_v12 = vcombine.low %v115_v1, %v119_v2  ;;  %v721_v1 = vld [vmem:[#allocation4 + $0x60] sm:$0xff] }
  0x53   :  { %543 = vmatprep.subr.bf16.mxu0 %v5181_v11  ;;  %v5192_v11 = vcombine.low %v114_v62, %v118_v63  ;;  %v717_v63 = vld [vmem:[#allocation4 + $0x40] sm:$0xff] }
  0x54   :  { %v845_v2 = vld [vmem:[#allocation4 + $0x440] sm:$0xff] }
  0x55   :  { %585 = vmatpush1.bf16.msra.mxu1 %v5182_v14  ;;  %v5187_v14 = vcombine.high %v107_v9, %v111_v10 }
  0x56   :  { %544 = vmatpush1.bf16.msra.mxu0 %v5180_v13  ;;  %652 = vmatprep.subr.bf16.mxu1 %v5243_v16  ;;  %v5185_v13 = vcombine.high %v106_v7, %v110_v8  ;;  %v769_v16 = vld [vmem:[#allocation4 + $0x1e0] sm:$0xff] }
  0x57   :  { %611 = vmatprep.subr.bf16.mxu0 %v5241_v15  ;;  %v765_v15 = vld [vmem:[#allocation4 + $0x1c0] sm:$0xff] }
  0x58   :  { %v5309_v22 = vcombine.high %v765_v15, %v769_v16 }
  0xb2   :  { %v79_v18 = vpop.permute.xlu0 %78  ;;  %v90_v20 = vpop.permute.xlu1 %89 }
  0xb3   :  { %vm80_vm0 = vcmp.eq.s32.totalorder %v76_v19, %v79_v18  ;;  %vm91_vm2 = vcmp.eq.s32.totalorder %v76_v19, %v90_v20  ;;  %v893_v18 = vld [vmem:[#allocation4 + $0x5c0] sm:$0xff]  ;;  %v5184_v20 = vcombine.low %v106_v7, %v110_v8 }
  0xb4   :  { %v709_v8 = vld [vmem:[#allocation4] sm:$0xff] }
  0xb7   :  { %v84_v21 = vpop.permute.xlu0 %83 }
  0xb8   :  { %vm85_vm1 = vcmp.eq.s32.totalorder %v76_v19, %v84_v21  ;;  %v96_v26 = vpop.permute.xlu1 %95  ;;  %v5186_v21 = vcombine.low %v107_v9, %v111_v10  ;;  %v713_v9 = vld [vmem:[#allocation4 + $0x20] sm:$0xff] }
  0xb9   :  { %vm86_vm3 = vmor %vm80_vm0, %vm85_vm1  ;;  %vm97_vm5 = vcmp.eq.s32.totalorder %v76_v19, %v96_v26  ;;  %v897_v19 = vld [vmem:[#allocation4 + $0x5e0] sm:$0xff] }
  0xba   :  { %vm92_vm4 = vmor %vm86_vm3, %vm91_vm2  ;;  %v5437_v23 = vcombine.high %v893_v18, %v897_v19  ;;  %v885_v26 = vld [vmem:[#allocation4 + $0x580] sm:$0xff]  ;;  %v5436_v29 = vcombine.low %v893_v18, %v897_v19 }
  0xbb   :  { %vm98_vm6 = vmor %vm92_vm4, %vm97_vm5  ;;  %v837_v10 = vld [vmem:[#allocation4 + $0x400] sm:$0xff] }
  0xbc   :  { %vm6164_vm7 = vmpackc.low %vm98_vm6, %vm98_vm6  ;;  %v833_v18 = vld [vmem:[#allocation4 + $0x3e0] sm:$0xff] }
  0xbd   :  { %5245 = vmatmul.mubr.msk.bf16.vlgmr.msra.gmra.mxu0 %vm6164_vm7, %v6098_v34  ;;  %5247 = vmatmul.mubr.msk.bf16.vlgmr.msra.gmra.mxu1 %vm6164_vm7, %v6098_v34  ;;  %v957_v19 = vld [vmem:[#allocation4 + $0x7c0] sm:$0xff] }
  0xbe   :  { %612 = vmatpush1.bf16.msra.mxu0 %v5240_v46  ;;  %653 = vmatpush1.bf16.msra.mxu1 %v5242_v51  ;;  %v5219_v46 = vcombine.high %v139_v41, %v143_v45  ;;  %v5216_v51 = vcombine.low %v138_v39, %v142_v40  ;;  %v741_v45 = vld [vmem:[#allocation4 + $0x100] sm:$0xff] }
  0xbf   :  { %613 = vmatprep.subr.bf16.mxu0 %v5233_v27  ;;  %654 = vmatprep.subr.bf16.mxu1 %v5235_v28  ;;  %v889_v27 = vld [vmem:[#allocation4 + $0x5a0] sm:$0xff]  ;;  %v5308_v28 = vcombine.low %v765_v15, %v769_v16 }
  0xc0   :  { %643 = vmatprep.mubr.bf16.mxu0 %v6094_v0  ;;  %684 = vmatprep.mubr.bf16.mxu1 %v6094_v0  ;;  %v5211_v0 = vcombine.high %v131_v49, %v135_v50  ;;  %v5429_v32 = vcombine.high %v885_v26, %v889_v27  ;;  %v5428_v39 = vcombine.low %v885_v26, %v889_v27  ;;  %v737_v49 = vld [vmem:[#allocation4 + $0xe0] sm:$0xff] }
  0xc1   :  { %v861_v50 = vld [vmem:[#allocation4 + $0x4c0] sm:$0xff] }
  0xc2   :  { %614 = vmatpush1.bf16.msra.mxu0 %v5232_v35  ;;  %655 = vmatpush1.bf16.msra.mxu1 %v5234_v36  ;;  %v753_v35 = vld [vmem:[#allocation4 + $0x160] sm:$0xff] }
  0xc3   :  { %615 = vmatprep.subr.bf16.mxu0 %v5225_v37  ;;  %656 = vmatprep.subr.bf16.mxu1 %v5227_v38  ;;  %v877_v36 = vld [vmem:[#allocation4 + $0x540] sm:$0xff]  ;;  %v5300_v38 = vcombine.low %v757_v24, %v761_v25  ;;  %v5293_v40 = vcombine.high %v749_v33, %v753_v35 }
  0xc4   :  { %v881_v37 = vld [vmem:[#allocation4 + $0x560] sm:$0xff] }
  0xc5   :  { %v5421_v41 = vcombine.high %v877_v36, %v881_v37  ;;  %v5420_v47 = vcombine.low %v877_v36, %v881_v37  ;;  %v829_v16 = vld [vmem:[#allocation4 + $0x3c0] sm:$0xff] }
  0xc6   :  { %616 = vmatpush1.bf16.msra.mxu0 %v5224_v42  ;;  %657 = vmatpush1.bf16.msra.mxu1 %v5226_v43  ;;  %v745_v42 = vld [vmem:[#allocation4 + $0x120] sm:$0xff] }
  0xc7   :  { %617 = vmatprep.subr.bf16.mxu0 %v5217_v44  ;;  %658 = vmatprep.subr.bf16.mxu1 %v5219_v46  ;;  %v869_v43 = vld [vmem:[#allocation4 + $0x500] sm:$0xff]  ;;  %v5292_v46 = vcombine.low %v749_v33, %v753_v35  ;;  %v5285_v31 = vcombine.high %v741_v45, %v745_v42 }
  0xc8   :  { %v873_v44 = vld [vmem:[#allocation4 + $0x520] sm:$0xff] }
  0xc9   :  { %v821_v25 = vld [vmem:[#allocation4 + $0x380] sm:$0xff] }
  0xca   :  { %618 = vmatpush1.bf16.msra.mxu0 %v5216_v51  ;;  %659 = vmatpush1.bf16.msra.mxu1 %v5218_v52  ;;  %v865_v51 = vld [vmem:[#allocation4 + $0x4e0] sm:$0xff]  ;;  %v5284_v52 = vcombine.low %v741_v45, %v745_v42 }
  0xcb   :  { %619 = vmatprep.subr.bf16.mxu0 %v5209_v53  ;;  %660 = vmatprep.subr.bf16.mxu1 %v5211_v0  ;;  %v5412_v53 = vcombine.low %v869_v43, %v873_v44  ;;  %v5277_v0 = vcombine.high %v733_v48, %v737_v49  ;;  %v5405_v54 = vcombine.high %v861_v50, %v865_v51  ;;  %v825_v26 = vld [vmem:[#allocation4 + $0x3a0] sm:$0xff] }
  0xcc   :  { %v949_v27 = vld [vmem:[#allocation4 + $0x780] sm:$0xff] }
  0xcd   :  { %v813_v35 = vld [vmem:[#allocation4 + $0x340] sm:$0xff] }
  0xce   :  { %620 = vmatpush1.bf16.msra.mxu0 %v5208_v58  ;;  %661 = vmatpush1.bf16.msra.mxu1 %v5210_v59  ;;  %v857_v58 = vld [vmem:[#allocation4 + $0x4a0] sm:$0xff]  ;;  %v5276_v59 = vcombine.low %v733_v48, %v737_v49 }
  0xcf   :  { %621 = vmatprep.subr.bf16.mxu0 %v5201_v60  ;;  %662 = vmatprep.subr.bf16.mxu1 %v5203_v61  ;;  %v5404_v60 = vcombine.low %v861_v50, %v865_v51  ;;  %v5269_v61 = vcombine.high %v725_v55, %v729_v56  ;;  %v5397_v62 = vcombine.high %v853_v57, %v857_v58  ;;  %v817_v36 = vld [vmem:[#allocation4 + $0x360] sm:$0xff] }
  0xd0   :  { %v941_v37 = vld [vmem:[#allocation4 + $0x740] sm:$0xff] }
  0xd1   :  { %v805_v42 = vld [vmem:[#allocation4 + $0x300] sm:$0xff] }
  0xd2   :  { %622 = vmatpush1.bf16.msra.mxu0 %v5200_v3  ;;  %663 = vmatpush1.bf16.msra.mxu1 %v5202_v4  ;;  %v849_v3 = vld [vmem:[#allocation4 + $0x460] sm:$0xff]  ;;  %v5268_v4 = vcombine.low %v725_v55, %v729_v56 }
  0xd3   :  { %623 = vmatprep.subr.bf16.mxu0 %v5193_v5  ;;  %664 = vmatprep.subr.bf16.mxu1 %v5195_v6  ;;  %v5396_v5 = vcombine.low %v853_v57, %v857_v58  ;;  %v5261_v6 = vcombine.high %v717_v63, %v721_v1  ;;  %v5389_v7 = vcombine.high %v845_v2, %v849_v3  ;;  %v801_v50 = vld [vmem:[#allocation4 + $0x2e0] sm:$0xff] }
  0xd4   :  { %v925_v51 = vld [vmem:[#allocation4 + $0x6c0] sm:$0xff] }
  0xd5   :  { %v6194_v56 = vld [vmem:[#allocation4 + $0xde0] sm:$0xff] }
  0xd6   :  { %624 = vmatpush1.bf16.msra.mxu0 %v5192_v11  ;;  %665 = vmatpush1.bf16.msra.mxu1 %v5194_v12  ;;  %v841_v11 = vld [vmem:[#allocation4 + $0x420] sm:$0xff]  ;;  %v5260_v12 = vcombine.low %v717_v63, %v721_v1 }
  0xd7   :  { %625 = vmatprep.subr.bf16.mxu0 %v5185_v13  ;;  %666 = vmatprep.subr.bf16.mxu1 %v5187_v14  ;;  %v5388_v13 = vcombine.low %v845_v2, %v849_v3  ;;  %v5253_v14 = vcombine.high %v709_v8, %v713_v9  ;;  %v5381_v15 = vcombine.high %v837_v10, %v841_v11  ;;  %v793_v63 = vld [vmem:[#allocation4 + $0x2a0] sm:$0xff] }
  0xd8   :  { %v917_v1 = vld [vmem:[#allocation4 + $0x680] sm:$0xff] }
  0xd9   :  { %v921_v2 = vld [vmem:[#allocation4 + $0x6a0] sm:$0xff] }
  0xda   :  { %626 = vmatpush1.bf16.msra.mxu0 %v5184_v20  ;;  %667 = vmatpush1.bf16.msra.mxu1 %v5186_v21  ;;  %v961_v20 = vld [vmem:[#allocation4 + $0x7e0] sm:$0xff]  ;;  %v5252_v21 = vcombine.low %v709_v8, %v713_v9 }
  0xdb   :  { %3822 = vmatprep.subr.bf16.mxu0 %v5309_v22  ;;  %3863 = vmatprep.subr.bf16.mxu1 %v5437_v23  ;;  %v5380_v22 = vcombine.low %v837_v10, %v841_v11  ;;  %v5373_v23 = vcombine.high %v829_v16, %v833_v18  ;;  %v5501_v24 = vcombine.high %v957_v19, %v961_v20  ;;  %v785_v8 = vld [vmem:[#allocation4 + $0x260] sm:$0xff] }
  0xdc   :  { %v909_v9 = vld [vmem:[#allocation4 + $0x640] sm:$0xff] }
  0xdd   :  { %5249 = vmatmul.mubr.msk.bf16.vlgmr.msra.gmra.mxu0 %vm6164_vm7, %v6098_v34  ;;  %5251 = vmatmul.mubr.msk.bf16.vlgmr.msra.gmra.mxu1 %vm6164_vm7, %v6098_v34  ;;  %v5413_v34 = vcombine.high %v869_v43, %v873_v44  ;;  %v809_v43 = vld [vmem:[#allocation4 + $0x320] sm:$0xff] }
  0xde   :  { %3823 = vmatpush1.bf16.msra.mxu0 %v5308_v28  ;;  %3864 = vmatpush1.bf16.msra.mxu1 %v5436_v29  ;;  %v953_v28 = vld [vmem:[#allocation4 + $0x7a0] sm:$0xff]  ;;  %v5372_v29 = vcombine.low %v829_v16, %v833_v18  ;;  %v5349_v48 = vcombine.high %v805_v42, %v809_v43  ;;  %v5348_v55 = vcombine.low %v805_v42, %v809_v43 }
  0xdf   :  { %3824 = vmatprep.subr.bf16.mxu0 %v5301_v30  ;;  %3865 = vmatprep.subr.bf16.mxu1 %v5429_v32  ;;  %v5500_v30 = vcombine.low %v957_v19, %v961_v20  ;;  %v5365_v32 = vcombine.high %v821_v25, %v825_v26  ;;  %v5493_v33 = vcombine.high %v949_v27, %v953_v28  ;;  %v933_v44 = vld [vmem:[#allocation4 + $0x700] sm:$0xff] }
  0xe0   :  { %v913_v10 = vld [vmem:[#allocation4 + $0x660] sm:$0xff] }
  0xe1   :  { %v777_v16 = vld [vmem:[#allocation4 + $0x220] sm:$0xff] }
  0xe2   :  { %3825 = vmatpush1.bf16.msra.mxu0 %v5300_v38  ;;  %3866 = vmatpush1.bf16.msra.mxu1 %v5428_v39  ;;  %v945_v38 = vld [vmem:[#allocation4 + $0x760] sm:$0xff]  ;;  %v5364_v39 = vcombine.low %v821_v25, %v825_v26 }
  0xe3   :  { %3826 = vmatprep.subr.bf16.mxu0 %v5293_v40  ;;  %3867 = vmatprep.subr.bf16.mxu1 %v5421_v41  ;;  %v5492_v40 = vcombine.low %v949_v27, %v953_v28  ;;  %v5357_v41 = vcombine.high %v813_v35, %v817_v36  ;;  %v5485_v45 = vcombine.high %v941_v37, %v945_v38  ;;  %v901_v18 = vld [vmem:[#allocation4 + $0x600] sm:$0xff]  ;;  %v6205_v28 = vshrl.u32 %v75_v17, 7 }
  0xe4   :  { %v905_v19 = vld [vmem:[#allocation4 + $0x620] sm:$0xff] }
  0xe5   :  { %v5444_v25 = vcombine.low %v901_v18, %v905_v19 }
  0xe6   :  { %3827 = vmatpush1.bf16.msra.mxu0 %v5292_v46  ;;  %3868 = vmatpush1.bf16.msra.mxu1 %v5420_v47  ;;  %v937_v46 = vld [vmem:[#allocation4 + $0x720] sm:$0xff]  ;;  %v5356_v47 = vcombine.low %v813_v35, %v817_v36  ;;  %v183_v35 = vsub.s32 3, %v6205_v28 }
  0xe7   :  { %3828 = vmatprep.subr.bf16.mxu0 %v5285_v31  ;;  %3869 = vmatprep.subr.bf16.mxu1 %v5413_v34  ;;  %v5484_v31 = vcombine.low %v941_v37, %v945_v38  ;;  %v797_v34 = vld [vmem:[#allocation4 + $0x2c0] sm:$0xff]  ;;  %v5477_v49 = vcombine.high %v933_v44, %v937_v46  ;;  %v5476_v57 = vcombine.low %v933_v44, %v937_v46 }
  0xe8   :  { %v5340_v3 = vcombine.low %v797_v34, %v801_v50 }
  0xea   :  { %3829 = vmatpush1.bf16.msra.mxu0 %v5284_v52  ;;  %3870 = vmatpush1.bf16.msra.mxu1 %v5412_v53  ;;  %v929_v52 = vld [vmem:[#allocation4 + $0x6e0] sm:$0xff] }
  0xeb   :  { %3830 = vmatprep.subr.bf16.mxu0 %v5277_v0  ;;  %3871 = vmatprep.subr.bf16.mxu1 %v5405_v54  ;;  %v6188_v53 = vld [vmem:[#allocation4 + $0x9c0] sm:$0xff] }
  0xec   :  { %v6190_v0 = vld [vmem:[#allocation4 + $0x9e0] sm:$0xff] }
  0xed   :  { %v6192_v54 = vld [vmem:[#allocation4 + $0xdc0] sm:$0xff]  ;;  %v5564_v58 = vcombine.low %v6188_v53, %v6190_v0  ;;  %v5565_v26 = vcombine.high %v6188_v53, %v6190_v0 }
  0xee   :  { %3831 = vmatpush1.bf16.msra.mxu0 %v5276_v59  ;;  %3872 = vmatpush1.bf16.msra.mxu1 %v5404_v60  ;;  %v5692_v59 = vcombine.low %v6192_v54, %v6194_v56  ;;  %v5341_v60 = vcombine.high %v797_v34, %v801_v50  ;;  %v5693_v27 = vcombine.high %v6192_v54, %v6194_v56  ;;  %v989_v54 = vld [vmem:[#allocation4 + $0x8c0] sm:$0xff] }
  0xef   :  { %3832 = vmatprep.subr.bf16.mxu0 %v5269_v61  ;;  %3873 = vmatprep.subr.bf16.mxu1 %v5397_v62  ;;  %v5469_v61 = vcombine.high %v925_v51, %v929_v52  ;;  %v789_v62 = vld [vmem:[#allocation4 + $0x280] sm:$0xff] }
  0xf0   :  { %v5332_v11 = vcombine.low %v789_v62, %v793_v63  ;;  %v993_v56 = vld [vmem:[#allocation4 + $0x8e0] sm:$0xff] }
  0xf2   :  { %3833 = vmatpush1.bf16.msra.mxu0 %v5268_v4  ;;  %3874 = vmatpush1.bf16.msra.mxu1 %v5396_v5  ;;  %v5468_v4 = vcombine.low %v925_v51, %v929_v52  ;;  %v5333_v5 = vcombine.high %v789_v62, %v793_v63  ;;  %v1017_v52 = vld [vmem:[#allocation4 + $0x9a0] sm:$0xff] }
  0xf3   :  { %3834 = vmatprep.subr.bf16.mxu0 %v5261_v6  ;;  %3875 = vmatprep.subr.bf16.mxu1 %v5389_v7  ;;  %v5461_v6 = vcombine.high %v917_v1, %v921_v2  ;;  %v781_v7 = vld [vmem:[#allocation4 + $0x240] sm:$0xff] }
  0xf4   :  { %v5324_v20 = vcombine.low %v781_v7, %v785_v8 }
  0xf6   :  { %3835 = vmatpush1.bf16.msra.mxu0 %v5260_v12  ;;  %3876 = vmatpush1.bf16.msra.mxu1 %v5388_v13  ;;  %v5460_v12 = vcombine.low %v917_v1, %v921_v2  ;;  %v5325_v13 = vcombine.high %v781_v7, %v785_v8  ;;  %v1133_v7 = vld [vmem:[#allocation4 + $0xd40] sm:$0xff] }
  0xf7   :  { %3836 = vmatprep.subr.bf16.mxu0 %v5253_v14  ;;  %3877 = vmatprep.subr.bf16.mxu1 %v5381_v15  ;;  %v5453_v14 = vcombine.high %v909_v9, %v913_v10  ;;  %v773_v15 = vld [vmem:[#allocation4 + $0x200] sm:$0xff] }
  0xf8   :  { %v1137_v8 = vld [vmem:[#allocation4 + $0xd60] sm:$0xff] }
  0xfa   :  { %3837 = vmatpush1.bf16.msra.mxu0 %v5252_v21  ;;  %3878 = vmatpush1.bf16.msra.mxu1 %v5380_v22  ;;  %v5452_v21 = vcombine.low %v909_v9, %v913_v10  ;;  %v5317_v22 = vcombine.high %v773_v15, %v777_v16 }
  0xfb   :  { %3838 = vmatprep.subr.bf16.mxu0 %v5373_v23  ;;  %3879 = vmatprep.subr.bf16.mxu1 %v5501_v24  ;;  %v5445_v23 = vcombine.high %v901_v18, %v905_v19  ;;  %v5316_v24 = vcombine.low %v773_v15, %v777_v16  ;;  %v1125_v15 = vld [vmem:[#allocation4 + $0xd00] sm:$0xff]  ;;  %v5676_v19 = vcombine.low %v1133_v7, %v1137_v8 }
  0xfc   :  { %v1129_v16 = vld [vmem:[#allocation4 + $0xd20] sm:$0xff] }
  0xfd   :  { %v5669_v0 = vcombine.high %v1125_v15, %v1129_v16 }
  0xfe   :  { %3839 = vmatpush2.bf16.msra.mxu0 %v5372_v29  ;;  %3880 = vmatpush2.bf16.msra.mxu1 %v5500_v30  ;;  %v171_v29 = vsub.s32 0, %v6205_v28  ;;  %v179_v30 = vsub.s32 2, %v6205_v28 }
  0xff   :  { %3840 = vmatprep.subr.bf16.mxu0 %v5365_v32  ;;  %3881 = vmatprep.subr.bf16.mxu1 %v5493_v33  ;;  %v6209_v32 = vld [vmem:[#allocation7] sm:$0xff]  ;;  %v175_v33 = vsub.s32 1, %v6205_v28 }
 0x100   :  { %v172_v36 = vrot.slane %v6209_v32, %v171_v29  ;;  %v180_v37 = vrot.slane %v6209_v32, %v179_v30  ;;  %v184_v38 = vrot.slane %v6209_v32, %v183_v35 }
 0x101   :  { %v176_v17 = vrot.slane %v6209_v32, %v175_v33 }
 0x102   :  { %3841 = vmatpush2.bf16.msra.mxu0 %v5364_v39  ;;  %3882 = vmatpush2.bf16.msra.mxu1 %v5492_v40 }
 0x103   :  { %3842 = vmatprep.subr.bf16.mxu0 %v5357_v41  ;;  %3883 = vmatprep.subr.bf16.mxu1 %v5485_v45 }
 0x106   :  { %3843 = vmatpush2.bf16.msra.mxu0 %v5356_v47  ;;  %3884 = vmatpush2.bf16.msra.mxu1 %v5484_v31 }
 0x107   :  { %3844 = vmatprep.subr.bf16.mxu0 %v5349_v48  ;;  %3885 = vmatprep.subr.bf16.mxu1 %v5477_v49  ;;  %v1013_v49 = vld [vmem:[#allocation4 + $0x980] sm:$0xff] }
 0x108   :  { %v5556_v9 = vcombine.low %v1013_v49, %v1017_v52 }
 0x10a   :  { %3845 = vmatpush2.bf16.msra.mxu0 %v5348_v55  ;;  %3886 = vmatpush2.bf16.msra.mxu1 %v5476_v57  ;;  %v1141_v55 = vld [vmem:[#allocation4 + $0xd80] sm:$0xff] }
 0x10b   :  { %3846 = vmatprep.subr.bf16.mxu0 %v5341_v60  ;;  %3887 = vmatprep.subr.bf16.mxu1 %v5469_v61  ;;  %v1145_v57 = vld [vmem:[#allocation4 + $0xda0] sm:$0xff] }
 0x10c   :  { %v5684_v10 = vcombine.low %v1141_v55, %v1145_v57 }
 0x10e   :  { %3847 = vmatpush2.bf16.msra.mxu0 %v5340_v3  ;;  %3888 = vmatpush2.bf16.msra.mxu1 %v5468_v4  ;;  %v5557_v3 = vcombine.high %v1013_v49, %v1017_v52  ;;  %v5685_v4 = vcombine.high %v1141_v55, %v1145_v57  ;;  %v1093_v49 = vld [vmem:[#allocation4 + $0xc00] sm:$0xff] }
 0x10f   :  { %3848 = vmatprep.subr.bf16.mxu0 %v5333_v5  ;;  %3889 = vmatprep.subr.bf16.mxu1 %v5461_v6  ;;  %v1005_v5 = vld [vmem:[#allocation4 + $0x940] sm:$0xff] }
 0x110   :  { %v1009_v6 = vld [vmem:[#allocation4 + $0x960] sm:$0xff] }
 0x111   :  { %v5548_v18 = vcombine.low %v1005_v5, %v1009_v6 }
 0x112   :  { %3849 = vmatpush2.bf16.msra.mxu0 %v5332_v11  ;;  %3890 = vmatpush2.bf16.msra.mxu1 %v5460_v12  ;;  %v5549_v11 = vcombine.high %v1005_v5, %v1009_v6  ;;  %v5677_v12 = vcombine.high %v1133_v7, %v1137_v8  ;;  %v1085_v5 = vld [vmem:[#allocation4 + $0xbc0] sm:$0xff] }
 0x113   :  { %3850 = vmatprep.subr.bf16.mxu0 %v5325_v13  ;;  %3891 = vmatprep.subr.bf16.mxu1 %v5453_v14  ;;  %v997_v13 = vld [vmem:[#allocation4 + $0x900] sm:$0xff] }
 0x114   :  { %v1001_v14 = vld [vmem:[#allocation4 + $0x920] sm:$0xff] }
 0x115   :  { %v5541_v53 = vcombine.high %v997_v13, %v1001_v14  ;;  %v1089_v6 = vld [vmem:[#allocation4 + $0xbe0] sm:$0xff] }
 0x116   :  { %3851 = vmatpush2.bf16.msra.mxu0 %v5324_v20  ;;  %3892 = vmatpush2.bf16.msra.mxu1 %v5452_v21  ;;  %v5540_v20 = vcombine.low %v997_v13, %v1001_v14  ;;  %v5668_v21 = vcombine.low %v1125_v15, %v1129_v16  ;;  %v1213_v7 = vld [vmem:[#allocation4 + $0xfc0] sm:$0xff] }
 0x117   :  { %3852 = vmatprep.subr.bf16.mxu0 %v5317_v22  ;;  %3893 = vmatprep.subr.bf16.mxu1 %v5445_v23  ;;  %v5533_v22 = vcombine.high %v989_v54, %v993_v56  ;;  %v1217_v8 = vld [vmem:[#allocation4 + $0xfe0] sm:$0xff] }
 0x11a   :  { %3853 = vmatpush2.bf16.msra.mxu0 %v5316_v24  ;;  %3894 = vmatpush2.bf16.msra.mxu1 %v5444_v25  ;;  %v981_v24 = vld [vmem:[#allocation4 + $0x880] sm:$0xff] }
 0x11b   :  { %3904 = vmatprep.subr.bf16.mxu0 %v5565_v26  ;;  %3945 = vmatprep.subr.bf16.mxu1 %v5693_v27  ;;  %v985_v25 = vld [vmem:[#allocation4 + $0x8a0] sm:$0xff] }
 0x11c   :  { %v1109_v26 = vld [vmem:[#allocation4 + $0xc80] sm:$0xff] }
 0x11d   :  { %v1113_v27 = vld [vmem:[#allocation4 + $0xca0] sm:$0xff] }
 0x17d   :  { %v563_v39 = vpop.f32.mrf.mxu0  ;;  %v604_v40 = vpop.f32.mrf.mxu1 }
 0x17e   :  { %v564_v41 = vadd.f32 %v563_v39, %v172_v36  ;;  %v605_v45 = vadd.f32 %v604_v40, %v180_v37  ;;  %v5532_v36 = vcombine.low %v989_v54, %v993_v56  ;;  %v973_v39 = vld [vmem:[#allocation4 + $0x840] sm:$0xff] }
 0x17f   :  { %v565_v42 = vpop.f32.mrf.mxu0  ;;  %v606_v43 = vpop.f32.mrf.mxu1  ;;  %v977_v40 = vld [vmem:[#allocation4 + $0x860] sm:$0xff] }
 0x180   :  { %v566_v44 = vadd.f32 %v565_v42, %v176_v17  ;;  %v607_v46 = vadd.f32 %v606_v43, %v184_v38  ;;  %v693_v47 = vmax.f32 %v564_v41, 0.0  ;;  %v695_v31 = vmax.f32 %v605_v45, 0.0  ;;  %v1101_v41 = vld [vmem:[#allocation4 + $0xc40] sm:$0xff] }
 0x181   :  { %v567_v34 = vpop.f32.mrf.mxu0  ;;  %v608_v48 = vpop.f32.mrf.mxu1  ;;  %v5525_v17 = vcombine.high %v981_v24, %v985_v25  ;;  %v5653_v38 = vcombine.high %v1109_v26, %v1113_v27  ;;  %v1105_v45 = vld [vmem:[#allocation4 + $0xc60] sm:$0xff]  ;;  %v191_v42 = vsub.s32 5, %v6205_v28  ;;  %v5524_v43 = vcombine.low %v981_v24, %v985_v25 }
 0x182   :  { %v694_v50 = vmax.f32 %v566_v44, 0.0  ;;  %v696_v51 = vmax.f32 %v607_v46, 0.0  ;;  %v6229_v1 = vpack.c.bf16 %v693_v47, %v693_v47  ;;  %v6231_v2 = vpack.c.bf16 %v695_v31, %v695_v31  ;;  %v965_v34 = vld [vmem:[#allocation4 + $0x800] sm:$0xff] }
 0x183   :  { %v568_v60 = vpop.f32.mrf.mxu0  ;;  %v609_v61 = vpop.f32.mrf.mxu1  ;;  %v5652_v44 = vcombine.low %v1109_v26, %v1113_v27  ;;  %v199_v46 = vsub.s32 7, %v6205_v28  ;;  %v5517_v47 = vcombine.high %v973_v39, %v977_v40  ;;  %v5645_v31 = vcombine.high %v1101_v41, %v1105_v45  ;;  %v969_v48 = vld [vmem:[#allocation4 + $0x820] sm:$0xff] }
 0x184   :  { %v6225_v62 = vpack.c.bf16 %v694_v50, %v694_v50  ;;  %v6227_v63 = vpack.c.bf16 %v696_v51, %v696_v51  ;;  %v1097_v50 = vld [vmem:[#allocation4 + $0xc20] sm:$0xff]  ;;  %v192_v51 = vrot.slane %v6209_v32, %v191_v42  ;;  %v5516_v55 = vcombine.low %v973_v39, %v977_v40 }
 0x185   :  { %v200_v52 = vrot.slane %v6209_v32, %v199_v46  ;;  %v5644_v57 = vcombine.low %v1101_v41, %v1105_v45  ;;  %v5636_v14 = vcombine.low %v1093_v49, %v1097_v50  ;;  %v1081_v56 = vld [vmem:[#allocation4 + $0xba0] sm:$0xff]  ;;  %v5756_v25 = vcombine.low %v1213_v7, %v1217_v8 }
 0x186   :  { %3854 = vmatprep.mubr.bf16.mxu0 %v6225_v62  ;;  %3895 = vmatprep.mubr.bf16.mxu1 %v6227_v63 }
 0x187   :  { %3855 = vmatmul.mubr.bf16.vlgmr.msra.gmra.mxu0 %v6229_v1  ;;  %3896 = vmatmul.mubr.bf16.vlgmr.msra.gmra.mxu1 %v6231_v2 }
 0x188   :  { %3905 = vmatpush1.bf16.msra.mxu0 %v5564_v58  ;;  %3946 = vmatpush1.bf16.msra.mxu1 %v5692_v59  ;;  %v1117_v58 = vld [vmem:[#allocation4 + $0xcc0] sm:$0xff] }
 0x189   :  { %3906 = vmatprep.subr.bf16.mxu0 %v5557_v3  ;;  %3947 = vmatprep.subr.bf16.mxu1 %v5685_v4  ;;  %v1121_v59 = vld [vmem:[#allocation4 + $0xce0] sm:$0xff]  ;;  %v5509_v3 = vcombine.high %v965_v34, %v969_v48  ;;  %v5637_v4 = vcombine.high %v1093_v49, %v1097_v50 }
 0x18a   :  { %v5661_v23 = vcombine.high %v1117_v58, %v1121_v59  ;;  %v5660_v37 = vcombine.low %v1117_v58, %v1121_v59  ;;  %v1205_v58 = vld [vmem:[#allocation4 + $0xf80] sm:$0xff] }
 0x18b   :  { %v1209_v59 = vld [vmem:[#allocation4 + $0xfa0] sm:$0xff] }
 0x18c   :  { %3907 = vmatpush1.bf16.msra.mxu0 %v5556_v9  ;;  %3948 = vmatpush1.bf16.msra.mxu1 %v5684_v10  ;;  %v5749_v27 = vcombine.high %v1205_v58, %v1209_v59  ;;  %v5748_v40 = vcombine.low %v1205_v58, %v1209_v59 }
 0x18d   :  { %3908 = vmatprep.subr.bf16.mxu0 %v5549_v11  ;;  %3949 = vmatprep.subr.bf16.mxu1 %v5677_v12  ;;  %v5508_v11 = vcombine.low %v965_v34, %v969_v48 }
 0x190   :  { %3909 = vmatpush1.bf16.msra.mxu0 %v5548_v18  ;;  %3950 = vmatpush1.bf16.msra.mxu1 %v5676_v19  ;;  %v5629_v18 = vcombine.high %v1085_v5, %v1089_v6  ;;  %v5757_v19 = vcombine.high %v1213_v7, %v1217_v8  ;;  %v1045_v7 = vld [vmem:[#allocation4 + $0xa80] sm:$0xff] }
 0x191   :  { %3910 = vmatprep.subr.bf16.mxu0 %v5541_v53  ;;  %3951 = vmatprep.subr.bf16.mxu1 %v5669_v0  ;;  %v1077_v53 = vld [vmem:[#allocation4 + $0xb80] sm:$0xff] }
 0x192   :  { %v5621_v26 = vcombine.high %v1077_v53, %v1081_v56  ;;  %v5620_v39 = vcombine.low %v1077_v53, %v1081_v56  ;;  %v1049_v8 = vld [vmem:[#allocation4 + $0xaa0] sm:$0xff] }
 0x193   :  { %v1165_v53 = vld [vmem:[#allocation4 + $0xe40] sm:$0xff]  ;;  %v5588_v56 = vcombine.low %v1045_v7, %v1049_v8 }
 0x194   :  { %3911 = vmatpush1.bf16.msra.mxu0 %v5540_v20  ;;  %3952 = vmatpush1.bf16.msra.mxu1 %v5668_v21 }
 0x195   :  { %3912 = vmatprep.subr.bf16.mxu0 %v5533_v22  ;;  %3953 = vmatprep.subr.bf16.mxu1 %v5661_v23  ;;  %v5628_v22 = vcombine.low %v1085_v5, %v1089_v6 }
 0x198   :  { %3913 = vmatpush1.bf16.msra.mxu0 %v5532_v36  ;;  %3954 = vmatpush1.bf16.msra.mxu1 %v5660_v37  ;;  %v1069_v36 = vld [vmem:[#allocation4 + $0xb40] sm:$0xff] }
 0x199   :  { %3914 = vmatprep.subr.bf16.mxu0 %v5525_v17  ;;  %3955 = vmatprep.subr.bf16.mxu1 %v5653_v38  ;;  %v1073_v37 = vld [vmem:[#allocation4 + $0xb60] sm:$0xff] }
 0x19a   :  { %v1197_v17 = vld [vmem:[#allocation4 + $0xf40] sm:$0xff]  ;;  %v5613_v41 = vcombine.high %v1069_v36, %v1073_v37  ;;  %v5612_v34 = vcombine.low %v1069_v36, %v1073_v37 }
 0x19b   :  { %v1201_v38 = vld [vmem:[#allocation4 + $0xf60] sm:$0xff] }
 0x19c   :  { %3915 = vmatpush1.bf16.msra.mxu0 %v5524_v43  ;;  %3956 = vmatpush1.bf16.msra.mxu1 %v5652_v44  ;;  %v5741_v45 = vcombine.high %v1197_v17, %v1201_v38  ;;  %v1061_v43 = vld [vmem:[#allocation4 + $0xb00] sm:$0xff]  ;;  %v5740_v48 = vcombine.low %v1197_v17, %v1201_v38 }
 0x19d   :  { %v6251_v60 = vpop.f32.mrf.mxu0  ;;  %v6253_v61 = vpop.f32.mrf.mxu1  ;;  %3916 = vmatprep.subr.bf16.mxu0 %v5517_v47  ;;  %3957 = vmatprep.subr.bf16.mxu1 %v5645_v31  ;;  %v1065_v44 = vld [vmem:[#allocation4 + $0xb20] sm:$0xff] }
 0x19e   :  { %v1189_v47 = vld [vmem:[#allocation4 + $0xf00] sm:$0xff]  ;;  %v5605_v49 = vcombine.high %v1061_v43, %v1065_v44 }
 0x19f   :  { %v647_v9 = vpop.f32.mrf.mxu0  ;;  %v688_v10 = vpop.f32.mrf.mxu1  ;;  %v1193_v31 = vld [vmem:[#allocation4 + $0xf20] sm:$0xff] }
 0x1a0   :  { %v648_v12 = vadd.f32 %v647_v9, %v192_v51  ;;  %v689_v13 = vadd.f32 %v688_v10, %v200_v52  ;;  %3917 = vmatpush1.bf16.msra.mxu0 %v5516_v55  ;;  %3958 = vmatpush1.bf16.msra.mxu1 %v5644_v57  ;;  %v5733_v50 = vcombine.high %v1189_v47, %v1193_v31  ;;  %v1053_v51 = vld [vmem:[#allocation4 + $0xac0] sm:$0xff] }
 0x1a1   :  { %v649_v15 = vpop.f32.mrf.mxu0  ;;  %v690_v16 = vpop.f32.mrf.mxu1  ;;  %3918 = vmatprep.subr.bf16.mxu0 %v5509_v3  ;;  %3959 = vmatprep.subr.bf16.mxu1 %v5637_v4  ;;  %v1057_v52 = vld [vmem:[#allocation4 + $0xae0] sm:$0xff]  ;;  %v5604_v3 = vcombine.low %v1061_v43, %v1065_v44  ;;  %v5732_v4 = vcombine.low %v1189_v47, %v1193_v31  ;;  %v898_v43 = vld [vmem:[#allocation4 + $0x5e8] sm:$0xff] }
 0x1a2   :  { %v698_v0 = vmax.f32 %v648_v12, 0.0  ;;  %v700_v54 = vmax.f32 %v689_v13, 0.0  ;;  %v1181_v55 = vld [vmem:[#allocation4 + $0xec0] sm:$0xff]  ;;  %v5597_v5 = vcombine.high %v1053_v51, %v1057_v52  ;;  %v5596_v12 = vcombine.low %v1053_v51, %v1057_v52  ;;  %v890_v51 = vld [vmem:[#allocation4 + $0x5a8] sm:$0xff] }
 0x1a3   :  { %v650_v20 = vpop.f32.mrf.mxu0  ;;  %v691_v21 = vpop.f32.mrf.mxu1  ;;  %v1185_v57 = vld [vmem:[#allocation4 + $0xee0] sm:$0xff]  ;;  %v5589_v15 = vcombine.high %v1045_v7, %v1049_v8  ;;  %v754_v7 = vld [vmem:[#allocation4 + $0x168] sm:$0xff] }
 0x1a4   :  { %v6255_v23 = vpack.c.bf16 %v698_v0, %v698_v0  ;;  %v6257_v24 = vpack.c.bf16 %v700_v54, %v700_v54  ;;  %3919 = vmatpush1.bf16.msra.mxu0 %v5508_v11  ;;  %3960 = vmatpush1.bf16.msra.mxu1 %v5636_v14  ;;  %v5725_v6 = vcombine.high %v1181_v55, %v1185_v57  ;;  %v1173_v9 = vld [vmem:[#allocation4 + $0xe80] sm:$0xff]  ;;  %v187_v11 = vsub.s32 4, %v6205_v28  ;;  %v878_v8 = vld [vmem:[#allocation4 + $0x548] sm:$0xff] }
 0x1a5   :  { %3920 = vmatprep.subr.bf16.mxu0 %v5629_v18  ;;  %3961 = vmatprep.subr.bf16.mxu1 %v5757_v19  ;;  %v1177_v10 = vld [vmem:[#allocation4 + $0xea0] sm:$0xff]  ;;  %v5724_v13 = vcombine.low %v1181_v55, %v1185_v57  ;;  %v195_v14 = vsub.s32 6, %v6205_v28 }
 0x1a6   :  { %3936 = vmatprep.mubr.bf16.mxu0 %v6255_v23  ;;  %3977 = vmatprep.mubr.bf16.mxu1 %v6257_v24  ;;  %v5717_v16 = vcombine.high %v1173_v9, %v1177_v10  ;;  %v1037_v18 = vld [vmem:[#allocation4 + $0xa40] sm:$0xff]  ;;  %v188_v54 = vrot.slane %v6209_v32, %v187_v11  ;;  %v5716_v58 = vcombine.low %v1173_v9, %v1177_v10  ;;  %v882_v9 = vld [vmem:[#allocation4 + $0x568] sm:$0xff] }
 0x1a7   :  { %v1041_v19 = vld [vmem:[#allocation4 + $0xa60] sm:$0xff]  ;;  %v196_v59 = vrot.slane %v6209_v32, %v195_v14 }
 0x1a8   :  { %3921 = vmatpush2.bf16.msra.mxu0 %v5628_v22  ;;  %3962 = vmatpush2.bf16.msra.mxu1 %v5756_v25  ;;  %v1169_v0 = vld [vmem:[#allocation4 + $0xe60] sm:$0xff]  ;;  %v5581_v20 = vcombine.high %v1037_v18, %v1041_v19  ;;  %v5580_v36 = vcombine.low %v1037_v18, %v1041_v19  ;;  %v646_v38 = vadd.f32 %v6251_v60, %v188_v54  ;;  %v758_v60 = vld [vmem:[#allocation4 + $0x188] sm:$0xff] }
 0x1a9   :  { %3922 = vmatprep.subr.bf16.mxu0 %v5621_v26  ;;  %3963 = vmatprep.subr.bf16.mxu1 %v5749_v27  ;;  %v5709_v21 = vcombine.high %v1165_v53, %v1169_v0  ;;  %v1029_v22 = vld [vmem:[#allocation4 + $0xa00] sm:$0xff]  ;;  %v5708_v37 = vcombine.low %v1165_v53, %v1169_v0  ;;  %v746_v18 = vld [vmem:[#allocation4 + $0x128] sm:$0xff]  ;;  %v5422_v54 = vcombine.low %v878_v8, %v882_v9 }
 0x1aa   :  { %v1033_v25 = vld [vmem:[#allocation4 + $0xa20] sm:$0xff]  ;;  %v697_v31 = vmax.f32 %v646_v38, 0.0  ;;  %v870_v19 = vld [vmem:[#allocation4 + $0x508] sm:$0xff] }
 0x1ab   :  { %v1157_v26 = vld [vmem:[#allocation4 + $0xe00] sm:$0xff]  ;;  %v5573_v17 = vcombine.high %v1029_v22, %v1033_v25  ;;  %v5572_v44 = vcombine.low %v1029_v22, %v1033_v25  ;;  %v874_v53 = vld [vmem:[#allocation4 + $0x528] sm:$0xff] }
 0x1ac   :  { %3923 = vmatpush2.bf16.msra.mxu0 %v5620_v39  ;;  %3964 = vmatpush2.bf16.msra.mxu1 %v5748_v40  ;;  %v1161_v27 = vld [vmem:[#allocation4 + $0xe20] sm:$0xff]  ;;  %v687_v39 = vadd.f32 %v6253_v61, %v196_v59  ;;  %v766_v40 = vld [vmem:[#allocation4 + $0x1c8] sm:$0xff]  ;;  %v6271_v55 = vpack.c.bf16 %v697_v31, %v697_v31 }
 0x1ad   :  { %3924 = vmatprep.subr.bf16.mxu0 %v5613_v41  ;;  %3965 = vmatprep.subr.bf16.mxu1 %v5741_v45  ;;  %v5701_v32 = vcombine.high %v1157_v26, %v1161_v27  ;;  %v770_v41 = vld [vmem:[#allocation4 + $0x1e8] sm:$0xff]  ;;  %v5700_v47 = vcombine.low %v1157_v26, %v1161_v27  ;;  %v5414_v26 = vcombine.low %v870_v19, %v874_v53 }
 0x1ae   :  { %v894_v45 = vld [vmem:[#allocation4 + $0x5c8] sm:$0xff]  ;;  %v5310_v52 = vcombine.low %v766_v40, %v770_v41 }
 0x1af   :  { %v886_v61 = vld [vmem:[#allocation4 + $0x588] sm:$0xff] }
 0x1b0   :  { %3925 = vmatpush2.bf16.msra.mxu0 %v5612_v34  ;;  %3966 = vmatpush2.bf16.msra.mxu1 %v5740_v48  ;;  %v699_v34 = vmax.f32 %v687_v39, 0.0  ;;  %v5311_v48 = vcombine.high %v766_v40, %v770_v41  ;;  %v734_v59 = vld [vmem:[#allocation4 + $0xc8] sm:$0xff] }
 0x1b1   :  { %3926 = vmatprep.subr.bf16.mxu0 %v5605_v49  ;;  %3967 = vmatprep.subr.bf16.mxu1 %v5733_v50  ;;  %v5439_v49 = vcombine.high %v894_v45, %v898_v43  ;;  %v762_v50 = vld [vmem:[#allocation4 + $0x1a8] sm:$0xff] }
 0x1b2   :  { %v6273_v57 = vpack.c.bf16 %v699_v34, %v699_v34  ;;  %v5302_v10 = vcombine.low %v758_v60, %v762_v50  ;;  %v866_v22 = vld [vmem:[#allocation4 + $0x4e8] sm:$0xff] }
 0x1b3   :  { %v854_v38 = vld [vmem:[#allocation4 + $0x488] sm:$0xff] }
 0x1b4   :  { %3927 = vmatpush2.bf16.msra.mxu0 %v5604_v3  ;;  %3968 = vmatpush2.bf16.msra.mxu1 %v5732_v4  ;;  %v5438_v3 = vcombine.low %v894_v45, %v898_v43  ;;  %v5303_v4 = vcombine.high %v758_v60, %v762_v50  ;;  %v858_v39 = vld [vmem:[#allocation4 + $0x4a8] sm:$0xff] }
 0x1b5   :  { %3928 = vmatprep.subr.bf16.mxu0 %v5597_v5  ;;  %3969 = vmatprep.subr.bf16.mxu1 %v5725_v6  ;;  %v5431_v5 = vcombine.high %v886_v61, %v890_v51  ;;  %v750_v6 = vld [vmem:[#allocation4 + $0x148] sm:$0xff]  ;;  %v5399_v45 = vcombine.high %v854_v38, %v858_v39 }
 0x1b6   :  { %v5294_v0 = vcombine.low %v750_v6, %v754_v7  ;;  %v718_v43 = vld [vmem:[#allocation4 + $0x48] sm:$0xff] }
 0x1b7   :  { %v850_v31 = vld [vmem:[#allocation4 + $0x468] sm:$0xff] }
 0x1b8   :  { %3929 = vmatpush2.bf16.msra.mxu0 %v5596_v12  ;;  %3970 = vmatpush2.bf16.msra.mxu1 %v5724_v13  ;;  %v5430_v12 = vcombine.low %v886_v61, %v890_v51  ;;  %v5295_v13 = vcombine.high %v750_v6, %v754_v7  ;;  %v710_v50 = vld [vmem:[#allocation4 + $0x8] sm:$0xff] }
 0x1b9   :  { %3930 = vmatprep.subr.bf16.mxu0 %v5589_v15  ;;  %3971 = vmatprep.subr.bf16.mxu1 %v5717_v16  ;;  %v5423_v15 = vcombine.high %v878_v8, %v882_v9  ;;  %v742_v16 = vld [vmem:[#allocation4 + $0x108] sm:$0xff] }
 0x1ba   :  { %v5286_v25 = vcombine.low %v742_v16, %v746_v18  ;;  %v714_v61 = vld [vmem:[#allocation4 + $0x28] sm:$0xff] }
 0x1bb   :  { %v838_v51 = vld [vmem:[#allocation4 + $0x408] sm:$0xff] }
 0x1bc   :  { %3931 = vmatpush2.bf16.msra.mxu0 %v5588_v56  ;;  %3972 = vmatpush2.bf16.msra.mxu1 %v5716_v58  ;;  %v5287_v56 = vcombine.high %v742_v16, %v746_v18  ;;  %v5415_v58 = vcombine.high %v870_v19, %v874_v53  ;;  %v830_v7 = vld [vmem:[#allocation4 + $0x3c8] sm:$0xff] }
 0x1bd   :  { %3932 = vmatprep.subr.bf16.mxu0 %v5581_v20  ;;  %3973 = vmatprep.subr.bf16.mxu1 %v5709_v21  ;;  %v738_v20 = vld [vmem:[#allocation4 + $0xe8] sm:$0xff] }
 0x1be   :  { %v862_v21 = vld [vmem:[#allocation4 + $0x4c8] sm:$0xff]  ;;  %v5279_v27 = vcombine.high %v734_v59, %v738_v20 }
 0x1bf   :  { %v5406_v40 = vcombine.low %v862_v21, %v866_v22  ;;  %v834_v8 = vld [vmem:[#allocation4 + $0x3e8] sm:$0xff] }
 0x1c0   :  { %3933 = vmatpush2.bf16.msra.mxu0 %v5580_v36  ;;  %3974 = vmatpush2.bf16.msra.mxu1 %v5708_v37  ;;  %v5407_v36 = vcombine.high %v862_v21, %v866_v22  ;;  %v726_v37 = vld [vmem:[#allocation4 + $0x88] sm:$0xff] }
 0x1c1   :  { %3934 = vmatprep.subr.bf16.mxu0 %v5573_v17  ;;  %3975 = vmatprep.subr.bf16.mxu1 %v5701_v32  ;;  %v730_v17 = vld [vmem:[#allocation4 + $0xa8] sm:$0xff]  ;;  %v5278_v32 = vcombine.low %v734_v59, %v738_v20 }
 0x1c2   :  { %v5271_v41 = vcombine.high %v726_v37, %v730_v17  ;;  %v5270_v34 = vcombine.low %v726_v37, %v730_v17  ;;  %v958_v9 = vld [vmem:[#allocation4 + $0x7c8] sm:$0xff] }
 0x1c3   :  { %v822_v18 = vld [vmem:[#allocation4 + $0x388] sm:$0xff] }
 0x1c4   :  { %3935 = vmatpush2.bf16.msra.mxu0 %v5572_v44  ;;  %3976 = vmatpush2.bf16.msra.mxu1 %v5700_v47  ;;  %v722_v44 = vld [vmem:[#allocation4 + $0x68] sm:$0xff] }
 0x1c5   :  { %3986 = vmatprep.subr.bf16.mxu0 %v5311_v48  ;;  %4027 = vmatprep.subr.bf16.mxu1 %v5439_v49  ;;  %v846_v47 = vld [vmem:[#allocation4 + $0x448] sm:$0xff]  ;;  %v5398_v48 = vcombine.low %v854_v38, %v858_v39  ;;  %v5263_v49 = vcombine.high %v718_v43, %v722_v44 }
 0x1c6   :  { %v5391_v60 = vcombine.high %v846_v47, %v850_v31  ;;  %v826_v19 = vld [vmem:[#allocation4 + $0x3a8] sm:$0xff] }
 0x1c7   :  { %3937 = vmatmul.mubr.bf16.vlgmr.msra.gmra.mxu0 %v6271_v55  ;;  %3978 = vmatmul.mubr.bf16.vlgmr.msra.gmra.mxu1 %v6273_v57  ;;  %v950_v53 = vld [vmem:[#allocation4 + $0x788] sm:$0xff] }
 0x1c8   :  { %3987 = vmatpush1.bf16.msra.mxu0 %v5310_v52  ;;  %4018 = vmatprep.mubr.bf16.mxu0 %v6225_v62  ;;  %v842_v52 = vld [vmem:[#allocation4 + $0x428] sm:$0xff] }
 0x1c9   :  { %4028 = vmatpush1.bf16.msra.mxu1 %v5438_v3  ;;  %4059 = vmatprep.mubr.bf16.mxu1 %v6227_v63  ;;  %v5262_v3 = vcombine.low %v718_v43, %v722_v44  ;;  %v5383_v6 = vcombine.high %v838_v51, %v842_v52  ;;  %v814_v20 = vld [vmem:[#allocation4 + $0x348] sm:$0xff] }
 0x1ca   :  { %3988 = vmatprep.subr.bf16.mxu0 %v5303_v4  ;;  %4029 = vmatprep.subr.bf16.mxu1 %v5431_v5  ;;  %v5390_v4 = vcombine.low %v846_v47, %v850_v31  ;;  %v5255_v5 = vcombine.high %v710_v50, %v714_v61  ;;  %v818_v21 = vld [vmem:[#allocation4 + $0x368] sm:$0xff] }
 0x1cb   :  { %v942_v22 = vld [vmem:[#allocation4 + $0x748] sm:$0xff] }
 0x1cc   :  { %3989 = vmatpush1.bf16.msra.mxu0 %v5302_v10  ;;  %v962_v10 = vld [vmem:[#allocation4 + $0x7e8] sm:$0xff] }
 0x1cd   :  { %4030 = vmatpush1.bf16.msra.mxu1 %v5430_v12  ;;  %3990 = vmatprep.subr.bf16.mxu0 %v5295_v13  ;;  %v5254_v12 = vcombine.low %v710_v50, %v714_v61  ;;  %v5382_v13 = vcombine.low %v838_v51, %v842_v52  ;;  %v5503_v16 = vcombine.high %v958_v9, %v962_v10  ;;  %v806_v17 = vld [vmem:[#allocation4 + $0x308] sm:$0xff] }
 0x1ce   :  { %4031 = vmatprep.subr.bf16.mxu1 %v5423_v15  ;;  %v5375_v15 = vcombine.high %v830_v7, %v834_v8  ;;  %v810_v38 = vld [vmem:[#allocation4 + $0x328] sm:$0xff] }
 0x1cf   :  { %v934_v39 = vld [vmem:[#allocation4 + $0x708] sm:$0xff] }
 0x1d0   :  { %3991 = vmatpush1.bf16.msra.mxu0 %v5294_v0  ;;  %v954_v0 = vld [vmem:[#allocation4 + $0x7a8] sm:$0xff] }
 0x1d1   :  { %4032 = vmatpush1.bf16.msra.mxu1 %v5422_v54  ;;  %3992 = vmatprep.subr.bf16.mxu0 %v5287_v56  ;;  %v5374_v54 = vcombine.low %v830_v7, %v834_v8  ;;  %v5502_v56 = vcombine.low %v958_v9, %v962_v10  ;;  %v5495_v59 = vcombine.high %v950_v53, %v954_v0  ;;  %v798_v44 = vld [vmem:[#allocation4 + $0x2c8] sm:$0xff] }
 0x1d2   :  { %4033 = vmatprep.subr.bf16.mxu1 %v5415_v58  ;;  %v5367_v58 = vcombine.high %v822_v18, %v826_v19  ;;  %v802_v47 = vld [vmem:[#allocation4 + $0x2e8] sm:$0xff] }
 0x1d3   :  { %v926_v31 = vld [vmem:[#allocation4 + $0x6c8] sm:$0xff] }
 0x1d4   :  { %3993 = vmatpush1.bf16.msra.mxu0 %v5286_v25  ;;  %v946_v25 = vld [vmem:[#allocation4 + $0x768] sm:$0xff] }
 0x1d5   :  { %4034 = vmatpush1.bf16.msra.mxu1 %v5414_v26  ;;  %3994 = vmatprep.subr.bf16.mxu0 %v5279_v27  ;;  %v5366_v26 = vcombine.low %v822_v18, %v826_v19  ;;  %v5494_v27 = vcombine.low %v950_v53, %v954_v0  ;;  %v5487_v37 = vcombine.high %v942_v22, %v946_v25  ;;  %v790_v61 = vld [vmem:[#allocation4 + $0x288] sm:$0xff] }
 0x1d6   :  { %4035 = vmatprep.subr.bf16.mxu1 %v5407_v36  ;;  %v5359_v36 = vcombine.high %v814_v20, %v818_v21  ;;  %v794_v51 = vld [vmem:[#allocation4 + $0x2a8] sm:$0xff] }
 0x1d7   :  { %v918_v52 = vld [vmem:[#allocation4 + $0x688] sm:$0xff] }
 0x1d8   :  { %3995 = vmatpush1.bf16.msra.mxu0 %v5278_v32  ;;  %v938_v32 = vld [vmem:[#allocation4 + $0x728] sm:$0xff] }
 0x1d9   :  { %4036 = vmatpush1.bf16.msra.mxu1 %v5406_v40  ;;  %3996 = vmatprep.subr.bf16.mxu0 %v5271_v41  ;;  %v5358_v40 = vcombine.low %v814_v20, %v818_v21  ;;  %v5486_v41 = vcombine.low %v942_v22, %v946_v25  ;;  %v5479_v43 = vcombine.high %v934_v39, %v938_v32  ;;  %v782_v8 = vld [vmem:[#allocation4 + $0x248] sm:$0xff] }
 0x1da   :  { %4037 = vmatprep.subr.bf16.mxu1 %v5399_v45  ;;  %v5351_v45 = vcombine.high %v806_v17, %v810_v38  ;;  %v786_v9 = vld [vmem:[#allocation4 + $0x268] sm:$0xff] }
 0x1db   :  { %v910_v10 = vld [vmem:[#allocation4 + $0x648] sm:$0xff] }
 0x1dc   :  { %3997 = vmatpush1.bf16.msra.mxu0 %v5270_v34  ;;  %v930_v34 = vld [vmem:[#allocation4 + $0x6e8] sm:$0xff] }
 0x1dd   :  { %4038 = vmatpush1.bf16.msra.mxu1 %v5398_v48  ;;  %3998 = vmatprep.subr.bf16.mxu0 %v5263_v49  ;;  %v5350_v48 = vcombine.low %v806_v17, %v810_v38  ;;  %v5478_v49 = vcombine.low %v934_v39, %v938_v32  ;;  %v5471_v50 = vcombine.high %v926_v31, %v930_v34  ;;  %v774_v19 = vld [vmem:[#allocation4 + $0x208] sm:$0xff] }
 0x1de   :  { %4039 = vmatprep.subr.bf16.mxu1 %v5391_v60  ;;  %v5343_v60 = vcombine.high %v798_v44, %v802_v47  ;;  %v778_v53 = vld [vmem:[#allocation4 + $0x228] sm:$0xff] }
 0x1df   :  { %v902_v0 = vld [vmem:[#allocation4 + $0x608] sm:$0xff] }
 0x1e0   :  { %3999 = vmatpush1.bf16.msra.mxu0 %v5262_v3  ;;  %v922_v3 = vld [vmem:[#allocation4 + $0x6a8] sm:$0xff] }
 0x1e1   :  { %4040 = vmatpush1.bf16.msra.mxu1 %v5390_v4  ;;  %4000 = vmatprep.subr.bf16.mxu0 %v5255_v5  ;;  %v5342_v4 = vcombine.low %v798_v44, %v802_v47  ;;  %v5470_v5 = vcombine.low %v926_v31, %v930_v34  ;;  %v5463_v7 = vcombine.high %v918_v52, %v922_v3  ;;  %v1022_v21 = vld [vmem:[#allocation4 + $0x9c8] sm:$0xff] }
 0x1e2   :  { %4041 = vmatprep.subr.bf16.mxu1 %v5383_v6  ;;  %v5335_v6 = vcombine.high %v790_v61, %v794_v51  ;;  %v1026_v22 = vld [vmem:[#allocation4 + $0x9e8] sm:$0xff] }
 0x1e3   :  { %v1150_v25 = vld [vmem:[#allocation4 + $0xdc8] sm:$0xff]  ;;  %v5566_v32 = vcombine.low %v1022_v21, %v1026_v22 }
 0x1e4   :  { %4001 = vmatpush1.bf16.msra.mxu0 %v5254_v12  ;;  %v914_v12 = vld [vmem:[#allocation4 + $0x668] sm:$0xff] }
 0x1e5   :  { %4042 = vmatpush1.bf16.msra.mxu1 %v5382_v13  ;;  %4002 = vmatprep.subr.bf16.mxu0 %v5375_v15  ;;  %v5334_v13 = vcombine.low %v790_v61, %v794_v51  ;;  %v5462_v15 = vcombine.low %v918_v52, %v922_v3  ;;  %v5455_v18 = vcombine.high %v910_v10, %v914_v12  ;;  %v1014_v38 = vld [vmem:[#allocation4 + $0x988] sm:$0xff] }
 0x1e6   :  { %4043 = vmatprep.subr.bf16.mxu1 %v5503_v16  ;;  %v5327_v16 = vcombine.high %v782_v8, %v786_v9  ;;  %v1018_v39 = vld [vmem:[#allocation4 + $0x9a8] sm:$0xff] }
 0x1e7   :  { %v1006_v44 = vld [vmem:[#allocation4 + $0x948] sm:$0xff] }
 0x1e8   :  { %4003 = vmatpush2.bf16.msra.mxu0 %v5374_v54  ;;  %v906_v54 = vld [vmem:[#allocation4 + $0x628] sm:$0xff] }
 0x1e9   :  { %4044 = vmatpush2.bf16.msra.mxu1 %v5502_v56  ;;  %4004 = vmatprep.subr.bf16.mxu0 %v5367_v58  ;;  %v5326_v56 = vcombine.low %v782_v8, %v786_v9  ;;  %v5454_v58 = vcombine.low %v910_v10, %v914_v12  ;;  %v5447_v20 = vcombine.high %v902_v0, %v906_v54  ;;  %v1010_v47 = vld [vmem:[#allocation4 + $0x968] sm:$0xff] }
 0x1ea   :  { %4045 = vmatprep.subr.bf16.mxu1 %v5495_v59  ;;  %v5319_v59 = vcombine.high %v774_v19, %v778_v53  ;;  %v1134_v34 = vld [vmem:[#allocation4 + $0xd48] sm:$0xff] }
 0x1eb   :  { %v998_v51 = vld [vmem:[#allocation4 + $0x908] sm:$0xff] }
 0x1ec   :  { %4005 = vmatpush2.bf16.msra.mxu0 %v5366_v26  ;;  %v1154_v26 = vld [vmem:[#allocation4 + $0xde8] sm:$0xff] }
 0x1ed   :  { %4046 = vmatpush2.bf16.msra.mxu1 %v5494_v27  ;;  %4006 = vmatprep.subr.bf16.mxu0 %v5359_v36  ;;  %v5318_v27 = vcombine.low %v774_v19, %v778_v53  ;;  %v5446_v36 = vcombine.low %v902_v0, %v906_v54  ;;  %v5695_v17 = vcombine.high %v1150_v25, %v1154_v26  ;;  %v1002_v52 = vld [vmem:[#allocation4 + $0x928] sm:$0xff] }
 0x1ee   :  { %4047 = vmatprep.subr.bf16.mxu1 %v5487_v37  ;;  %v5567_v37 = vcombine.high %v1022_v21, %v1026_v22  ;;  %v1126_v3 = vld [vmem:[#allocation4 + $0xd08] sm:$0xff] }
 0x1ef   :  { %v990_v9 = vld [vmem:[#allocation4 + $0x8c8] sm:$0xff] }
 0x1f0   :  { %4007 = vmatpush2.bf16.msra.mxu0 %v5358_v40  ;;  %v1142_v40 = vld [vmem:[#allocation4 + $0xd88] sm:$0xff] }
 0x1f1   :  { %4048 = vmatpush2.bf16.msra.mxu1 %v5486_v41  ;;  %4008 = vmatprep.subr.bf16.mxu0 %v5351_v45  ;;  %v1146_v41 = vld [vmem:[#allocation4 + $0xda8] sm:$0xff]  ;;  %v5694_v45 = vcombine.low %v1150_v25, %v1154_v26 }
 0x1f2   :  { %4049 = vmatprep.subr.bf16.mxu1 %v5479_v43  ;;  %v5559_v43 = vcombine.high %v1014_v38, %v1018_v39  ;;  %v5687_v31 = vcombine.high %v1142_v40, %v1146_v41  ;;  %v994_v10 = vld [vmem:[#allocation4 + $0x8e8] sm:$0xff] }
 0x1f3   :  { %v1118_v12 = vld [vmem:[#allocation4 + $0xcc8] sm:$0xff] }
 0x1f4   :  { %4009 = vmatpush2.bf16.msra.mxu0 %v5350_v48  ;;  %v1138_v48 = vld [vmem:[#allocation4 + $0xd68] sm:$0xff] }
 0x1f5   :  { %4050 = vmatpush2.bf16.msra.mxu1 %v5478_v49  ;;  %4010 = vmatprep.subr.bf16.mxu0 %v5343_v60  ;;  %v5558_v49 = vcombine.low %v1014_v38, %v1018_v39  ;;  %v5686_v60 = vcombine.low %v1142_v40, %v1146_v41  ;;  %v5679_v61 = vcombine.high %v1134_v34, %v1138_v48  ;;  %v982_v53 = vld [vmem:[#allocation4 + $0x888] sm:$0xff] }
 0x1f6   :  { %4051 = vmatprep.subr.bf16.mxu1 %v5471_v50  ;;  %v5551_v50 = vcombine.high %v1006_v44, %v1010_v47  ;;  %v986_v0 = vld [vmem:[#allocation4 + $0x8a8] sm:$0xff] }
 0x1f7   :  { %v1110_v54 = vld [vmem:[#allocation4 + $0xc88] sm:$0xff] }
 0x1f8   :  { %4011 = vmatpush2.bf16.msra.mxu0 %v5342_v4  ;;  %v1130_v4 = vld [vmem:[#allocation4 + $0xd28] sm:$0xff] }
 0x1f9   :  { %4052 = vmatpush2.bf16.msra.mxu1 %v5470_v5  ;;  %4012 = vmatprep.subr.bf16.mxu0 %v5335_v6  ;;  %v5550_v5 = vcombine.low %v1006_v44, %v1010_v47  ;;  %v5678_v6 = vcombine.low %v1134_v34, %v1138_v48  ;;  %v5671_v8 = vcombine.high %v1126_v3, %v1130_v4  ;;  %v974_v22 = vld [vmem:[#allocation4 + $0x848] sm:$0xff] }
 0x1fa   :  { %4053 = vmatprep.subr.bf16.mxu1 %v5463_v7  ;;  %v5543_v7 = vcombine.high %v998_v51, %v1002_v52  ;;  %v978_v25 = vld [vmem:[#allocation4 + $0x868] sm:$0xff] }
 0x1fb   :  { %v1102_v26 = vld [vmem:[#allocation4 + $0xc48] sm:$0xff] }
 0x1fc   :  { %4013 = vmatpush2.bf16.msra.mxu0 %v5334_v13  ;;  %v1122_v13 = vld [vmem:[#allocation4 + $0xce8] sm:$0xff] }
 0x1fd   :  { %4054 = vmatpush2.bf16.msra.mxu1 %v5462_v15  ;;  %4014 = vmatprep.subr.bf16.mxu0 %v5327_v16  ;;  %v5542_v15 = vcombine.low %v998_v51, %v1002_v52  ;;  %v5670_v16 = vcombine.low %v1126_v3, %v1130_v4  ;;  %v5663_v19 = vcombine.high %v1118_v12, %v1122_v13  ;;  %v966_v39 = vld [vmem:[#allocation4 + $0x808] sm:$0xff] }
 0x1fe   :  { %4055 = vmatprep.subr.bf16.mxu1 %v5455_v18  ;;  %v5535_v18 = vcombine.high %v990_v9, %v994_v10  ;;  %v1094_v40 = vld [vmem:[#allocation4 + $0xc08] sm:$0xff] }
 0x1ff   :  { %v1098_v41 = vld [vmem:[#allocation4 + $0xc28] sm:$0xff] }
 0x200   :  { %4015 = vmatpush2.bf16.msra.mxu0 %v5326_v56  ;;  %v1114_v56 = vld [vmem:[#allocation4 + $0xca8] sm:$0xff]  ;;  %v5639_v47 = vcombine.high %v1094_v40, %v1098_v41 }
 0x201   :  { %4056 = vmatpush2.bf16.msra.mxu1 %v5454_v58  ;;  %4016 = vmatprep.subr.bf16.mxu0 %v5319_v59  ;;  %v5534_v58 = vcombine.low %v990_v9, %v994_v10  ;;  %v5662_v59 = vcombine.low %v1118_v12, %v1122_v13  ;;  %v5655_v21 = vcombine.high %v1110_v54, %v1114_v56  ;;  %v1090_v34 = vld [vmem:[#allocation4 + $0xbe8] sm:$0xff] }
 0x202   :  { %4057 = vmatprep.subr.bf16.mxu1 %v5447_v20  ;;  %v5527_v20 = vcombine.high %v982_v53, %v986_v0  ;;  %v1214_v48 = vld [vmem:[#allocation4 + $0xfc8] sm:$0xff] }
 0x203   :  { %v1078_v52 = vld [vmem:[#allocation4 + $0xb88] sm:$0xff] }
 0x204   :  { %4017 = vmatpush2.bf16.msra.mxu0 %v5318_v27  ;;  %v1106_v27 = vld [vmem:[#allocation4 + $0xc68] sm:$0xff] }
 0x205   :  { %4058 = vmatpush2.bf16.msra.mxu1 %v5446_v36  ;;  %4068 = vmatprep.subr.bf16.mxu0 %v5567_v37  ;;  %v5526_v36 = vcombine.low %v982_v53, %v986_v0  ;;  %v5654_v37 = vcombine.low %v1110_v54, %v1114_v56  ;;  %v5647_v38 = vcombine.high %v1102_v26, %v1106_v27  ;;  %v1082_v3 = vld [vmem:[#allocation4 + $0xba8] sm:$0xff] }
 0x206   :  { %4109 = vmatprep.subr.bf16.mxu1 %v5695_v17  ;;  %v5519_v17 = vcombine.high %v974_v22, %v978_v25  ;;  %v1206_v4 = vld [vmem:[#allocation4 + $0xf88] sm:$0xff] }
 0x207   :  { %4019 = vmatmul.mubr.bf16.vlgmr.msra.gmra.mxu0 %v6229_v1  ;;  %v1070_v10 = vld [vmem:[#allocation4 + $0xb48] sm:$0xff] }
 0x208   :  { %4060 = vmatmul.mubr.bf16.vlgmr.msra.gmra.mxu1 %v6231_v2  ;;  %4069 = vmatpush1.bf16.msra.mxu0 %v5566_v32  ;;  %v970_v32 = vld [vmem:[#allocation4 + $0x828] sm:$0xff] }
 0x209   :  { %4100 = vmatprep.mubr.bf16.mxu0 %v6255_v23  ;;  %4110 = vmatpush1.bf16.msra.mxu1 %v5694_v45  ;;  %v5518_v45 = vcombine.low %v974_v22, %v978_v25  ;;  %v5511_v44 = vcombine.high %v966_v39, %v970_v32  ;;  %v1074_v12 = vld [vmem:[#allocation4 + $0xb68] sm:$0xff] }
 0x20a   :  { %4141 = vmatprep.mubr.bf16.mxu1 %v6257_v24  ;;  %4070 = vmatprep.subr.bf16.mxu0 %v5559_v43  ;;  %v5646_v43 = vcombine.low %v1102_v26, %v1106_v27  ;;  %v1198_v13 = vld [vmem:[#allocation4 + $0xf48] sm:$0xff] }
 0x20b   :  { %4111 = vmatprep.subr.bf16.mxu1 %v5687_v31  ;;  %v1086_v31 = vld [vmem:[#allocation4 + $0xbc8] sm:$0xff] }
 0x20c   :  { %4071 = vmatpush1.bf16.msra.mxu0 %v5558_v49  ;;  %v1218_v49 = vld [vmem:[#allocation4 + $0xfe8] sm:$0xff] }
 0x20d   :  { %4112 = vmatpush1.bf16.msra.mxu1 %v5686_v60  ;;  %4072 = vmatprep.subr.bf16.mxu0 %v5551_v50  ;;  %v5510_v60 = vcombine.low %v966_v39, %v970_v32  ;;  %v5638_v50 = vcombine.low %v1094_v40, %v1098_v41  ;;  %v5759_v51 = vcombine.high %v1214_v48, %v1218_v49  ;;  %v1062_v0 = vld [vmem:[#allocation4 + $0xb08] sm:$0xff] }
 0x20e   :  { %4113 = vmatprep.subr.bf16.mxu1 %v5679_v61  ;;  %v5631_v61 = vcombine.high %v1086_v31, %v1090_v34  ;;  %v1066_v54 = vld [vmem:[#allocation4 + $0xb28] sm:$0xff] }
 0x20f   :  { %v1190_v56 = vld [vmem:[#allocation4 + $0xf08] sm:$0xff] }
 0x210   :  { %4073 = vmatpush1.bf16.msra.mxu0 %v5550_v5  ;;  %v1210_v5 = vld [vmem:[#allocation4 + $0xfa8] sm:$0xff] }
 0x211   :  { %4114 = vmatpush1.bf16.msra.mxu1 %v5678_v6  ;;  %4074 = vmatprep.subr.bf16.mxu0 %v5543_v7  ;;  %v5630_v6 = vcombine.low %v1086_v31, %v1090_v34  ;;  %v5758_v7 = vcombine.low %v1214_v48, %v1218_v49  ;;  %v5751_v9 = vcombine.high %v1206_v4, %v1210_v5  ;;  %v1054_v25 = vld [vmem:[#allocation4 + $0xac8] sm:$0xff] }
 0x212   :  { %4115 = vmatprep.subr.bf16.mxu1 %v5671_v8  ;;  %v5623_v8 = vcombine.high %v1078_v52, %v1082_v3  ;;  %v1058_v26 = vld [vmem:[#allocation4 + $0xae8] sm:$0xff] }
 0x213   :  { %v1182_v27 = vld [vmem:[#allocation4 + $0xec8] sm:$0xff] }
 0x214   :  { %4075 = vmatpush1.bf16.msra.mxu0 %v5542_v15  ;;  %v1202_v15 = vld [vmem:[#allocation4 + $0xf68] sm:$0xff] }
 0x215   :  { %4116 = vmatpush1.bf16.msra.mxu1 %v5670_v16  ;;  %4076 = vmatprep.subr.bf16.mxu0 %v5535_v18  ;;  %v5622_v16 = vcombine.low %v1078_v52, %v1082_v3  ;;  %v5750_v18 = vcombine.low %v1206_v4, %v1210_v5  ;;  %v5743_v53 = vcombine.high %v1198_v13, %v1202_v15  ;;  %v1046_v32 = vld [vmem:[#allocation4 + $0xa88] sm:$0xff] }
 0x216   :  { %4117 = vmatprep.subr.bf16.mxu1 %v5663_v19  ;;  %v5615_v19 = vcombine.high %v1070_v10, %v1074_v12  ;;  %v1050_v40 = vld [vmem:[#allocation4 + $0xaa8] sm:$0xff] }
 0x217   :  { %v1174_v41 = vld [vmem:[#allocation4 + $0xe88] sm:$0xff] }
 0x218   :  { %4077 = vmatpush1.bf16.msra.mxu0 %v5534_v58  ;;  %v1194_v58 = vld [vmem:[#allocation4 + $0xf28] sm:$0xff] }
 0x219   :  { %4118 = vmatpush1.bf16.msra.mxu1 %v5662_v59  ;;  %4078 = vmatprep.subr.bf16.mxu0 %v5527_v20  ;;  %v5614_v59 = vcombine.low %v1070_v10, %v1074_v12  ;;  %v5742_v20 = vcombine.low %v1198_v13, %v1202_v15  ;;  %v5735_v22 = vcombine.high %v1190_v56, %v1194_v58  ;;  %v1038_v34 = vld [vmem:[#allocation4 + $0xa48] sm:$0xff]  ;;  %v767_v12 = vld [vmem:[#allocation4 + $0x1d0] sm:$0xff] }
 0x21a   :  { %4119 = vmatprep.subr.bf16.mxu1 %v5655_v21  ;;  %v5607_v21 = vcombine.high %v1062_v0, %v1066_v54  ;;  %v1042_v48 = vld [vmem:[#allocation4 + $0xa68] sm:$0xff]  ;;  %v771_v13 = vld [vmem:[#allocation4 + $0x1f0] sm:$0xff] }
 0x21b   :  { %v1166_v49 = vld [vmem:[#allocation4 + $0xe48] sm:$0xff]  ;;  %v895_v15 = vld [vmem:[#allocation4 + $0x5d0] sm:$0xff] }
 0x21c   :  { %4079 = vmatpush1.bf16.msra.mxu0 %v5526_v36  ;;  %v1186_v36 = vld [vmem:[#allocation4 + $0xee8] sm:$0xff] }
 0x21d   :  { %4120 = vmatpush1.bf16.msra.mxu1 %v5654_v37  ;;  %4080 = vmatprep.subr.bf16.mxu0 %v5519_v17  ;;  %v5606_v37 = vcombine.low %v1062_v0, %v1066_v54  ;;  %v5734_v17 = vcombine.low %v1190_v56, %v1194_v58  ;;  %v5727_v39 = vcombine.high %v1182_v27, %v1186_v36  ;;  %v1030_v3 = vld [vmem:[#allocation4 + $0xa08] sm:$0xff]  ;;  %v759_v56 = vld [vmem:[#allocation4 + $0x190] sm:$0xff] }
 0x21e   :  { %4121 = vmatprep.subr.bf16.mxu1 %v5647_v38  ;;  %v5599_v38 = vcombine.high %v1054_v25, %v1058_v26  ;;  %v1034_v4 = vld [vmem:[#allocation4 + $0xa28] sm:$0xff]  ;;  %v763_v58 = vld [vmem:[#allocation4 + $0x1b0] sm:$0xff] }
 0x21f   :  { %v1158_v5 = vld [vmem:[#allocation4 + $0xe08] sm:$0xff] }
 0x220   :  { %4081 = vmatpush1.bf16.msra.mxu0 %v5518_v45  ;;  %v1178_v45 = vld [vmem:[#allocation4 + $0xea8] sm:$0xff] }
 0x221   :  { %4122 = vmatpush1.bf16.msra.mxu1 %v5646_v43  ;;  %4082 = vmatprep.subr.bf16.mxu0 %v5511_v44  ;;  %v5598_v43 = vcombine.low %v1054_v25, %v1058_v26  ;;  %v5726_v44 = vcombine.low %v1182_v27, %v1186_v36  ;;  %v5719_v31 = vcombine.high %v1174_v41, %v1178_v45  ;;  %v6283_v0 = vld [vmem:[#allocation7 + $0x8] sm:$0xff]  ;;  %v751_v36 = vld [vmem:[#allocation4 + $0x150] sm:$0xff] }
 0x222   :  { %4123 = vmatprep.subr.bf16.mxu1 %v5639_v47  ;;  %v5591_v47 = vcombine.high %v1046_v32, %v1050_v40  ;;  %v1229_v26 = vrot.slane %v6283_v0, %v175_v33  ;;  %v5305_v27 = vcombine.high %v759_v56, %v763_v58 }
 0x224   :  { %4083 = vmatpush1.bf16.msra.mxu0 %v5510_v60  ;;  %v1170_v60 = vld [vmem:[#allocation4 + $0xe68] sm:$0xff] }
 0x225   :  { %4124 = vmatpush1.bf16.msra.mxu1 %v5638_v50  ;;  %4084 = vmatprep.subr.bf16.mxu0 %v5631_v61  ;;  %v5590_v50 = vcombine.low %v1046_v32, %v1050_v40  ;;  %v5718_v61 = vcombine.low %v1174_v41, %v1178_v45  ;;  %v5711_v52 = vcombine.high %v1166_v49, %v1170_v60  ;;  %v879_v32 = vld [vmem:[#allocation4 + $0x550] sm:$0xff] }
 0x226   :  { %4125 = vmatprep.subr.bf16.mxu1 %v5759_v51  ;;  %v5583_v51 = vcombine.high %v1038_v34, %v1042_v48  ;;  %v5304_v41 = vcombine.low %v759_v56, %v763_v58  ;;  %v855_v56 = vld [vmem:[#allocation4 + $0x490] sm:$0xff] }
 0x227   :  { %v859_v58 = vld [vmem:[#allocation4 + $0x4b0] sm:$0xff] }
 0x228   :  { %4085 = vmatpush2.bf16.msra.mxu0 %v5630_v6  ;;  %v1162_v6 = vld [vmem:[#allocation4 + $0xe28] sm:$0xff] }
 0x229   :  { %4126 = vmatpush2.bf16.msra.mxu1 %v5758_v7  ;;  %4086 = vmatprep.subr.bf16.mxu0 %v5623_v8  ;;  %v5582_v7 = vcombine.low %v1038_v34, %v1042_v48  ;;  %v5710_v8 = vcombine.low %v1166_v49, %v1170_v60  ;;  %v5703_v10 = vcombine.high %v1158_v5, %v1162_v6  ;;  %v743_v48 = vld [vmem:[#allocation4 + $0x110] sm:$0xff] }
 0x22a   :  { %4127 = vmatprep.subr.bf16.mxu1 %v5751_v9  ;;  %v5575_v9 = vcombine.high %v1030_v3, %v1034_v4  ;;  %v747_v49 = vld [vmem:[#allocation4 + $0x130] sm:$0xff] }
 0x22c   :  { %4087 = vmatpush2.bf16.msra.mxu0 %v5622_v16  ;;  %v899_v16 = vld [vmem:[#allocation4 + $0x5f0] sm:$0xff] }
 0x22d   :  { %4128 = vmatpush2.bf16.msra.mxu1 %v5750_v18  ;;  %4088 = vmatprep.subr.bf16.mxu0 %v5615_v19  ;;  %v5574_v18 = vcombine.low %v1030_v3, %v1034_v4  ;;  %v5702_v19 = vcombine.low %v1158_v5, %v1162_v6  ;;  %v5441_v54 = vcombine.high %v895_v15, %v899_v16 }
 0x22e   :  { %4129 = vmatprep.subr.bf16.mxu1 %v5743_v53  ;;  %v5313_v53 = vcombine.high %v767_v12, %v771_v13  ;;  %v5440_v25 = vcombine.low %v895_v15, %v899_v16  ;;  %v5288_v15 = vcombine.low %v743_v48, %v747_v49 }
 0x230   :  { %4089 = vmatpush2.bf16.msra.mxu0 %v5614_v59  ;;  %v5312_v59 = vcombine.low %v767_v12, %v771_v13  ;;  %v863_v12 = vld [vmem:[#allocation4 + $0x4d0] sm:$0xff] }
 0x231   :  { %4130 = vmatpush2.bf16.msra.mxu1 %v5742_v20  ;;  %4090 = vmatprep.subr.bf16.mxu0 %v5607_v21  ;;  %v1225_v20 = vrot.slane %v6283_v0, %v171_v29  ;;  %v887_v21 = vld [vmem:[#allocation4 + $0x590] sm:$0xff] }
 0x232   :  { %4131 = vmatprep.subr.bf16.mxu1 %v5735_v22  ;;  %v891_v22 = vld [vmem:[#allocation4 + $0x5b0] sm:$0xff] }
 0x233   :  { %v883_v29 = vld [vmem:[#allocation4 + $0x570] sm:$0xff] }
 0x234   :  { %4091 = vmatpush2.bf16.msra.mxu0 %v5606_v37  ;;  %v755_v37 = vld [vmem:[#allocation4 + $0x170] sm:$0xff]  ;;  %v5425_v34 = vcombine.high %v879_v32, %v883_v29  ;;  %v5424_v6 = vcombine.low %v879_v32, %v883_v29 }
 0x235   :  { %4132 = vmatpush2.bf16.msra.mxu1 %v5734_v17  ;;  %4092 = vmatprep.subr.bf16.mxu0 %v5599_v38  ;;  %v5296_v3 = vcombine.low %v751_v36, %v755_v37  ;;  %v867_v13 = vld [vmem:[#allocation4 + $0x4f0] sm:$0xff] }
 0x236   :  { %4133 = vmatprep.subr.bf16.mxu1 %v5727_v39  ;;  %v5433_v39 = vcombine.high %v887_v21, %v891_v22  ;;  %v711_v32 = vld [vmem:[#allocation4 + $0x10] sm:$0xff] }
 0x237   :  { %v715_v29 = vld [vmem:[#allocation4 + $0x30] sm:$0xff] }
 0x238   :  { %4093 = vmatpush2.bf16.msra.mxu0 %v5598_v43  ;;  %v5432_v43 = vcombine.low %v887_v21, %v891_v22  ;;  %v5401_v22 = vcombine.high %v855_v56, %v859_v58 }
 0x239   :  { %4134 = vmatpush2.bf16.msra.mxu1 %v5726_v44  ;;  %4094 = vmatprep.subr.bf16.mxu0 %v5591_v47  ;;  %v5297_v44 = vcombine.high %v751_v36, %v755_v37  ;;  %v851_v36 = vld [vmem:[#allocation4 + $0x470] sm:$0xff] }
 0x23a   :  { %4135 = vmatprep.subr.bf16.mxu1 %v5719_v31 }
 0x23c   :  { %4095 = vmatpush2.bf16.msra.mxu0 %v5590_v50 }
 0x23d   :  { %4136 = vmatpush2.bf16.msra.mxu1 %v5718_v61  ;;  %4096 = vmatprep.subr.bf16.mxu0 %v5583_v51  ;;  %v871_v61 = vld [vmem:[#allocation4 + $0x510] sm:$0xff] }
 0x23e   :  { %4137 = vmatprep.subr.bf16.mxu1 %v5711_v52  ;;  %v875_v51 = vld [vmem:[#allocation4 + $0x530] sm:$0xff] }
 0x23f   :  { %v5416_v16 = vcombine.low %v871_v61, %v875_v51 }
 0x240   :  { %4097 = vmatpush2.bf16.msra.mxu0 %v5582_v7  ;;  %v5289_v7 = vcombine.high %v743_v48, %v747_v49  ;;  %v959_v48 = vld [vmem:[#allocation4 + $0x7d0] sm:$0xff] }
 0x241   :  { %4138 = vmatpush2.bf16.msra.mxu1 %v5710_v8  ;;  %4098 = vmatprep.subr.bf16.mxu0 %v5575_v9  ;;  %v5417_v8 = vcombine.high %v871_v61, %v875_v51  ;;  %v735_v9 = vld [vmem:[#allocation4 + $0xd0] sm:$0xff] }
 0x242   :  { %4139 = vmatprep.subr.bf16.mxu1 %v5703_v10  ;;  %v739_v10 = vld [vmem:[#allocation4 + $0xf0] sm:$0xff] }
 0x243   :  { %v963_v49 = vld [vmem:[#allocation4 + $0x7f0] sm:$0xff] }
 0x244   :  { %4099 = vmatpush2.bf16.msra.mxu0 %v5574_v18  ;;  %v5281_v18 = vcombine.high %v735_v9, %v739_v10  ;;  %v5505_v51 = vcombine.high %v959_v48, %v963_v49 }
 0x245   :  { %4140 = vmatpush2.bf16.msra.mxu1 %v5702_v19  ;;  %4150 = vmatprep.subr.bf16.mxu0 %v5313_v53  ;;  %v5409_v19 = vcombine.high %v863_v12, %v867_v13  ;;  %v727_v53 = vld [vmem:[#allocation4 + $0x90] sm:$0xff] }
 0x246   :  { %4191 = vmatprep.subr.bf16.mxu1 %v5441_v54  ;;  %v731_v54 = vld [vmem:[#allocation4 + $0xb0] sm:$0xff] }
 0x247   :  { %4101 = vmatmul.mubr.bf16.vlgmr.msra.gmra.mxu0 %v6271_v55  ;;  %v3856_v17 = vpop.f32.mrf.mxu0  ;;  %v3897_v38 = vpop.f32.mrf.mxu1  ;;  %v5273_v21 = vcombine.high %v727_v53, %v731_v54  ;;  %v5272_v37 = vcombine.low %v727_v53, %v731_v54 }
 0x248   :  { %4142 = vmatmul.mubr.bf16.vlgmr.msra.gmra.mxu1 %v6273_v57  ;;  %v3857_v40 = vadd.f32 %v3856_v17, %v1225_v20  ;;  %4151 = vmatpush1.bf16.msra.mxu0 %v5312_v59  ;;  %v5280_v59 = vcombine.low %v735_v9, %v739_v10  ;;  %v5408_v20 = vcombine.low %v863_v12, %v867_v13  ;;  %v815_v12 = vld [vmem:[#allocation4 + $0x350] sm:$0xff] }
 0x249   :  { %4182 = vmatprep.mubr.bf16.mxu0 %v6225_v62  ;;  %4192 = vmatpush1.bf16.msra.mxu1 %v5440_v25  ;;  %v3858_v45 = vpop.f32.mrf.mxu0  ;;  %v3899_v33 = vpop.f32.mrf.mxu1  ;;  %v719_v25 = vld [vmem:[#allocation4 + $0x50] sm:$0xff]  ;;  %v5400_v17 = vcombine.low %v855_v56, %v859_v58 }
 0x24a   :  { %v6294_v47 = vadd.f32 %v3897_v38, %v3857_v40  ;;  %4223 = vmatprep.mubr.bf16.mxu1 %v6227_v63  ;;  %v3859_v31 = vadd.f32 %v3858_v45, %v1229_v26  ;;  %4152 = vmatprep.subr.bf16.mxu0 %v5305_v27  ;;  %v723_v26 = vld [vmem:[#allocation4 + $0x70] sm:$0xff] }
 0x24b   :  { %4193 = vmatprep.subr.bf16.mxu1 %v5433_v39  ;;  %v3860_v60 = vpop.f32.mrf.mxu0  ;;  %v3901_v50 = vpop.f32.mrf.mxu1  ;;  %v847_v27 = vld [vmem:[#allocation4 + $0x450] sm:$0xff]  ;;  %v5265_v38 = vcombine.high %v719_v25, %v723_v26  ;;  %v5264_v45 = vcombine.low %v719_v25, %v723_v26 }
 0x24c   :  { %v6297_v52 = vadd.f32 %v3899_v33, %v3859_v31  ;;  %4153 = vmatpush1.bf16.msra.mxu0 %v5304_v41  ;;  %v5393_v39 = vcombine.high %v847_v27, %v851_v36  ;;  %v839_v40 = vld [vmem:[#allocation4 + $0x410] sm:$0xff]  ;;  %v5392_v33 = vcombine.low %v847_v27, %v851_v36  ;;  %v5256_v60 = vcombine.low %v711_v32, %v715_v29 }
 0x24d   :  { %4194 = vmatpush1.bf16.msra.mxu1 %v5432_v43  ;;  %v3861_v4 = vpop.f32.mrf.mxu0  ;;  %v3902_v5 = vpop.f32.mrf.mxu1  ;;  %4154 = vmatprep.subr.bf16.mxu0 %v5297_v44  ;;  %v843_v41 = vld [vmem:[#allocation4 + $0x430] sm:$0xff]  ;;  %v5257_v43 = vcombine.high %v711_v32, %v715_v29 }
 0x24e   :  { %4195 = vmatprep.subr.bf16.mxu1 %v5425_v34  ;;  %v5385_v44 = vcombine.high %v839_v40, %v843_v41  ;;  %v831_v31 = vld [vmem:[#allocation4 + $0x3d0] sm:$0xff]  ;;  %v5384_v50 = vcombine.low %v839_v40, %v843_v41 }
 0x24f   :  { %v835_v34 = vld [vmem:[#allocation4 + $0x3f0] sm:$0xff] }
 0x250   :  { %4155 = vmatpush1.bf16.msra.mxu0 %v5296_v3  ;;  %v5377_v61 = vcombine.high %v831_v31, %v835_v34  ;;  %v823_v3 = vld [vmem:[#allocation4 + $0x390] sm:$0xff] }
 0x251   :  { %4196 = vmatpush1.bf16.msra.mxu1 %v5424_v6  ;;  %4156 = vmatprep.subr.bf16.mxu0 %v5289_v7  ;;  %v827_v4 = vld [vmem:[#allocation4 + $0x3b0] sm:$0xff]  ;;  %v5376_v7 = vcombine.low %v831_v31, %v835_v34 }
 0x252   :  { %4197 = vmatprep.subr.bf16.mxu1 %v5417_v8  ;;  %v951_v5 = vld [vmem:[#allocation4 + $0x790] sm:$0xff]  ;;  %v5504_v8 = vcombine.low %v959_v48, %v963_v49  ;;  %v5369_v9 = vcombine.high %v823_v3, %v827_v4 }
 0x253   :  { %v955_v6 = vld [vmem:[#allocation4 + $0x7b0] sm:$0xff] }
 0x254   :  { %4157 = vmatpush1.bf16.msra.mxu0 %v5288_v15  ;;  %v5497_v10 = vcombine.high %v951_v5, %v955_v6  ;;  %v819_v13 = vld [vmem:[#allocation4 + $0x370] sm:$0xff] }
 0x255   :  { %4198 = vmatpush1.bf16.msra.mxu1 %v5416_v16  ;;  %4158 = vmatprep.subr.bf16.mxu0 %v5281_v18  ;;  %v943_v15 = vld [vmem:[#allocation4 + $0x750] sm:$0xff]  ;;  %v5368_v18 = vcombine.low %v823_v3, %v827_v4  ;;  %v5361_v53 = vcombine.high %v815_v12, %v819_v13 }
 0x256   :  { %4199 = vmatprep.subr.bf16.mxu1 %v5409_v19  ;;  %v947_v16 = vld [vmem:[#allocation4 + $0x770] sm:$0xff]  ;;  %v5496_v19 = vcombine.low %v951_v5, %v955_v6 }
 0x257   :  { %v5489_v54 = vcombine.high %v943_v15, %v947_v16  ;;  %v807_v56 = vld [vmem:[#allocation4 + $0x310] sm:$0xff] }
 0x258   :  { %4159 = vmatpush1.bf16.msra.mxu0 %v5280_v59  ;;  %v811_v58 = vld [vmem:[#allocation4 + $0x330] sm:$0xff] }
 0x259   :  { %4200 = vmatpush1.bf16.msra.mxu1 %v5408_v20  ;;  %4160 = vmatprep.subr.bf16.mxu0 %v5273_v21  ;;  %v935_v59 = vld [vmem:[#allocation4 + $0x710] sm:$0xff]  ;;  %v5360_v21 = vcombine.low %v815_v12, %v819_v13  ;;  %v5353_v25 = vcombine.high %v807_v56, %v811_v58 }
 0x25a   :  { %4201 = vmatprep.subr.bf16.mxu1 %v5401_v22  ;;  %v939_v20 = vld [vmem:[#allocation4 + $0x730] sm:$0xff]  ;;  %v5488_v22 = vcombine.low %v943_v15, %v947_v16 }
 0x25b   :  { %v5481_v26 = vcombine.high %v935_v59, %v939_v20  ;;  %v799_v27 = vld [vmem:[#allocation4 + $0x2d0] sm:$0xff] }
 0x25c   :  { %4161 = vmatpush1.bf16.msra.mxu0 %v5272_v37  ;;  %v803_v36 = vld [vmem:[#allocation4 + $0x2f0] sm:$0xff] }
 0x25d   :  { %4202 = vmatpush1.bf16.msra.mxu1 %v5400_v17  ;;  %4162 = vmatprep.subr.bf16.mxu0 %v5265_v38  ;;  %v927_v37 = vld [vmem:[#allocation4 + $0x6d0] sm:$0xff]  ;;  %v5352_v38 = vcombine.low %v807_v56, %v811_v58  ;;  %v5345_v32 = vcombine.high %v799_v27, %v803_v36 }
 0x25e   :  { %4203 = vmatprep.subr.bf16.mxu1 %v5393_v39  ;;  %v931_v17 = vld [vmem:[#allocation4 + $0x6f0] sm:$0xff]  ;;  %v5480_v39 = vcombine.low %v935_v59, %v939_v20 }
 0x25f   :  { %v5473_v29 = vcombine.high %v927_v37, %v931_v17  ;;  %v791_v40 = vld [vmem:[#allocation4 + $0x290] sm:$0xff] }
 0x260   :  { %4163 = vmatpush1.bf16.msra.mxu0 %v5264_v45  ;;  %v795_v41 = vld [vmem:[#allocation4 + $0x2b0] sm:$0xff] }
 0x261   :  { %4204 = vmatpush1.bf16.msra.mxu1 %v5392_v33  ;;  %4164 = vmatprep.subr.bf16.mxu0 %v5257_v43  ;;  %v919_v45 = vld [vmem:[#allocation4 + $0x690] sm:$0xff]  ;;  %v5344_v43 = vcombine.low %v799_v27, %v803_v36  ;;  %v5337_v31 = vcombine.high %v791_v40, %v795_v41 }
 0x262   :  { %4205 = vmatprep.subr.bf16.mxu1 %v5385_v44  ;;  %v923_v33 = vld [vmem:[#allocation4 + $0x6b0] sm:$0xff]  ;;  %v5472_v44 = vcombine.low %v927_v37, %v931_v17 }
 0x263   :  { %v5465_v34 = vcombine.high %v919_v45, %v923_v33  ;;  %v783_v48 = vld [vmem:[#allocation4 + $0x250] sm:$0xff] }
 0x264   :  { %4165 = vmatpush1.bf16.msra.mxu0 %v5256_v60  ;;  %v787_v49 = vld [vmem:[#allocation4 + $0x270] sm:$0xff] }
 0x265   :  { %4206 = vmatpush1.bf16.msra.mxu1 %v5384_v50  ;;  %4166 = vmatprep.subr.bf16.mxu0 %v5377_v61  ;;  %v911_v60 = vld [vmem:[#allocation4 + $0x650] sm:$0xff]  ;;  %v5336_v61 = vcombine.low %v791_v40, %v795_v41  ;;  %v5329_v3 = vcombine.high %v783_v48, %v787_v49 }
 0x266   :  { %4207 = vmatprep.subr.bf16.mxu1 %v5505_v51  ;;  %v915_v50 = vld [vmem:[#allocation4 + $0x670] sm:$0xff]  ;;  %v5464_v51 = vcombine.low %v919_v45, %v923_v33 }
 0x267   :  { %v5457_v4 = vcombine.high %v911_v60, %v915_v50  ;;  %v775_v5 = vld [vmem:[#allocation4 + $0x210] sm:$0xff] }
 0x268   :  { %4167 = vmatpush2.bf16.msra.mxu0 %v5376_v7  ;;  %v779_v6 = vld [vmem:[#allocation4 + $0x230] sm:$0xff] }
 0x269   :  { %4208 = vmatpush2.bf16.msra.mxu1 %v5504_v8  ;;  %4168 = vmatprep.subr.bf16.mxu0 %v5369_v9  ;;  %v903_v7 = vld [vmem:[#allocation4 + $0x610] sm:$0xff]  ;;  %v5328_v9 = vcombine.low %v783_v48, %v787_v49  ;;  %v5321_v12 = vcombine.high %v775_v5, %v779_v6 }
 0x26a   :  { %4209 = vmatprep.subr.bf16.mxu1 %v5497_v10  ;;  %v907_v8 = vld [vmem:[#allocation4 + $0x630] sm:$0xff]  ;;  %v5456_v10 = vcombine.low %v911_v60, %v915_v50 }
 0x26b   :  { %v5449_v13 = vcombine.high %v903_v7, %v907_v8  ;;  %v1023_v15 = vld [vmem:[#allocation4 + $0x9d0] sm:$0xff] }
 0x26c   :  { %4169 = vmatpush2.bf16.msra.mxu0 %v5368_v18  ;;  %v1027_v16 = vld [vmem:[#allocation4 + $0x9f0] sm:$0xff] }
 0x26d   :  { %4210 = vmatpush2.bf16.msra.mxu1 %v5496_v19  ;;  %4170 = vmatprep.subr.bf16.mxu0 %v5361_v53  ;;  %v1151_v18 = vld [vmem:[#allocation4 + $0xdd0] sm:$0xff]  ;;  %v5320_v53 = vcombine.low %v775_v5, %v779_v6  ;;  %v5569_v56 = vcombine.high %v1023_v15, %v1027_v16 }
 0x26e   :  { %4211 = vmatprep.subr.bf16.mxu1 %v5489_v54  ;;  %v1155_v19 = vld [vmem:[#allocation4 + $0xdf0] sm:$0xff]  ;;  %v5448_v54 = vcombine.low %v903_v7, %v907_v8 }
 0x26f   :  { %v5697_v58 = vcombine.high %v1151_v18, %v1155_v19  ;;  %v1015_v59 = vld [vmem:[#allocation4 + $0x990] sm:$0xff] }
 0x270   :  { %4171 = vmatpush2.bf16.msra.mxu0 %v5360_v21  ;;  %v1019_v20 = vld [vmem:[#allocation4 + $0x9b0] sm:$0xff]  ;;  %v5568_v21 = vcombine.low %v1023_v15, %v1027_v16 }
 0x271   :  { %4212 = vmatpush2.bf16.msra.mxu1 %v5488_v22  ;;  %4172 = vmatprep.subr.bf16.mxu0 %v5353_v25  ;;  %v1143_v22 = vld [vmem:[#allocation4 + $0xd90] sm:$0xff]  ;;  %v5561_v27 = vcombine.high %v1015_v59, %v1019_v20  ;;  %v5560_v41 = vcombine.low %v1015_v59, %v1019_v20 }
 0x272   :  { %4213 = vmatprep.subr.bf16.mxu1 %v5481_v26  ;;  %v1147_v25 = vld [vmem:[#allocation4 + $0xdb0] sm:$0xff]  ;;  %v5696_v26 = vcombine.low %v1151_v18, %v1155_v19 }
 0x273   :  { %v1007_v36 = vld [vmem:[#allocation4 + $0x950] sm:$0xff] }
 0x274   :  { %4173 = vmatpush2.bf16.msra.mxu0 %v5352_v38  ;;  %v1011_v37 = vld [vmem:[#allocation4 + $0x970] sm:$0xff] }
 0x275   :  { %4214 = vmatpush2.bf16.msra.mxu1 %v5480_v39  ;;  %4174 = vmatprep.subr.bf16.mxu0 %v5345_v32  ;;  %v5689_v39 = vcombine.high %v1143_v22, %v1147_v25  ;;  %v1135_v32 = vld [vmem:[#allocation4 + $0xd50] sm:$0xff] }
 0x276   :  { %4215 = vmatprep.subr.bf16.mxu1 %v5473_v29  ;;  %v1139_v29 = vld [vmem:[#allocation4 + $0xd70] sm:$0xff] }
 0x277   :  { %v5681_v48 = vcombine.high %v1135_v32, %v1139_v29  ;;  %v1003_v49 = vld [vmem:[#allocation4 + $0x930] sm:$0xff]  ;;  %v5680_v7 = vcombine.low %v1135_v32, %v1139_v29 }
 0x278   :  { %4175 = vmatpush2.bf16.msra.mxu0 %v5344_v43  ;;  %v5688_v43 = vcombine.low %v1143_v22, %v1147_v25  ;;  %v975_v25 = vld [vmem:[#allocation4 + $0x850] sm:$0xff] }
 0x279   :  { %4216 = vmatpush2.bf16.msra.mxu1 %v5472_v44  ;;  %4176 = vmatprep.subr.bf16.mxu0 %v5337_v31  ;;  %v5553_v44 = vcombine.high %v1007_v36, %v1011_v37  ;;  %v967_v32 = vld [vmem:[#allocation4 + $0x810] sm:$0xff] }
 0x27a   :  { %4217 = vmatprep.subr.bf16.mxu1 %v5465_v34  ;;  %v971_v29 = vld [vmem:[#allocation4 + $0x830] sm:$0xff] }
 0x27c   :  { %4177 = vmatpush2.bf16.msra.mxu0 %v5336_v61  ;;  %v1127_v61 = vld [vmem:[#allocation4 + $0xd10] sm:$0xff] }
 0x27d   :  { %4218 = vmatpush2.bf16.msra.mxu1 %v5464_v51  ;;  %4178 = vmatprep.subr.bf16.mxu0 %v5329_v3  ;;  %v1131_v51 = vld [vmem:[#allocation4 + $0xd30] sm:$0xff] }
 0x27e   :  { %4219 = vmatprep.subr.bf16.mxu1 %v5457_v4  ;;  %v5552_v4 = vcombine.low %v1007_v36, %v1011_v37  ;;  %v5672_v16 = vcombine.low %v1127_v61, %v1131_v51  ;;  %v1107_v36 = vld [vmem:[#allocation4 + $0xc70] sm:$0xff] }
 0x280   :  { %4179 = vmatpush2.bf16.msra.mxu0 %v5328_v9  ;;  %v991_v9 = vld [vmem:[#allocation4 + $0x8d0] sm:$0xff] }
 0x281   :  { %4220 = vmatpush2.bf16.msra.mxu1 %v5456_v10  ;;  %4180 = vmatprep.subr.bf16.mxu0 %v5321_v12  ;;  %v995_v10 = vld [vmem:[#allocation4 + $0x8f0] sm:$0xff] }
 0x282   :  { %4221 = vmatprep.subr.bf16.mxu1 %v5449_v13  ;;  %v1119_v12 = vld [vmem:[#allocation4 + $0xcd0] sm:$0xff]  ;;  %v5537_v18 = vcombine.high %v991_v9, %v995_v10  ;;  %v5536_v59 = vcombine.low %v991_v9, %v995_v10 }
 0x283   :  { %v1123_v13 = vld [vmem:[#allocation4 + $0xcf0] sm:$0xff] }
 0x284   :  { %4181 = vmatpush2.bf16.msra.mxu0 %v5320_v53  ;;  %v5665_v19 = vcombine.high %v1119_v12, %v1123_v13  ;;  %v983_v53 = vld [vmem:[#allocation4 + $0x890] sm:$0xff]  ;;  %v5664_v20 = vcombine.low %v1119_v12, %v1123_v13 }
 0x285   :  { %4222 = vmatpush2.bf16.msra.mxu1 %v5448_v54  ;;  %4232 = vmatprep.subr.bf16.mxu0 %v5569_v56  ;;  %v987_v54 = vld [vmem:[#allocation4 + $0x8b0] sm:$0xff] }
 0x286   :  { %4273 = vmatprep.subr.bf16.mxu1 %v5697_v58  ;;  %v1111_v56 = vld [vmem:[#allocation4 + $0xc90] sm:$0xff]  ;;  %v5528_v37 = vcombine.low %v983_v53, %v987_v54 }
 0x287   :  { %v3938_v17 = vpop.f32.mrf.mxu0  ;;  %v3979_v38 = vpop.f32.mrf.mxu1  ;;  %4183 = vmatmul.mubr.bf16.vlgmr.msra.gmra.mxu0 %v6229_v1  ;;  %v1115_v58 = vld [vmem:[#allocation4 + $0xcb0] sm:$0xff] }
 0x288   :  { %v3939_v40 = vadd.f32 %v3938_v17, %v6294_v47  ;;  %4224 = vmatmul.mubr.bf16.vlgmr.msra.gmra.mxu1 %v6231_v2  ;;  %4233 = vmatpush1.bf16.msra.mxu0 %v5568_v21  ;;  %v999_v47 = vld [vmem:[#allocation4 + $0x910] sm:$0xff]  ;;  %v5529_v21 = vcombine.high %v983_v53, %v987_v54  ;;  %v5657_v22 = vcombine.high %v1111_v56, %v1115_v58 }
 0x289   :  { %4264 = vmatprep.mubr.bf16.mxu0 %v6255_v23  ;;  %4274 = vmatpush1.bf16.msra.mxu1 %v5696_v26  ;;  %v3940_v45 = vpop.f32.mrf.mxu0  ;;  %v3981_v33 = vpop.f32.mrf.mxu1  ;;  %v5545_v8 = vcombine.high %v999_v47, %v1003_v49  ;;  %v5544_v15 = vcombine.low %v999_v47, %v1003_v49  ;;  %v979_v26 = vld [vmem:[#allocation4 + $0x870] sm:$0xff]  ;;  %v5656_v17 = vcombine.low %v1111_v56, %v1115_v58 }
 0x28a   :  { %v6303_v31 = vadd.f32 %v3979_v38, %v3939_v40  ;;  %4305 = vmatprep.mubr.bf16.mxu1 %v6257_v24  ;;  %v3941_v34 = vadd.f32 %v3940_v45, %v6297_v52  ;;  %4234 = vmatprep.subr.bf16.mxu0 %v5561_v27  ;;  %v5673_v52 = vcombine.high %v1127_v61, %v1131_v51  ;;  %v1103_v27 = vld [vmem:[#allocation4 + $0xc50] sm:$0xff] }
 0x28b   :  { %v3942_v60 = vpop.f32.mrf.mxu0  ;;  %v3983_v50 = vpop.f32.mrf.mxu1  ;;  %4275 = vmatprep.subr.bf16.mxu1 %v5689_v39  ;;  %v5521_v38 = vcombine.high %v975_v25, %v979_v26  ;;  %v5649_v39 = vcombine.high %v1103_v27, %v1107_v36  ;;  %v1095_v40 = vld [vmem:[#allocation4 + $0xc10] sm:$0xff]  ;;  %v5520_v45 = vcombine.low %v975_v25, %v979_v26 }
 0x28c   :  { %v6307_v3 = vadd.f32 %v3981_v33, %v3941_v34  ;;  %4235 = vmatpush1.bf16.msra.mxu0 %v5560_v41  ;;  %v1099_v41 = vld [vmem:[#allocation4 + $0xc30] sm:$0xff]  ;;  %v5648_v33 = vcombine.low %v1103_v27, %v1107_v36  ;;  %v5512_v60 = vcombine.low %v967_v32, %v971_v29 }
 0x28d   :  { %4276 = vmatpush1.bf16.msra.mxu1 %v5688_v43  ;;  %v3943_v5 = vpop.f32.mrf.mxu0  ;;  %v3984_v6 = vpop.f32.mrf.mxu1  ;;  %4236 = vmatprep.subr.bf16.mxu0 %v5553_v44  ;;  %v5513_v43 = vcombine.high %v967_v32, %v971_v29  ;;  %v5641_v44 = vcombine.high %v1095_v40, %v1099_v41  ;;  %v1087_v34 = vld [vmem:[#allocation4 + $0xbd0] sm:$0xff]  ;;  %v5640_v50 = vcombine.low %v1095_v40, %v1099_v41 }
 0x28e   :  { %4277 = vmatprep.subr.bf16.mxu1 %v5681_v48  ;;  %v1091_v48 = vld [vmem:[#allocation4 + $0xbf0] sm:$0xff] }
 0x28f   :  { %v1215_v47 = vld [vmem:[#allocation4 + $0xfd0] sm:$0xff]  ;;  %v5633_v61 = vcombine.high %v1087_v34, %v1091_v48 }
 0x290   :  { %4237 = vmatpush1.bf16.msra.mxu0 %v5552_v4  ;;  %v1219_v49 = vld [vmem:[#allocation4 + $0xff0] sm:$0xff] }
 0x291   :  { %4278 = vmatpush1.bf16.msra.mxu1 %v5680_v7  ;;  %4238 = vmatprep.subr.bf16.mxu0 %v5545_v8  ;;  %v5761_v51 = vcombine.high %v1215_v47, %v1219_v49  ;;  %v1079_v4 = vld [vmem:[#allocation4 + $0xb90] sm:$0xff]  ;;  %v5632_v8 = vcombine.low %v1087_v34, %v1091_v48 }
 0x292   :  { %4279 = vmatprep.subr.bf16.mxu1 %v5673_v52  ;;  %v1083_v5 = vld [vmem:[#allocation4 + $0xbb0] sm:$0xff]  ;;  %v5760_v52 = vcombine.low %v1215_v47, %v1219_v49 }
 0x293   :  { %v1207_v6 = vld [vmem:[#allocation4 + $0xf90] sm:$0xff]  ;;  %v5625_v9 = vcombine.high %v1079_v4, %v1083_v5 }
 0x294   :  { %4239 = vmatpush1.bf16.msra.mxu0 %v5544_v15  ;;  %v1211_v7 = vld [vmem:[#allocation4 + $0xfb0] sm:$0xff] }
 0x295   :  { %4280 = vmatpush1.bf16.msra.mxu1 %v5672_v16  ;;  %4240 = vmatprep.subr.bf16.mxu0 %v5537_v18  ;;  %v5753_v10 = vcombine.high %v1207_v6, %v1211_v7  ;;  %v1071_v12 = vld [vmem:[#allocation4 + $0xb50] sm:$0xff]  ;;  %v5624_v18 = vcombine.low %v1079_v4, %v1083_v5 }
 0x296   :  { %4281 = vmatprep.subr.bf16.mxu1 %v5665_v19  ;;  %v1075_v13 = vld [vmem:[#allocation4 + $0xb70] sm:$0xff]  ;;  %v5752_v19 = vcombine.low %v1207_v6, %v1211_v7 }
 0x297   :  { %v1199_v15 = vld [vmem:[#allocation4 + $0xf50] sm:$0xff]  ;;  %v5617_v53 = vcombine.high %v1071_v12, %v1075_v13 }
 0x298   :  { %4241 = vmatpush1.bf16.msra.mxu0 %v5536_v59  ;;  %v1203_v16 = vld [vmem:[#allocation4 + $0xf70] sm:$0xff] }
 0x299   :  { %4282 = vmatpush1.bf16.msra.mxu1 %v5664_v20  ;;  %4242 = vmatprep.subr.bf16.mxu0 %v5529_v21  ;;  %v5745_v54 = vcombine.high %v1199_v15, %v1203_v16  ;;  %v1063_v56 = vld [vmem:[#allocation4 + $0xb10] sm:$0xff]  ;;  %v5616_v21 = vcombine.low %v1071_v12, %v1075_v13 }
 0x29a   :  { %4283 = vmatprep.subr.bf16.mxu1 %v5657_v22  ;;  %v1067_v58 = vld [vmem:[#allocation4 + $0xb30] sm:$0xff]  ;;  %v5744_v22 = vcombine.low %v1199_v15, %v1203_v16  ;;  %v768_v15 = vld [vmem:[#allocation4 + $0x1d8] sm:$0xff] }
 0x29b   :  { %v1191_v59 = vld [vmem:[#allocation4 + $0xf10] sm:$0xff]  ;;  %v5609_v25 = vcombine.high %v1063_v56, %v1067_v58  ;;  %v772_v16 = vld [vmem:[#allocation4 + $0x1f8] sm:$0xff] }
 0x29c   :  { %4243 = vmatpush1.bf16.msra.mxu0 %v5528_v37  ;;  %v1195_v20 = vld [vmem:[#allocation4 + $0xf30] sm:$0xff] }
 0x29d   :  { %4284 = vmatpush1.bf16.msra.mxu1 %v5656_v17  ;;  %4244 = vmatprep.subr.bf16.mxu0 %v5521_v38  ;;  %v5737_v26 = vcombine.high %v1191_v59, %v1195_v20  ;;  %v1055_v27 = vld [vmem:[#allocation4 + $0xad0] sm:$0xff]  ;;  %v5608_v38 = vcombine.low %v1063_v56, %v1067_v58  ;;  %v5315_v56 = vcombine.high %v768_v15, %v772_v16 }
 0x29e   :  { %4285 = vmatprep.subr.bf16.mxu1 %v5649_v39  ;;  %v1059_v36 = vld [vmem:[#allocation4 + $0xaf0] sm:$0xff]  ;;  %v5736_v39 = vcombine.low %v1191_v59, %v1195_v20  ;;  %v760_v59 = vld [vmem:[#allocation4 + $0x198] sm:$0xff] }
 0x29f   :  { %v1183_v37 = vld [vmem:[#allocation4 + $0xed0] sm:$0xff]  ;;  %v5601_v32 = vcombine.high %v1055_v27, %v1059_v36  ;;  %v764_v20 = vld [vmem:[#allocation4 + $0x1b8] sm:$0xff] }
 0x2a0   :  { %4245 = vmatpush1.bf16.msra.mxu0 %v5520_v45  ;;  %v1187_v17 = vld [vmem:[#allocation4 + $0xef0] sm:$0xff] }
 0x2a1   :  { %4286 = vmatpush1.bf16.msra.mxu1 %v5648_v33  ;;  %4246 = vmatprep.subr.bf16.mxu0 %v5513_v43  ;;  %v5729_v29 = vcombine.high %v1183_v37, %v1187_v17  ;;  %v1047_v40 = vld [vmem:[#allocation4 + $0xa90] sm:$0xff]  ;;  %v5600_v43 = vcombine.low %v1055_v27, %v1059_v36  ;;  %v1237_v36 = vrot.slane %v6283_v0, %v183_v35 }
 0x2a2   :  { %4287 = vmatprep.subr.bf16.mxu1 %v5641_v44  ;;  %v1051_v41 = vld [vmem:[#allocation4 + $0xab0] sm:$0xff]  ;;  %v5728_v44 = vcombine.low %v1183_v37, %v1187_v17  ;;  %v5307_v37 = vcombine.high %v760_v59, %v764_v20  ;;  %v752_v17 = vld [vmem:[#allocation4 + $0x158] sm:$0xff] }
 0x2a3   :  { %v1175_v45 = vld [vmem:[#allocation4 + $0xe90] sm:$0xff]  ;;  %v5593_v34 = vcombine.high %v1047_v40, %v1051_v41 }
 0x2a4   :  { %4247 = vmatpush1.bf16.msra.mxu0 %v5512_v60  ;;  %v1179_v33 = vld [vmem:[#allocation4 + $0xeb0] sm:$0xff] }
 0x2a5   :  { %4288 = vmatpush1.bf16.msra.mxu1 %v5640_v50  ;;  %4248 = vmatprep.subr.bf16.mxu0 %v5633_v61  ;;  %v5721_v48 = vcombine.high %v1175_v45, %v1179_v33  ;;  %v1039_v47 = vld [vmem:[#allocation4 + $0xa50] sm:$0xff]  ;;  %v5592_v61 = vcombine.low %v1047_v40, %v1051_v41 }
 0x2a6   :  { %4289 = vmatprep.subr.bf16.mxu1 %v5761_v51  ;;  %v1043_v49 = vld [vmem:[#allocation4 + $0xa70] sm:$0xff]  ;;  %v5720_v51 = vcombine.low %v1175_v45, %v1179_v33  ;;  %v5306_v45 = vcombine.low %v760_v59, %v764_v20 }
 0x2a7   :  { %v1167_v60 = vld [vmem:[#allocation4 + $0xe50] sm:$0xff]  ;;  %v5585_v4 = vcombine.high %v1039_v47, %v1043_v49 }
 0x2a8   :  { %4249 = vmatpush2.bf16.msra.mxu0 %v5632_v8  ;;  %v1171_v50 = vld [vmem:[#allocation4 + $0xe70] sm:$0xff] }
 0x2a9   :  { %4290 = vmatpush2.bf16.msra.mxu1 %v5760_v52  ;;  %4250 = vmatprep.subr.bf16.mxu0 %v5625_v9  ;;  %v5713_v5 = vcombine.high %v1167_v60, %v1171_v50  ;;  %v1031_v6 = vld [vmem:[#allocation4 + $0xa10] sm:$0xff]  ;;  %v5584_v9 = vcombine.low %v1039_v47, %v1043_v49  ;;  %v744_v47 = vld [vmem:[#allocation4 + $0x118] sm:$0xff] }
 0x2aa   :  { %4291 = vmatprep.subr.bf16.mxu1 %v5753_v10  ;;  %v1035_v7 = vld [vmem:[#allocation4 + $0xa30] sm:$0xff]  ;;  %v5712_v10 = vcombine.low %v1167_v60, %v1171_v50  ;;  %v748_v49 = vld [vmem:[#allocation4 + $0x138] sm:$0xff] }
 0x2ab   :  { %v1159_v8 = vld [vmem:[#allocation4 + $0xe10] sm:$0xff]  ;;  %v5577_v12 = vcombine.high %v1031_v6, %v1035_v7  ;;  %v872_v50 = vld [vmem:[#allocation4 + $0x518] sm:$0xff] }
 0x2ac   :  { %4251 = vmatpush2.bf16.msra.mxu0 %v5624_v18  ;;  %v1163_v52 = vld [vmem:[#allocation4 + $0xe30] sm:$0xff]  ;;  %v896_v18 = vld [vmem:[#allocation4 + $0x5d8] sm:$0xff] }
 0x2ad   :  { %4292 = vmatpush2.bf16.msra.mxu1 %v5752_v19  ;;  %4252 = vmatprep.subr.bf16.mxu0 %v5617_v53  ;;  %v5705_v13 = vcombine.high %v1159_v8, %v1163_v52  ;;  %v900_v19 = vld [vmem:[#allocation4 + $0x5f8] sm:$0xff]  ;;  %v5576_v53 = vcombine.low %v1031_v6, %v1035_v7 }
 0x2ae   :  { %4293 = vmatprep.subr.bf16.mxu1 %v5745_v54  ;;  %v5704_v54 = vcombine.low %v1159_v8, %v1163_v52  ;;  %v5443_v58 = vcombine.high %v896_v18, %v900_v19  ;;  %v5442_v27 = vcombine.low %v896_v18, %v900_v19  ;;  %v736_v52 = vld [vmem:[#allocation4 + $0xd8] sm:$0xff] }
 0x2af   :  { %v728_v19 = vld [vmem:[#allocation4 + $0x98] sm:$0xff] }
 0x2b0   :  { %4253 = vmatpush2.bf16.msra.mxu0 %v5616_v21  ;;  %v1233_v21 = vrot.slane %v6283_v0, %v179_v30  ;;  %v884_v30 = vld [vmem:[#allocation4 + $0x578] sm:$0xff] }
 0x2b1   :  { %4294 = vmatpush2.bf16.msra.mxu1 %v5744_v22  ;;  %4254 = vmatprep.subr.bf16.mxu0 %v5609_v25  ;;  %v5314_v22 = vcombine.low %v768_v15, %v772_v16  ;;  %v888_v25 = vld [vmem:[#allocation4 + $0x598] sm:$0xff] }
 0x2b2   :  { %4295 = vmatprep.subr.bf16.mxu1 %v5737_v26  ;;  %v892_v26 = vld [vmem:[#allocation4 + $0x5b8] sm:$0xff] }
 0x2b3   :  { %v5434_v35 = vcombine.low %v888_v25, %v892_v26 }
 0x2b4   :  { %4255 = vmatpush2.bf16.msra.mxu0 %v5608_v38  ;;  %v756_v38 = vld [vmem:[#allocation4 + $0x178] sm:$0xff] }
 0x2b5   :  { %4296 = vmatpush2.bf16.msra.mxu1 %v5736_v39  ;;  %4256 = vmatprep.subr.bf16.mxu0 %v5601_v32  ;;  %v5435_v32 = vcombine.high %v888_v25, %v892_v26  ;;  %v5299_v0 = vcombine.high %v752_v17, %v756_v38  ;;  %v724_v25 = vld [vmem:[#allocation4 + $0x78] sm:$0xff] }
 0x2b6   :  { %4297 = vmatprep.subr.bf16.mxu1 %v5729_v29  ;;  %v880_v29 = vld [vmem:[#allocation4 + $0x558] sm:$0xff] }
 0x2b7   :  { %v5426_v6 = vcombine.low %v880_v29, %v884_v30  ;;  %v848_v26 = vld [vmem:[#allocation4 + $0x458] sm:$0xff] }
 0x2b8   :  { %4257 = vmatpush2.bf16.msra.mxu0 %v5600_v43 }
 0x2b9   :  { %4298 = vmatpush2.bf16.msra.mxu1 %v5728_v44  ;;  %4258 = vmatprep.subr.bf16.mxu0 %v5593_v34 }
 0x2ba   :  { %4299 = vmatprep.subr.bf16.mxu1 %v5721_v48  ;;  %v5427_v48 = vcombine.high %v880_v29, %v884_v30  ;;  %v840_v29 = vld [vmem:[#allocation4 + $0x418] sm:$0xff] }
 0x2bb   :  { %v844_v30 = vld [vmem:[#allocation4 + $0x438] sm:$0xff] }
 0x2bc   :  { %4259 = vmatpush2.bf16.msra.mxu0 %v5592_v61  ;;  %v876_v61 = vld [vmem:[#allocation4 + $0x538] sm:$0xff] }
 0x2bd   :  { %4300 = vmatpush2.bf16.msra.mxu1 %v5720_v51  ;;  %4260 = vmatprep.subr.bf16.mxu0 %v5585_v4  ;;  %v5298_v4 = vcombine.low %v752_v17, %v756_v38  ;;  %v5419_v8 = vcombine.high %v872_v50, %v876_v61  ;;  %v5418_v15 = vcombine.low %v872_v50, %v876_v61  ;;  %v824_v50 = vld [vmem:[#allocation4 + $0x398] sm:$0xff] }
 0x2be   :  { %4301 = vmatprep.subr.bf16.mxu1 %v5713_v5  ;;  %v828_v61 = vld [vmem:[#allocation4 + $0x3b8] sm:$0xff] }
 0x2c0   :  { %4261 = vmatpush2.bf16.msra.mxu0 %v5584_v9  ;;  %v740_v9 = vld [vmem:[#allocation4 + $0xf8] sm:$0xff] }
 0x2c1   :  { %4302 = vmatpush2.bf16.msra.mxu1 %v5712_v10  ;;  %4262 = vmatprep.subr.bf16.mxu0 %v5577_v12  ;;  %v864_v10 = vld [vmem:[#allocation4 + $0x4d8] sm:$0xff]  ;;  %v5283_v16 = vcombine.high %v736_v52, %v740_v9 }
 0x2c2   :  { %4303 = vmatprep.subr.bf16.mxu1 %v5705_v13  ;;  %v868_v12 = vld [vmem:[#allocation4 + $0x4f8] sm:$0xff]  ;;  %v5290_v13 = vcombine.low %v744_v47, %v748_v49 }
 0x2c3   :  { %v5411_v18 = vcombine.high %v864_v10, %v868_v12  ;;  %v5410_v59 = vcombine.low %v864_v10, %v868_v12  ;;  %v948_v10 = vld [vmem:[#allocation4 + $0x778] sm:$0xff]  ;;  %v5370_v12 = vcombine.low %v824_v50, %v828_v61 }
 0x2c4   :  { %4263 = vmatpush2.bf16.msra.mxu0 %v5576_v53  ;;  %v732_v53 = vld [vmem:[#allocation4 + $0xb8] sm:$0xff] }
 0x2c5   :  { %4304 = vmatpush2.bf16.msra.mxu1 %v5704_v54  ;;  %4314 = vmatprep.subr.bf16.mxu0 %v5315_v56  ;;  %v856_v54 = vld [vmem:[#allocation4 + $0x498] sm:$0xff]  ;;  %v5275_v20 = vcombine.high %v728_v19, %v732_v53 }
 0x2c6   :  { %4355 = vmatprep.subr.bf16.mxu1 %v5443_v58  ;;  %v860_v56 = vld [vmem:[#allocation4 + $0x4b8] sm:$0xff]  ;;  %v5282_v58 = vcombine.low %v736_v52, %v740_v9 }
 0x2c7   :  { %v4020_v39 = vpop.f32.mrf.mxu0  ;;  %4265 = vmatmul.mubr.bf16.vlgmr.msra.gmra.mxu0 %v6271_v55  ;;  %v820_v52 = vld [vmem:[#allocation4 + $0x378] sm:$0xff] }
 0x2c8   :  { %v4021_v40 = vadd.f32 %v4020_v39, %v1233_v21  ;;  %v4061_v41 = vpop.f32.mrf.mxu1  ;;  %4306 = vmatmul.mubr.bf16.vlgmr.msra.gmra.mxu1 %v6273_v57  ;;  %4315 = vmatpush1.bf16.msra.mxu0 %v5314_v22  ;;  %v5403_v21 = vcombine.high %v856_v54, %v860_v56  ;;  %v720_v22 = vld [vmem:[#allocation4 + $0x58] sm:$0xff] }
 0x2c9   :  { %4346 = vmatprep.mubr.bf16.mxu0 %v6225_v62  ;;  %4356 = vmatpush1.bf16.msra.mxu1 %v5442_v27  ;;  %v4022_v33 = vpop.f32.mrf.mxu0  ;;  %v852_v27 = vld [vmem:[#allocation4 + $0x478] sm:$0xff]  ;;  %v5267_v17 = vcombine.high %v720_v22, %v724_v25 }
 0x2ca   :  { %v6318_v43 = vadd.f32 %v4061_v41, %v4021_v40  ;;  %4387 = vmatprep.mubr.bf16.mxu1 %v6227_v63  ;;  %v4023_v44 = vadd.f32 %v4022_v33, %v1237_v36  ;;  %v4063_v34 = vpop.f32.mrf.mxu1  ;;  %4316 = vmatprep.subr.bf16.mxu0 %v5307_v37  ;;  %v5291_v63 = vcombine.high %v744_v47, %v748_v49  ;;  %v712_v39 = vld [vmem:[#allocation4 + $0x18] sm:$0xff] }
 0x2cb   :  { %v4024_v60 = vpop.f32.mrf.mxu0  ;;  %4357 = vmatprep.subr.bf16.mxu1 %v5435_v32  ;;  %v5274_v36 = vcombine.low %v728_v19, %v732_v53  ;;  %v5402_v37 = vcombine.low %v856_v54, %v860_v56  ;;  %v5395_v38 = vcombine.high %v848_v26, %v852_v27  ;;  %v716_v32 = vld [vmem:[#allocation4 + $0x38] sm:$0xff]  ;;  %v5266_v40 = vcombine.low %v720_v22, %v724_v25 }
 0x2cc   :  { %v6321_v51 = vadd.f32 %v4063_v34, %v4023_v44  ;;  %v4065_v62 = vpop.f32.mrf.mxu1  ;;  %4317 = vmatpush1.bf16.msra.mxu0 %v5306_v45  ;;  %v5394_v41 = vcombine.low %v848_v26, %v852_v27  ;;  %v5259_v45 = vcombine.high %v712_v39, %v716_v32  ;;  %v5387_v33 = vcombine.high %v840_v29, %v844_v30  ;;  %v960_v44 = vld [vmem:[#allocation4 + $0x7d8] sm:$0xff] }
 0x2cd   :  { %4358 = vmatpush1.bf16.msra.mxu1 %v5434_v35  ;;  %v4025_v5 = vpop.f32.mrf.mxu0  ;;  %4318 = vmatprep.subr.bf16.mxu0 %v5299_v0  ;;  %v832_v35 = vld [vmem:[#allocation4 + $0x3d8] sm:$0xff]  ;;  %v5386_v47 = vcombine.low %v840_v29, %v844_v30 }
 0x2ce   :  { %v4066_v7 = vpop.f32.mrf.mxu1  ;;  %4359 = vmatprep.subr.bf16.mxu1 %v5427_v48  ;;  %v836_v0 = vld [vmem:[#allocation4 + $0x3f8] sm:$0xff]  ;;  %v5258_v48 = vcombine.low %v712_v39, %v716_v32 }
 0x2cf   :  { %v964_v34 = vld [vmem:[#allocation4 + $0x7f8] sm:$0xff]  ;;  %v5379_v49 = vcombine.high %v832_v35, %v836_v0  ;;  %v5378_v5 = vcombine.low %v832_v35, %v836_v0 }
 0x2d0   :  { %4319 = vmatpush1.bf16.msra.mxu0 %v5298_v4  ;;  %v5507_v60 = vcombine.high %v960_v44, %v964_v34  ;;  %v952_v62 = vld [vmem:[#allocation4 + $0x798] sm:$0xff] }
 0x2d1   :  { %4360 = vmatpush1.bf16.msra.mxu1 %v5426_v6  ;;  %4320 = vmatprep.subr.bf16.mxu0 %v5291_v63  ;;  %v956_v4 = vld [vmem:[#allocation4 + $0x7b8] sm:$0xff]  ;;  %v5506_v6 = vcombine.low %v960_v44, %v964_v34  ;;  %v5371_v63 = vcombine.high %v824_v50, %v828_v61 }
 0x2d2   :  { %4361 = vmatprep.subr.bf16.mxu1 %v5419_v8  ;;  %v5499_v7 = vcombine.high %v952_v62, %v956_v4  ;;  %v816_v8 = vld [vmem:[#allocation4 + $0x358] sm:$0xff] }
 0x2d3   :  { %v944_v9 = vld [vmem:[#allocation4 + $0x758] sm:$0xff]  ;;  %v5362_v56 = vcombine.low %v816_v8, %v820_v52 }
 0x2d4   :  { %4321 = vmatpush1.bf16.msra.mxu0 %v5290_v13  ;;  %v5498_v13 = vcombine.low %v952_v62, %v956_v4  ;;  %v812_v19 = vld [vmem:[#allocation4 + $0x338] sm:$0xff] }
 0x2d5   :  { %4362 = vmatpush1.bf16.msra.mxu1 %v5418_v15  ;;  %4322 = vmatprep.subr.bf16.mxu0 %v5283_v16  ;;  %v5363_v15 = vcombine.high %v816_v8, %v820_v52  ;;  %v5491_v16 = vcombine.high %v944_v9, %v948_v10  ;;  %v936_v53 = vld [vmem:[#allocation4 + $0x718] sm:$0xff] }
 0x2d6   :  { %4363 = vmatprep.subr.bf16.mxu1 %v5411_v18  ;;  %v808_v18 = vld [vmem:[#allocation4 + $0x318] sm:$0xff] }
 0x2d7   :  { %v940_v54 = vld [vmem:[#allocation4 + $0x738] sm:$0xff]  ;;  %v5354_v27 = vcombine.low %v808_v18, %v812_v19 }
 0x2d8   :  { %4323 = vmatpush1.bf16.msra.mxu0 %v5282_v58  ;;  %v5490_v58 = vcombine.low %v944_v9, %v948_v10  ;;  %v804_v22 = vld [vmem:[#allocation4 + $0x2f8] sm:$0xff] }
 0x2d9   :  { %4364 = vmatpush1.bf16.msra.mxu1 %v5410_v59  ;;  %4324 = vmatprep.subr.bf16.mxu0 %v5275_v20  ;;  %v5355_v59 = vcombine.high %v808_v18, %v812_v19  ;;  %v5483_v20 = vcombine.high %v936_v53, %v940_v54  ;;  %v928_v25 = vld [vmem:[#allocation4 + $0x6d8] sm:$0xff] }
 0x2da   :  { %4365 = vmatprep.subr.bf16.mxu1 %v5403_v21  ;;  %v800_v21 = vld [vmem:[#allocation4 + $0x2d8] sm:$0xff] }
 0x2db   :  { %v932_v26 = vld [vmem:[#allocation4 + $0x6f8] sm:$0xff]  ;;  %v5346_v30 = vcombine.low %v800_v21, %v804_v22 }
 0x2dc   :  { %4325 = vmatpush1.bf16.msra.mxu0 %v5274_v36  ;;  %v5482_v36 = vcombine.low %v936_v53, %v940_v54  ;;  %v796_v39 = vld [vmem:[#allocation4 + $0x2b8] sm:$0xff] }
 0x2dd   :  { %4366 = vmatpush1.bf16.msra.mxu1 %v5402_v37  ;;  %4326 = vmatprep.subr.bf16.mxu0 %v5267_v17  ;;  %v5347_v37 = vcombine.high %v800_v21, %v804_v22  ;;  %v5475_v17 = vcombine.high %v928_v25, %v932_v26  ;;  %v920_v32 = vld [vmem:[#allocation4 + $0x698] sm:$0xff] }
 0x2de   :  { %4367 = vmatprep.subr.bf16.mxu1 %v5395_v38  ;;  %v792_v38 = vld [vmem:[#allocation4 + $0x298] sm:$0xff] }
 0x2df   :  { %v924_v29 = vld [vmem:[#allocation4 + $0x6b8] sm:$0xff]  ;;  %v5338_v34 = vcombine.low %v792_v38, %v796_v39 }
 0x2e0   :  { %4327 = vmatpush1.bf16.msra.mxu0 %v5266_v40  ;;  %v5474_v40 = vcombine.low %v928_v25, %v932_v26  ;;  %v788_v35 = vld [vmem:[#allocation4 + $0x278] sm:$0xff] }
 0x2e1   :  { %4368 = vmatpush1.bf16.msra.mxu1 %v5394_v41  ;;  %4328 = vmatprep.subr.bf16.mxu0 %v5259_v45  ;;  %v5339_v41 = vcombine.high %v792_v38, %v796_v39  ;;  %v5467_v45 = vcombine.high %v920_v32, %v924_v29  ;;  %v912_v0 = vld [vmem:[#allocation4 + $0x658] sm:$0xff] }
 0x2e2   :  { %4369 = vmatprep.subr.bf16.mxu1 %v5387_v33  ;;  %v784_v33 = vld [vmem:[#allocation4 + $0x258] sm:$0xff] }
 0x2e3   :  { %v916_v44 = vld [vmem:[#allocation4 + $0x678] sm:$0xff]  ;;  %v5330_v4 = vcombine.low %v784_v33, %v788_v35 }
 0x2e4   :  { %4329 = vmatpush1.bf16.msra.mxu0 %v5258_v48  ;;  %v5466_v48 = vcombine.low %v920_v32, %v924_v29  ;;  %v780_v50 = vld [vmem:[#allocation4 + $0x238] sm:$0xff] }
 0x2e5   :  { %4370 = vmatpush1.bf16.msra.mxu1 %v5386_v47  ;;  %4330 = vmatprep.subr.bf16.mxu0 %v5379_v49  ;;  %v5331_v47 = vcombine.high %v784_v33, %v788_v35  ;;  %v5459_v49 = vcombine.high %v912_v0, %v916_v44  ;;  %v904_v61 = vld [vmem:[#allocation4 + $0x618] sm:$0xff] }
 0x2e6   :  { %4371 = vmatprep.subr.bf16.mxu1 %v5507_v60  ;;  %v776_v60 = vld [vmem:[#allocation4 + $0x218] sm:$0xff] }
 0x2e7   :  { %v908_v62 = vld [vmem:[#allocation4 + $0x638] sm:$0xff]  ;;  %v5322_v10 = vcombine.low %v776_v60, %v780_v50 }
 0x2e8   :  { %4331 = vmatpush2.bf16.msra.mxu0 %v5378_v5  ;;  %v5458_v5 = vcombine.low %v912_v0, %v916_v44  ;;  %v1028_v8 = vld [vmem:[#allocation4 + $0x9f8] sm:$0xff] }
 0x2e9   :  { %4372 = vmatpush2.bf16.msra.mxu1 %v5506_v6  ;;  %4332 = vmatprep.subr.bf16.mxu0 %v5371_v63  ;;  %v5323_v6 = vcombine.high %v776_v60, %v780_v50  ;;  %v5451_v63 = vcombine.high %v904_v61, %v908_v62  ;;  %v1152_v52 = vld [vmem:[#allocation4 + $0xdd8] sm:$0xff] }
 0x2ea   :  { %4373 = vmatprep.subr.bf16.mxu1 %v5499_v7  ;;  %v1024_v7 = vld [vmem:[#allocation4 + $0x9d8] sm:$0xff] }
 0x2eb   :  { %v1156_v9 = vld [vmem:[#allocation4 + $0xdf8] sm:$0xff]  ;;  %v5570_v19 = vcombine.low %v1024_v7, %v1028_v8 }
 0x2ec   :  { %4333 = vmatpush2.bf16.msra.mxu0 %v5370_v12  ;;  %v5450_v12 = vcombine.low %v904_v61, %v908_v62  ;;  %v1020_v18 = vld [vmem:[#allocation4 + $0x9b8] sm:$0xff] }
 0x2ed   :  { %4374 = vmatpush2.bf16.msra.mxu1 %v5498_v13  ;;  %4334 = vmatprep.subr.bf16.mxu0 %v5363_v15  ;;  %v5571_v13 = vcombine.high %v1024_v7, %v1028_v8  ;;  %v5699_v15 = vcombine.high %v1152_v52, %v1156_v9  ;;  %v1144_v53 = vld [vmem:[#allocation4 + $0xd98] sm:$0xff] }
 0x2ee   :  { %4375 = vmatprep.subr.bf16.mxu1 %v5491_v16  ;;  %v1016_v16 = vld [vmem:[#allocation4 + $0x998] sm:$0xff] }
 0x2ef   :  { %v1148_v54 = vld [vmem:[#allocation4 + $0xdb8] sm:$0xff] }
 0x2f0   :  { %4335 = vmatpush2.bf16.msra.mxu0 %v5362_v56  ;;  %v5698_v56 = vcombine.low %v1152_v52, %v1156_v9  ;;  %v5691_v22 = vcombine.high %v1144_v53, %v1148_v54  ;;  %v1136_v25 = vld [vmem:[#allocation4 + $0xd58] sm:$0xff]  ;;  %v5690_v38 = vcombine.low %v1144_v53, %v1148_v54 }
 0x2f1   :  { %4376 = vmatpush2.bf16.msra.mxu1 %v5490_v58  ;;  %4336 = vmatprep.subr.bf16.mxu0 %v5355_v59  ;;  %v5563_v58 = vcombine.high %v1016_v16, %v1020_v18  ;;  %v1008_v59 = vld [vmem:[#allocation4 + $0x958] sm:$0xff] }
 0x2f2   :  { %4377 = vmatprep.subr.bf16.mxu1 %v5483_v20  ;;  %v1012_v20 = vld [vmem:[#allocation4 + $0x978] sm:$0xff] }
 0x2f3   :  { %v1140_v26 = vld [vmem:[#allocation4 + $0xd78] sm:$0xff]  ;;  %v5555_v39 = vcombine.high %v1008_v59, %v1012_v20 }
 0x2f4   :  { %4337 = vmatpush2.bf16.msra.mxu0 %v5354_v27  ;;  %v1000_v29 = vld [vmem:[#allocation4 + $0x918] sm:$0xff]  ;;  %v5682_v35 = vcombine.low %v1136_v25, %v1140_v26 }
 0x2f5   :  { %4378 = vmatpush2.bf16.msra.mxu1 %v5482_v36  ;;  %4338 = vmatprep.subr.bf16.mxu0 %v5347_v37  ;;  %v5562_v37 = vcombine.low %v1016_v16, %v1020_v18  ;;  %v968_v54 = vld [vmem:[#allocation4 + $0x818] sm:$0xff] }
 0x2f6   :  { %4379 = vmatprep.subr.bf16.mxu1 %v5475_v17 }
 0x2f8   :  { %4339 = vmatpush2.bf16.msra.mxu0 %v5346_v30  ;;  %v1004_v30 = vld [vmem:[#allocation4 + $0x938] sm:$0xff] }
 0x2f9   :  { %4380 = vmatpush2.bf16.msra.mxu1 %v5474_v40  ;;  %4340 = vmatprep.subr.bf16.mxu0 %v5339_v41  ;;  %v1128_v40 = vld [vmem:[#allocation4 + $0xd18] sm:$0xff]  ;;  %v5547_v0 = vcombine.high %v1000_v29, %v1004_v30  ;;  %v5546_v60 = vcombine.low %v1000_v29, %v1004_v30 }
 0x2fa   :  { %4381 = vmatprep.subr.bf16.mxu1 %v5467_v45  ;;  %v1132_v41 = vld [vmem:[#allocation4 + $0xd38] sm:$0xff]  ;;  %v5554_v45 = vcombine.low %v1008_v59, %v1012_v20 }
 0x2fb   :  { %v5674_v50 = vcombine.low %v1128_v40, %v1132_v41  ;;  %v1100_v59 = vld [vmem:[#allocation4 + $0xc38] sm:$0xff] }
 0x2fc   :  { %4341 = vmatpush2.bf16.msra.mxu0 %v5338_v34  ;;  %v992_v34 = vld [vmem:[#allocation4 + $0x8d8] sm:$0xff] }
 0x2fd   :  { %4382 = vmatpush2.bf16.msra.mxu1 %v5466_v48  ;;  %4342 = vmatprep.subr.bf16.mxu0 %v5331_v47  ;;  %v996_v48 = vld [vmem:[#allocation4 + $0x8f8] sm:$0xff] }
 0x2fe   :  { %4383 = vmatprep.subr.bf16.mxu1 %v5459_v49  ;;  %v1120_v47 = vld [vmem:[#allocation4 + $0xcd8] sm:$0xff]  ;;  %v5539_v61 = vcombine.high %v992_v34, %v996_v48  ;;  %v5538_v7 = vcombine.low %v992_v34, %v996_v48 }
 0x2ff   :  { %v1124_v49 = vld [vmem:[#allocation4 + $0xcf8] sm:$0xff] }
 0x300   :  { %4343 = vmatpush2.bf16.msra.mxu0 %v5330_v4  ;;  %v5667_v62 = vcombine.high %v1120_v47, %v1124_v49  ;;  %v984_v4 = vld [vmem:[#allocation4 + $0x898] sm:$0xff]  ;;  %v5666_v8 = vcombine.low %v1120_v47, %v1124_v49 }
 0x301   :  { %4384 = vmatpush2.bf16.msra.mxu1 %v5458_v5  ;;  %4344 = vmatprep.subr.bf16.mxu0 %v5323_v6  ;;  %v988_v5 = vld [vmem:[#allocation4 + $0x8b8] sm:$0xff] }
 0x302   :  { %4385 = vmatprep.subr.bf16.mxu1 %v5451_v63  ;;  %v1112_v6 = vld [vmem:[#allocation4 + $0xc98] sm:$0xff]  ;;  %v5531_v52 = vcombine.high %v984_v4, %v988_v5  ;;  %v5530_v16 = vcombine.low %v984_v4, %v988_v5 }
 0x303   :  { %v1116_v63 = vld [vmem:[#allocation4 + $0xcb8] sm:$0xff] }
 0x304   :  { %4345 = vmatpush2.bf16.msra.mxu0 %v5322_v10  ;;  %v5659_v9 = vcombine.high %v1112_v6, %v1116_v63  ;;  %v976_v10 = vld [vmem:[#allocation4 + $0x858] sm:$0xff]  ;;  %v5658_v18 = vcombine.low %v1112_v6, %v1116_v63 }
 0x305   :  { %4386 = vmatpush2.bf16.msra.mxu1 %v5450_v12  ;;  %4396 = vmatprep.subr.bf16.mxu0 %v5571_v13  ;;  %v980_v12 = vld [vmem:[#allocation4 + $0x878] sm:$0xff] }
 0x306   :  { %4437 = vmatprep.subr.bf16.mxu1 %v5699_v15  ;;  %v1104_v13 = vld [vmem:[#allocation4 + $0xc58] sm:$0xff]  ;;  %v5522_v20 = vcombine.low %v976_v10, %v980_v12 }
 0x307   :  { %v4102_v21 = vpop.f32.mrf.mxu0  ;;  %4347 = vmatmul.mubr.bf16.vlgmr.msra.gmra.mxu0 %v6229_v1  ;;  %v1108_v15 = vld [vmem:[#allocation4 + $0xc78] sm:$0xff] }
 0x308   :  { %v4103_v27 = vadd.f32 %v4102_v21, %v6318_v43  ;;  %v4143_v36 = vpop.f32.mrf.mxu1  ;;  %4388 = vmatmul.mubr.bf16.vlgmr.msra.gmra.mxu1 %v6231_v2  ;;  %4397 = vmatpush1.bf16.msra.mxu0 %v5570_v19  ;;  %v5683_v43 = vcombine.high %v1136_v25, %v1140_v26  ;;  %v5523_v19 = vcombine.high %v976_v10, %v980_v12  ;;  %v1088_v26 = vld [vmem:[#allocation4 + $0xbd8] sm:$0xff] }
 0x309   :  { %4428 = vmatprep.mubr.bf16.mxu0 %v6255_v23  ;;  %4438 = vmatpush1.bf16.msra.mxu1 %v5698_v56  ;;  %v6327_v17 = vpop.f32.mrf.mxu0  ;;  %v5651_v53 = vcombine.high %v1104_v13, %v1108_v15  ;;  %v972_v56 = vld [vmem:[#allocation4 + $0x838] sm:$0xff]  ;;  %v5650_v21 = vcombine.low %v1104_v13, %v1108_v15 }
 0x30a   :  { %v6329_v32 = vadd.f32 %v4143_v36, %v4103_v27  ;;  %4469 = vmatprep.mubr.bf16.mxu1 %v6257_v24  ;;  %v6332_v1 = vpop.f32.mrf.mxu1  ;;  %4398 = vmatprep.subr.bf16.mxu0 %v5563_v58  ;;  %v5675_v24 = vcombine.high %v1128_v40, %v1132_v41  ;;  %v1096_v58 = vld [vmem:[#allocation4 + $0xc18] sm:$0xff] }
 0x30b   :  { %v4106_v2 = vpop.f32.mrf.mxu0  ;;  %4439 = vmatprep.subr.bf16.mxu1 %v5691_v22  ;;  %v5515_v22 = vcombine.high %v968_v54, %v972_v56  ;;  %v5643_v25 = vcombine.high %v1096_v58, %v1100_v59  ;;  %v1092_v27 = vld [vmem:[#allocation4 + $0xbf8] sm:$0xff] }
 0x30c   :  { %v4147_v23 = vpop.f32.mrf.mxu1  ;;  %4399 = vmatpush1.bf16.msra.mxu0 %v5562_v37  ;;  %v1216_v36 = vld [vmem:[#allocation4 + $0xfd8] sm:$0xff] }
 0x30d   :  { %4440 = vmatpush1.bf16.msra.mxu1 %v5690_v38  ;;  %v4107_v33 = vpop.f32.mrf.mxu0  ;;  %4400 = vmatprep.subr.bf16.mxu0 %v5555_v39  ;;  %v1220_v37 = vld [vmem:[#allocation4 + $0xff8] sm:$0xff]  ;;  %v5514_v38 = vcombine.low %v968_v54, %v972_v56  ;;  %v5642_v39 = vcombine.low %v1096_v58, %v1100_v59  ;;  %v5634_v23 = vcombine.low %v1088_v26, %v1092_v27 }
 0x30e   :  { %v4148_v44 = vpop.f32.mrf.mxu1  ;;  %4441 = vmatprep.subr.bf16.mxu1 %v5683_v43  ;;  %v5635_v43 = vcombine.high %v1088_v26, %v1092_v27  ;;  %v5763_v29 = vcombine.high %v1216_v36, %v1220_v37  ;;  %v1080_v30 = vld [vmem:[#allocation4 + $0xb98] sm:$0xff] }
 0x30f   :  { %v1084_v2 = vld [vmem:[#allocation4 + $0xbb8] sm:$0xff] }
 0x310   :  { %4401 = vmatpush1.bf16.msra.mxu0 %v5554_v45  ;;  %v1208_v40 = vld [vmem:[#allocation4 + $0xf98] sm:$0xff]  ;;  %v5762_v45 = vcombine.low %v1216_v36, %v1220_v37  ;;  %v5627_v33 = vcombine.high %v1080_v30, %v1084_v2  ;;  %v5626_v48 = vcombine.low %v1080_v30, %v1084_v2  ;;  %v4105_v2 = vadd.f32 %v6327_v17, %v6321_v51 }
 0x311   :  { %4442 = vmatpush1.bf16.msra.mxu1 %v5682_v35  ;;  %4402 = vmatprep.subr.bf16.mxu0 %v5547_v0  ;;  %v1212_v41 = vld [vmem:[#allocation4 + $0xfb8] sm:$0xff]  ;;  %v4479_v51 = vmax.f32 %v6307_v3, 0.0  ;;  %v5941_v3 = vld [vmem:[#allocation6 + $0x30] sm:$0xff]  }
 0x312   :  { %4443 = vmatprep.subr.bf16.mxu1 %v5675_v24  ;;  %v5755_v35 = vcombine.high %v1208_v40, %v1212_v41  ;;  %v1072_v0 = vld [vmem:[#allocation4 + $0xb58] sm:$0xff]  ;;  %v5754_v47 = vcombine.low %v1208_v40, %v1212_v41 }
 0x313   :  { %v1076_v44 = vld [vmem:[#allocation4 + $0xb78] sm:$0xff] }
 0x314   :  { %4403 = vmatpush1.bf16.msra.mxu0 %v5546_v60  ;;  %v1200_v24 = vld [vmem:[#allocation4 + $0xf58] sm:$0xff]  ;;  %v5619_v49 = vcombine.high %v1072_v0, %v1076_v44  ;;  %v5618_v5 = vcombine.low %v1072_v0, %v1076_v44 }
 0x315   :  { %4444 = vmatpush1.bf16.msra.mxu1 %v5674_v50  ;;  %4404 = vmatprep.subr.bf16.mxu0 %v5539_v61  ;;  %v1204_v34 = vld [vmem:[#allocation4 + $0xf78] sm:$0xff] }
 0x316   :  { %4445 = vmatprep.subr.bf16.mxu1 %v5667_v62  ;;  %v5747_v60 = vcombine.high %v1200_v24, %v1204_v34  ;;  %v1064_v50 = vld [vmem:[#allocation4 + $0xb18] sm:$0xff]  ;;  %v5746_v6 = vcombine.low %v1200_v24, %v1204_v34 }
 0x317   :  { %v1068_v61 = vld [vmem:[#allocation4 + $0xb38] sm:$0xff] }
 0x318   :  { %4405 = vmatpush1.bf16.msra.mxu0 %v5538_v7  ;;  %v1192_v62 = vld [vmem:[#allocation4 + $0xf18] sm:$0xff]  ;;  %v5611_v63 = vcombine.high %v1064_v50, %v1068_v61  ;;  %v5610_v12 = vcombine.low %v1064_v50, %v1068_v61 }
 0x319   :  { %4446 = vmatpush1.bf16.msra.mxu1 %v5666_v8  ;;  %4406 = vmatprep.subr.bf16.mxu0 %v5531_v52  ;;  %v1196_v4 = vld [vmem:[#allocation4 + $0xf38] sm:$0xff] }
 0x31a   :  { %4447 = vmatprep.subr.bf16.mxu1 %v5659_v9  ;;  %v5739_v7 = vcombine.high %v1192_v62, %v1196_v4  ;;  %v1056_v8 = vld [vmem:[#allocation4 + $0xad8] sm:$0xff]  ;;  %v5738_v13 = vcombine.low %v1192_v62, %v1196_v4  ;;  %v5942_v4 = vld [vmem:[#allocation6 + $0xb0] sm:$0xff]  }
 0x31b   :  { %v1060_v52 = vld [vmem:[#allocation4 + $0xaf8] sm:$0xff] }
 0x31c   :  { %4407 = vmatpush1.bf16.msra.mxu0 %v5530_v16  ;;  %v1184_v9 = vld [vmem:[#allocation4 + $0xed8] sm:$0xff]  ;;  %v5603_v15 = vcombine.high %v1056_v8, %v1060_v52  ;;  %v5602_v56 = vcombine.low %v1056_v8, %v1060_v52  ;;  %v5945_v8 = vld [vmem:[#allocation6 + $0x28] sm:$0xff]  }
 0x31d   :  { %4448 = vmatpush1.bf16.msra.mxu1 %v5658_v18  ;;  %4408 = vmatprep.subr.bf16.mxu0 %v5523_v19  ;;  %v1188_v10 = vld [vmem:[#allocation4 + $0xef8] sm:$0xff]  ;;  %v5946_v52 = vld [vmem:[#allocation6 + $0xa8] sm:$0xff]  }
 0x31e   :  { %4449 = vmatprep.subr.bf16.mxu1 %v5651_v53  ;;  %v5731_v16 = vcombine.high %v1184_v9, %v1188_v10  ;;  %v1048_v18 = vld [vmem:[#allocation4 + $0xa98] sm:$0xff]  ;;  %v5730_v58 = vcombine.low %v1184_v9, %v1188_v10  ;;  %v5947_v9 = vld [vmem:[#allocation6 + $0x60] sm:$0xff]  }
 0x31f   :  { %v1052_v19 = vld [vmem:[#allocation4 + $0xab8] sm:$0xff] }
 0x320   :  { %4409 = vmatpush1.bf16.msra.mxu0 %v5522_v20  ;;  %v1176_v53 = vld [vmem:[#allocation4 + $0xe98] sm:$0xff]  ;;  %v5595_v59 = vcombine.high %v1048_v18, %v1052_v19  ;;  %v5594_v27 = vcombine.low %v1048_v18, %v1052_v19 }
 0x321   :  { %4450 = vmatpush1.bf16.msra.mxu1 %v5650_v21  ;;  %4410 = vmatprep.subr.bf16.mxu0 %v5515_v22  ;;  %v1180_v54 = vld [vmem:[#allocation4 + $0xeb8] sm:$0xff] }
 0x322   :  { %4451 = vmatprep.subr.bf16.mxu1 %v5643_v25  ;;  %v5723_v20 = vcombine.high %v1176_v53, %v1180_v54  ;;  %v1040_v21 = vld [vmem:[#allocation4 + $0xa58] sm:$0xff]  ;;  %v5722_v36 = vcombine.low %v1176_v53, %v1180_v54  ;;  %v5955_v54 = vld [vmem:[#allocation6 + $0x50] sm:$0xff]  }
 0x323   :  { %v1044_v22 = vld [vmem:[#allocation4 + $0xa78] sm:$0xff] }
 0x324   :  { %4411 = vmatpush1.bf16.msra.mxu0 %v5514_v38  ;;  %v1168_v25 = vld [vmem:[#allocation4 + $0xe58] sm:$0xff]  ;;  %v5587_v37 = vcombine.high %v1040_v21, %v1044_v22  ;;  %v5586_v40 = vcombine.low %v1040_v21, %v1044_v22  ;;  %v5960_v21 = vld [vmem:[#allocation6 + $0xc8] sm:$0xff]  }
 0x325   :  { %4452 = vmatpush1.bf16.msra.mxu1 %v5642_v39  ;;  %4412 = vmatprep.subr.bf16.mxu0 %v5635_v43  ;;  %v1172_v26 = vld [vmem:[#allocation4 + $0xe78] sm:$0xff]  ;;  %v5961_v22 = vld [vmem:[#allocation6 + $0x8] sm:$0xff]  }
 0x326   :  { %4453 = vmatprep.subr.bf16.mxu1 %v5763_v29  ;;  %v5715_v38 = vcombine.high %v1168_v25, %v1172_v26  ;;  %v1032_v39 = vld [vmem:[#allocation4 + $0xa18] sm:$0xff]  ;;  %v5714_v41 = vcombine.low %v1168_v25, %v1172_v26  ;;  %v5962_v25 = vld [vmem:[#allocation6 + $0x88] sm:$0xff]   ;;  %v5963_v26 = vld [vmem:[#allocation6 + $0x40] sm:$0xff]  }
 0x327   :  { %v1036_v43 = vld [vmem:[#allocation4 + $0xa38] sm:$0xff] }
 0x328   :  { %4413 = vmatpush2.bf16.msra.mxu0 %v5634_v23  ;;  %v1160_v29 = vld [vmem:[#allocation4 + $0xe18] sm:$0xff]  ;;  %v5579_v23 = vcombine.high %v1032_v39, %v1036_v43 }
 0x329   :  { %4454 = vmatpush2.bf16.msra.mxu1 %v5762_v45  ;;  %4414 = vmatprep.subr.bf16.mxu0 %v5627_v33  ;;  %v1164_v30 = vld [vmem:[#allocation4 + $0xe38] sm:$0xff]  ;;  %v4146_v33 = vadd.f32 %v6332_v1, %v4105_v2 }
 0x32a   :  { %4455 = vmatprep.subr.bf16.mxu1 %v5755_v35  ;;  %v5707_v45 = vcombine.high %v1160_v29, %v1164_v30  ;;  %v5578_v35 = vcombine.low %v1032_v39, %v1036_v43  ;;  %v5706_v0 = vcombine.low %v1160_v29, %v1164_v30  ;;  %v5935_v44 = vld [vmem:[#allocation6 + $0x78] sm:$0xff]   ;;  %v4480_v43 = vmax.f32 %v6329_v32, 0.0  ;;  %v5986_v32 = vld [vmem:[#allocation6 + $0x1b0] sm:$0xff]  }
 0x32b   :  { %v5936_v24 = vld [vmem:[#allocation6 + $0xf8] sm:$0xff]   ;;  %v4481_v17 = vmax.f32 %v4146_v33, 0.0  ;;  %v5971_v33 = vld [vmem:[#allocation6 + $0x168] sm:$0xff]  }
 0x32c   :  { %4415 = vmatpush2.bf16.msra.mxu0 %v5626_v48  ;;  %v5937_v34 = vld [vmem:[#allocation6 + $0x38] sm:$0xff]  }
 0x32d   :  { %4456 = vmatpush2.bf16.msra.mxu1 %v5754_v47  ;;  %4416 = vmatprep.subr.bf16.mxu0 %v5619_v49  ;;  %v5938_v48 = vld [vmem:[#allocation6 + $0xb8] sm:$0xff]   ;;  %v5939_v47 = vld [vmem:[#allocation6 + $0x70] sm:$0xff]   ;;  %v4487_v49 = vpack.c.bf16 %v4479_v51, %v4479_v51  ;;  %v4489_v50 = vpack.c.bf16 %v4481_v17, %v4481_v17  ;;  %v5989_v51 = vld [vmem:[#allocation6 + $0x1e0] sm:$0xff]  }
 0x32e   :  { %4457 = vmatprep.subr.bf16.mxu1 %v5747_v60  ;;  %v5940_v60 = vld [vmem:[#allocation6 + $0xf0] sm:$0xff]   ;;  %v5952_v18 = vld [vmem:[#allocation6 + $0xd8] sm:$0xff]   ;;  %v5974_v17 = vld [vmem:[#allocation6 + $0x120] sm:$0xff]  }
 0x32f   :  { %v5953_v19 = vld [vmem:[#allocation6 + $0x18] sm:$0xff]  }
 0x330   :  { %4417 = vmatpush2.bf16.msra.mxu0 %v5618_v5  ;;  %v5943_v5 = vld [vmem:[#allocation6 + $0x68] sm:$0xff]   ;;  %v5954_v53 = vld [vmem:[#allocation6 + $0x98] sm:$0xff]  }
 0x331   :  { %4458 = vmatpush2.bf16.msra.mxu1 %v5746_v6  ;;  %4418 = vmatprep.subr.bf16.mxu0 %v5611_v63  ;;  %v5944_v63 = vld [vmem:[#allocation6 + $0xe8] sm:$0xff]   ;;  %v5967_v39 = vld [vmem:[#allocation6 + $0x178] sm:$0xff]  }
 0x332   :  { %4459 = vmatprep.subr.bf16.mxu1 %v5739_v7  ;;  %v5983_v29 = vld [vmem:[#allocation6 + $0x1f8] sm:$0xff]  }
 0x333   :  { %v5968_v30 = vld [vmem:[#allocation6 + $0x138] sm:$0xff]  }
 0x334   :  { %4419 = vmatpush2.bf16.msra.mxu0 %v5610_v12  ;;  %v5948_v12 = vld [vmem:[#allocation6 + $0xe0] sm:$0xff]  }
 0x335   :  { %4460 = vmatpush2.bf16.msra.mxu1 %v5738_v13  ;;  %4420 = vmatprep.subr.bf16.mxu0 %v5603_v15  ;;  %v5949_v13 = vld [vmem:[#allocation6 + $0x20] sm:$0xff]  }
 0x336   :  { %4461 = vmatprep.subr.bf16.mxu1 %v5731_v16  ;;  %v5950_v15 = vld [vmem:[#allocation6 + $0xa0] sm:$0xff]   ;;  %v5951_v16 = vld [vmem:[#allocation6 + $0x58] sm:$0xff]  }
 0x338   :  { %4421 = vmatpush2.bf16.msra.mxu0 %v5602_v56  ;;  %v5956_v56 = vld [vmem:[#allocation6 + $0xd0] sm:$0xff]  }
 0x339   :  { %4462 = vmatpush2.bf16.msra.mxu1 %v5730_v58  ;;  %4422 = vmatprep.subr.bf16.mxu0 %v5595_v59  ;;  %v5957_v58 = vld [vmem:[#allocation6 + $0x10] sm:$0xff]  }
 0x33a   :  { %4463 = vmatprep.subr.bf16.mxu1 %v5723_v20  ;;  %v5958_v59 = vld [vmem:[#allocation6 + $0x90] sm:$0xff]   ;;  %v5959_v20 = vld [vmem:[#allocation6 + $0x48] sm:$0xff]  }
 0x33c   :  { %4423 = vmatpush2.bf16.msra.mxu0 %v5594_v27  ;;  %v5964_v27 = vld [vmem:[#allocation6 + $0xc0] sm:$0xff]  }
 0x33d   :  { %4464 = vmatpush2.bf16.msra.mxu1 %v5722_v36  ;;  %4424 = vmatprep.subr.bf16.mxu0 %v5587_v37  ;;  %v5965_v36 = vld [vmem:[#allocation6] sm:$0xff]   ;;  %v4478_v37 = vmax.f32 %v6303_v31, 0.0  ;;  %v5970_v31 = vld [vmem:[#allocation6 + $0x130] sm:$0xff]  }
 0x33e   :  { %4465 = vmatprep.subr.bf16.mxu1 %v5715_v38  ;;  %v5966_v38 = vld [vmem:[#allocation6 + $0x80] sm:$0xff]  }
 0x33f   :  { %v4486_v2 = vpack.c.bf16 %v4478_v37, %v4478_v37 }
 0x340   :  { %4425 = vmatpush2.bf16.msra.mxu0 %v5586_v40  ;;  %v5969_v40 = vld [vmem:[#allocation6 + $0x170] sm:$0xff]  }
 0x341   :  { %4466 = vmatpush2.bf16.msra.mxu1 %v5714_v41  ;;  %4426 = vmatprep.subr.bf16.mxu0 %v5579_v23  ;;  %v5984_v41 = vld [vmem:[#allocation6 + $0x1b8] sm:$0xff]   ;;  %v4488_v23 = vpack.c.bf16 %v4480_v43, %v4480_v43 }
 0x342   :  { %4467 = vmatprep.subr.bf16.mxu1 %v5707_v45  ;;  %v5985_v45 = vld [vmem:[#allocation6 + $0x1f0] sm:$0xff]  }
 0x344   :  { %4427 = vmatpush2.bf16.msra.mxu0 %v5578_v35  ;;  %v5987_v35 = vld [vmem:[#allocation6 + $0x1e8] sm:$0xff]  }
 0x345   :  { %4468 = vmatpush2.bf16.msra.mxu1 %v5706_v0  ;;  %5829 = vmatprep.subr.bf16.mxu0 %v5935_v44  ;;  %v5972_v0 = vld [vmem:[#allocation6 + $0x128] sm:$0xff]   ;;  %v5973_v44 = vld [vmem:[#allocation6 + $0x160] sm:$0xff]  }
 0x346   :  { %5851 = vmatprep.subr.bf16.mxu1 %v5936_v24  ;;  %v5988_v24 = vld [vmem:[#allocation6 + $0x1a8] sm:$0xff]  }
 0x347   :  { %v6338_v1 = vpop.f32.mrf.mxu0  ;;  %4429 = vmatmul.mubr.bf16.vlgmr.msra.gmra.mxu0 %v6271_v55 }
 0x348   :  { %v6341_v61 = vpop.f32.mrf.mxu1  ;;  %4470 = vmatmul.mubr.bf16.vlgmr.msra.gmra.mxu1 %v6273_v57  ;;  %5830 = vmatpush3.bf16.msra.mxu0 %v5937_v34  ;;  %v5975_v34 = vld [vmem:[#allocation6 + $0x158] sm:$0xff]  }
 0x349   :  { %5044 = vmatprep.mubr.bf16.mxu0 %v4487_v49  ;;  %5852 = vmatpush3.bf16.msra.mxu1 %v5938_v48  ;;  %v6344_v62 = vpop.f32.mrf.mxu0  ;;  %v5990_v48 = vld [vmem:[#allocation6 + $0x1a0] sm:$0xff]   ;;  %v5976_v49 = vld [vmem:[#allocation6 + $0x118] sm:$0xff]  }
 0x34a   :  { %5084 = vmatprep.mubr.bf16.mxu1 %v4489_v50  ;;  %v6346_v6 = vpop.f32.mrf.mxu1  ;;  %5831 = vmatprep.subr.bf16.mxu0 %v5939_v47  ;;  %v5991_v47 = vld [vmem:[#allocation6 + $0x1d8] sm:$0xff]  }
 0x34b   :  { %v4188_v55 = vpop.f32.mrf.mxu0  ;;  %5853 = vmatprep.subr.bf16.mxu1 %v5940_v60  ;;  %v5977_v60 = vld [vmem:[#allocation6 + $0x150] sm:$0xff]   ;;  %v5992_v50 = vld [vmem:[#allocation6 + $0x198] sm:$0xff]  }
 0x34c   :  { %v4229_v7 = vpop.f32.mrf.mxu1  ;;  %5832 = vmatpush3.bf16.msra.mxu0 %v5941_v3  ;;  %v5978_v3 = vld [vmem:[#allocation6 + $0x110] sm:$0xff]   ;;  %v5999_v55 = vld [vmem:[#allocation7 + $0x8] sm:$0xff] }
 0x34d   :  { %5854 = vmatpush3.bf16.msra.mxu1 %v5942_v4  ;;  %v4189_v57 = vpop.f32.mrf.mxu0  ;;  %5833 = vmatprep.subr.bf16.mxu0 %v5943_v5  ;;  %v5979_v4 = vld [vmem:[#allocation6 + $0x148] sm:$0xff]   ;;  %v1241_v7 = vrot.slane %v5999_v55, %v187_v11  ;;  %v5994_v11 = vld [vmem:[#allocation6 + $0x190] sm:$0xff]  }
 0x34e   :  { %v4230_v10 = vpop.f32.mrf.mxu1  ;;  %5855 = vmatprep.subr.bf16.mxu1 %v5944_v63  ;;  %v5980_v5 = vld [vmem:[#allocation6 + $0x108] sm:$0xff]   ;;  %v5981_v63 = vld [vmem:[#allocation6 + $0x140] sm:$0xff]  }
 0x34f   :  { %v5982_v57 = vld [vmem:[#allocation6 + $0x100] sm:$0xff]  }
 0x350   :  { %5834 = vmatpush3.bf16.msra.mxu0 %v5945_v8  ;;  %v1245_v8 = vrot.slane %v5999_v55, %v191_v42 }
 0x351   :  { %5856 = vmatpush3.bf16.msra.mxu1 %v5946_v52  ;;  %5835 = vmatprep.subr.bf16.mxu0 %v5947_v9  ;;  %v4185_v52 = vadd.f32 %v6338_v1, %v1241_v7  ;;  %v5995_v1 = vld [vmem:[#allocation6 + $0x1c8] sm:$0xff]  }
 0x352   :  { %5857 = vmatprep.subr.bf16.mxu1 %v5948_v12  ;;  %v4187_v9 = vadd.f32 %v6344_v62, %v1245_v8 }
 0x353   :  { %v4226_v10 = vadd.f32 %v6341_v61, %v4185_v52 }
 0x354   :  { %5836 = vmatpush3.bf16.msra.mxu0 %v5949_v13  ;;  %v5993_v13 = vld [vmem:[#allocation6 + $0x1d0] sm:$0xff]  }
 0x355   :  { %5858 = vmatpush3.bf16.msra.mxu1 %v5950_v15  ;;  %5837 = vmatprep.subr.bf16.mxu0 %v5951_v16  ;;  %v4228_v15 = vadd.f32 %v6346_v6, %v4187_v9  ;;  %v5997_v6 = vld [vmem:[#allocation6 + $0x1c0] sm:$0xff]  }
 0x356   :  { %5859 = vmatprep.subr.bf16.mxu1 %v5952_v18 }
 0x358   :  { %5838 = vmatpush3.bf16.msra.mxu0 %v5953_v19 }
 0x359   :  { %5860 = vmatpush3.bf16.msra.mxu1 %v5954_v53  ;;  %5839 = vmatprep.subr.bf16.mxu0 %v5955_v54 }
 0x35a   :  { %5861 = vmatprep.subr.bf16.mxu1 %v5956_v56 }
 0x35c   :  { %5840 = vmatpush3.bf16.msra.mxu0 %v5957_v58 }
 0x35d   :  { %5862 = vmatpush3.bf16.msra.mxu1 %v5958_v59  ;;  %5841 = vmatprep.subr.bf16.mxu0 %v5959_v20  ;;  %v5996_v59 = vld [vmem:[#allocation6 + $0x188] sm:$0xff]  }
 0x35e   :  { %5863 = vmatprep.subr.bf16.mxu1 %v5960_v21 }
 0x360   :  { %5842 = vmatpush3.bf16.msra.mxu0 %v5961_v22 }
 0x361   :  { %5864 = vmatpush3.bf16.msra.mxu1 %v5962_v25  ;;  %5843 = vmatprep.subr.bf16.mxu0 %v5963_v26  ;;  %v5998_v26 = vld [vmem:[#allocation6 + $0x180] sm:$0xff]  }
 0x362   :  { %5865 = vmatprep.subr.bf16.mxu1 %v5964_v27 }
 0x364   :  { %5844 = vmatpush3.bf16.msra.mxu0 %v5965_v36 }
 0x365   :  { %5866 = vmatpush3.bf16.msra.mxu1 %v5966_v38  ;;  %5873 = vmatprep.subr.bf16.mxu0 %v5967_v39 }
 0x366   :  { %5895 = vmatprep.subr.bf16.mxu1 %v5983_v29 }
 0x367   :  { %5045 = vmatmul.mubr.bf16.vlgmr.msra.gmra.mxu0 %v4486_v2 }
 0x368   :  { %5085 = vmatmul.mubr.bf16.vlgmr.msra.gmra.mxu1 %v4488_v23  ;;  %5874 = vmatpush3.bf16.msra.mxu0 %v5968_v30 }
 0x369   :  { %5875 = vmatprep.subr.bf16.mxu0 %v5969_v40  ;;  %5896 = vmatpush3.bf16.msra.mxu1 %v5984_v41  ;;  %v1249_v40 = vrot.slane %v5999_v55, %v195_v14  ;;  %v1253_v41 = vrot.slane %v5999_v55, %v199_v46 }
 0x36a   :  { %5897 = vmatprep.subr.bf16.mxu1 %v5985_v45 }
 0x36c   :  { %5876 = vmatpush3.bf16.msra.mxu0 %v5970_v31 }
 0x36d   :  { %5877 = vmatprep.subr.bf16.mxu0 %v5971_v33  ;;  %5898 = vmatpush3.bf16.msra.mxu1 %v5986_v32 }
 0x36e   :  { %5899 = vmatprep.subr.bf16.mxu1 %v5987_v35 }
 0x370   :  { %5878 = vmatpush3.bf16.msra.mxu0 %v5972_v0 }
 0x371   :  { %5879 = vmatprep.subr.bf16.mxu0 %v5973_v44  ;;  %5900 = vmatpush3.bf16.msra.mxu1 %v5988_v24 }
 0x372   :  { %5901 = vmatprep.subr.bf16.mxu1 %v5989_v51 }
 0x374   :  { %5880 = vmatpush3.bf16.msra.mxu0 %v5974_v17 }
 0x375   :  { %5881 = vmatprep.subr.bf16.mxu0 %v5975_v34  ;;  %5902 = vmatpush3.bf16.msra.mxu1 %v5990_v48 }
 0x376   :  { %5903 = vmatprep.subr.bf16.mxu1 %v5991_v47 }
 0x378   :  { %5882 = vmatpush3.bf16.msra.mxu0 %v5976_v49 }
 0x379   :  { %5883 = vmatprep.subr.bf16.mxu0 %v5977_v60  ;;  %5904 = vmatpush3.bf16.msra.mxu1 %v5992_v50 }
 0x37a   :  { %5905 = vmatprep.subr.bf16.mxu1 %v5993_v13 }
 0x37c   :  { %5884 = vmatpush3.bf16.msra.mxu0 %v5978_v3 }
 0x37d   :  { %5885 = vmatprep.subr.bf16.mxu0 %v5979_v4  ;;  %5906 = vmatpush3.bf16.msra.mxu1 %v5994_v11 }
 0x37e   :  { %5907 = vmatprep.subr.bf16.mxu1 %v5995_v1 }
 0x380   :  { %5886 = vmatpush3.bf16.msra.mxu0 %v5980_v5  ;;  %v5764_v5 = vld [vmem:[#allocation7 + $0x10] ss:$0 sm:$0xff] }
 0x381   :  { %5887 = vmatprep.subr.bf16.mxu0 %v5981_v63  ;;  %5908 = vmatpush3.bf16.msra.mxu1 %v5996_v59 }
 0x382   :  { %5909 = vmatprep.subr.bf16.mxu1 %v5997_v6 }
 0x384   :  { %5888 = vmatpush3.bf16.msra.mxu0 %v5982_v57 }
 0x385   :  { %5910 = vmatpush3.bf16.msra.mxu1 %v5998_v26 }
 0x387   :  { %v4266_v12 = vpop.f32.mrf.mxu0 }
 0x388   :  { %v4267_v16 = vadd.f32 %v4266_v12, %v4226_v10  ;;  %v4307_v18 = vpop.f32.mrf.mxu1 }
 0x389   :  { %v4268_v19 = vpop.f32.mrf.mxu0 }
 0x38a   :  { %v4308_v42 = vadd.f32 %v4307_v18, %v4267_v16  ;;  %v4269_v53 = vadd.f32 %v4268_v19, %v4228_v15  ;;  %v4309_v54 = vpop.f32.mrf.mxu1 }
 0x38b   :  { %v4270_v56 = vpop.f32.mrf.mxu0 }
 0x38c   :  { %v4310_v58 = vadd.f32 %v4309_v54, %v4269_v53  ;;  %v4311_v62 = vpop.f32.mrf.mxu1  ;;  %v4482_v20 = vmax.f32 %v4308_v42, 0.0 }
 0x38d   :  { %v4271_v61 = vpop.f32.mrf.mxu0 }
 0x38e   :  { %v4483_v21 = vmax.f32 %v4310_v58, 0.0  ;;  %v4312_v22 = vpop.f32.mrf.mxu1  ;;  %v4490_v27 = vpack.c.bf16 %v4482_v20, %v4482_v20 }
 0x390   :  { %v4491_v25 = vpack.c.bf16 %v4483_v21, %v4483_v21 }
 0x392   :  { %5124 = vmatprep.mubr.bf16.mxu0 %v4491_v25 }
 0x393   :  { %5125 = vmatmul.mubr.bf16.vlgmr.msra.gmra.mxu0 %v4490_v27 }
 0x3c7   :  { %v4348_v36 = vpop.f32.mrf.mxu0 }
 0x3c8   :  { %v4389_v37 = vpop.f32.mrf.mxu1  ;;  %v4349_v23 = vadd.f32 %v4348_v36, %v1249_v40 }
 0x3c9   :  { %v4350_v38 = vpop.f32.mrf.mxu0 }
 0x3ca   :  { %v4391_v39 = vpop.f32.mrf.mxu1  ;;  %v4351_v45 = vadd.f32 %v4350_v38, %v1253_v41  ;;  %v4390_v31 = vadd.f32 %v4389_v37, %v4349_v23 }
 0x3cb   :  { %v4352_v43 = vpop.f32.mrf.mxu0 }
 0x3cc   :  { %v4393_v29 = vpop.f32.mrf.mxu1  ;;  %v4392_v32 = vadd.f32 %v4391_v39, %v4351_v45 }
 0x3cd   :  { %v4353_v30 = vpop.f32.mrf.mxu0 }
 0x3ce   :  { %v4394_v2 = vpop.f32.mrf.mxu1 }
 0x407   :  { %v4430_v33 = vpop.f32.mrf.mxu0 }
 0x408   :  { %v4431_v35 = vadd.f32 %v4430_v33, %v4390_v31  ;;  %v4471_v0 = vpop.f32.mrf.mxu1 }
 0x409   :  { %v4432_v44 = vpop.f32.mrf.mxu0 }
 0x40a   :  { %v4472_v24 = vadd.f32 %v4471_v0, %v4431_v35  ;;  %v4433_v51 = vadd.f32 %v4432_v44, %v4392_v32  ;;  %v4473_v17 = vpop.f32.mrf.mxu1 }
 0x40b   :  { %v4434_v34 = vpop.f32.mrf.mxu0 }
 0x40c   :  { %v4474_v48 = vadd.f32 %v4473_v17, %v4433_v51  ;;  %v4475_v47 = vpop.f32.mrf.mxu1  ;;  %v4484_v49 = vmax.f32 %v4472_v24, 0.0 }
 0x40d   :  { %v4435_v60 = vpop.f32.mrf.mxu0 }
 0x40e   :  { %v4485_v14 = vmax.f32 %v4474_v48, 0.0  ;;  %v4476_v50 = vpop.f32.mrf.mxu1  ;;  %v4492_v46 = vpack.c.bf16 %v4484_v49, %v4484_v49 }
 0x410   :  { %v4493_v28 = vpack.c.bf16 %v4485_v14, %v4485_v14 }
 0x412   :  { %5164 = vmatprep.mubr.bf16.mxu1 %v4493_v28 }
 0x413   :  { %5165 = vmatmul.mubr.bf16.vlgmr.msra.gmra.mxu1 %v4492_v46 }
 0x427   :  { %v5845_v3 = vpop.f32.mrf.mxu0 }
 0x428   :  { %v5867_v4 = vpop.f32.mrf.mxu1 }
 0x429   :  { %v5846_v63 = vpop.f32.mrf.mxu0 }
 0x42a   :  { %v5847_v55 = vadd.f32 %v5846_v63, %v5845_v3  ;;  %v5868_v7 = vpop.f32.mrf.mxu1 }
 0x42b   :  { %v5869_v8 = vadd.f32 %v5868_v7, %v5867_v4  ;;  %v5848_v57 = vpop.f32.mrf.mxu0 }
 0x42c   :  { %v5047_v52 = vadd.f32 %v5847_v55, %v5764_v5  ;;  %v5870_v9 = vpop.f32.mrf.mxu1 }
 0x42d   :  { %v5849_v10 = vpop.f32.mrf.mxu0 }
 0x42e   :  { %v5087_v12 = vadd.f32 %v5869_v8, %v5047_v52  ;;  %v5871_v13 = vpop.f32.mrf.mxu1 }
 0x453   :  { %v5889_v15 = vpop.f32.mrf.mxu0 }
 0x455   :  { %v5890_v16 = vpop.f32.mrf.mxu0 }
 0x456   :  { %v5891_v18 = vadd.f32 %v5890_v16, %v5889_v15 }
 0x457   :  { %v5892_v11 = vpop.f32.mrf.mxu0 }
 0x458   :  { %v5127_v19 = vadd.f32 %v5891_v18, %v5087_v12 }
 0x459   :  { %v5893_v42 = vpop.f32.mrf.mxu0 }
 0x4d3   :  { %v5911_v53 = vpop.f32.mrf.mxu1 }
 0x4d5   :  { %v5912_v54 = vpop.f32.mrf.mxu1 }
 0x4d6   :  { %v5913_v56 = vadd.f32 %v5912_v54, %v5911_v53 }
 0x4d7   :  { %v5914_v1 = vpop.f32.mrf.mxu1 }
 0x4d8   :  { %v5167_v58 = vadd.f32 %v5913_v56, %v5127_v19 }
 0x4d9   :  { %v5915_v62 = vpop.f32.mrf.mxu1 }
 0x4da   :  { %5172 = vst [vmem:[%s6370_s5] sm:$0xff] %v5167_v58 }
 0x4db   :  { %5177 = vsyncpa [#allocation3], 1 }
 0x4dc   :  { %5178 = vsyncpa [#allocation5], 1 }
 0x4dd   :  { %5179 = vsyncpa [#allocation8], 1 }

</bundles_post_ra>
